<compile_context>
chip_gen: v7x
topology: tpu7x:2x2x1
jax: 0.10.0
libtpu: 0.0.40
codegen_flags: <defaults>
</compile_context>

<pallas_src>
import jax
import jax.numpy as jnp
import numpy as np
from jax.experimental import pallas as pl
from jax.experimental.pallas import tpu as pltpu


BN_EPS = 1e-5
LEAKY_SLOPE = 0.01
KSIZE, STRIDE, PAD = 3, 2, 1


# ---------------------------------------------------------------------------
# Host-side construction of the fused-kernel operands (one-off, tiny sizes).
# ---------------------------------------------------------------------------
def _conv_as_matrix(w_np, H, W):
    """Dense matrix T with  flat_NHWC(conv2d(x, w, s=2, p=1)) == flat_NHWC(x) @ T.

    w_np: (3, 3, Cin, Cout) float32 numpy array (HWIO, cross-correlation like
    PyTorch).  Returns (T, Ho, Wo) with T of shape (H*W*Cin, Ho*Wo*Cout).
    """
    kh, kw, cin, cout = w_np.shape
    ho = (H + 2 * PAD - kh) // STRIDE + 1
    wo = (W + 2 * PAD - kw) // STRIDE + 1
    t = np.zeros((H * W * cin, ho * wo * cout), dtype=np.float32)
    for i in range(ho):
        for j in range(wo):
            col = (i * wo + j) * cout
            for di in range(kh):
                y = STRIDE * i + di - PAD
                if not 0 <= y < H:
                    continue
                for dj in range(kw):
                    x = STRIDE * j + dj - PAD
                    if not 0 <= x < W:
                        continue
                    row = (y * W + x) * cin
                    t[row:row + cin, col:col + cout] += w_np[di, dj]
    return t, ho, wo


def build_fused_operands(params, in_hw, in_ch):
    """Per-layer operands for the fused kernel.

    For each layer: (T bf16, S f32, B f32, gamma f32 (1,C), beta f32 (1,C)).
    S (Ho*Wo*C, C) sums the interleaved lane dim per channel; B = S^T
    broadcasts a per-channel row vector back onto the lane dim.  The conv bias
    is omitted: with training-mode BatchNorm it cancels exactly.
    """
    H, W = in_hw
    cin = in_ch
    ops = []
    ho = wo = None
    for (w, _b, gamma, beta) in params:
        w_np = np.asarray(w, dtype=np.float32)
        cout = w_np.shape[-1]
        t_np, ho, wo = _conv_as_matrix(w_np, H, W)
        s_np = np.tile(np.eye(cout, dtype=np.float32), (ho * wo, 1))
        ops += [
            jnp.asarray(t_np, dtype=jnp.bfloat16),                          # conv as one matmul
            jnp.asarray(s_np, dtype=jnp.float32),                           # lane -> channel reduce
            jnp.asarray(np.ascontiguousarray(s_np.T), dtype=jnp.float32),   # channel -> lane bcast
            jnp.asarray(gamma, dtype=jnp.float32).reshape(1, cout),
            jnp.asarray(beta, dtype=jnp.float32).reshape(1, cout),
        ]
        H, W, cin = ho, wo, cout
    return ops, (ho, wo), cin


# ---------------------------------------------------------------------------
# The fused Pallas kernel: all 5 x (Conv + BN + LeakyReLU) layers in VMEM.
# ---------------------------------------------------------------------------
def _encoder_fused_kernel(x_ref, *refs):
    """x_ref: (N, H*W*Cin) f32.  refs: 5 operands per layer, then the output ref."""
    o_ref = refs[-1]
    layer_refs = refs[:-1]
    num_layers = len(layer_refs) // 5

    act = x_ref[...]                                            # f32 (N, H*W*Cin)
    for l in range(num_layers):
        t_ref, s_ref, b_ref, g_ref, be_ref = layer_refs[5 * l:5 * (l + 1)]

        # Conv2d(k=3, s=2, p=1), bias dropped (cancels under batch-stat BN),
        # as one MXU matmul: bf16 operands, f32 accumulation.
        y = jnp.dot(act.astype(jnp.bfloat16), t_ref[...],
                    preferred_element_type=jnp.float32)         # (N, Ho*Wo*C)

        # BatchNorm2d, training-mode batch statistics, two-pass, all in f32.
        c = g_ref.shape[-1]
        m = y.shape[0] * (y.shape[1] // c)                      # N * Ho * Wo
        sel = s_ref[...]                                        # (Ho*Wo*C, C)
        bcast = b_ref[...]                                      # (C, Ho*Wo*C)
        mean = jnp.sum(jnp.dot(y, sel, preferred_element_type=jnp.float32),
                       axis=0, keepdims=True) * (1.0 / m)       # (1, C)
        d = y - jnp.dot(mean, bcast, preferred_element_type=jnp.float32)
        var = jnp.sum(jnp.dot(d * d, sel, preferred_element_type=jnp.float32),
                      axis=0, keepdims=True) * (1.0 / m)        # (1, C), biased
        scale = g_ref[...] * jax.lax.rsqrt(var + BN_EPS)        # gamma / sqrt(var+eps)
        y = (d * jnp.dot(scale, bcast, preferred_element_type=jnp.float32)
             + jnp.dot(be_ref[...], bcast, preferred_element_type=jnp.float32))

        # LeakyReLU(0.01).
        act = jnp.where(y > 0, y, LEAKY_SLOPE * y)

    o_ref[...] = act.astype(o_ref.dtype)


def _full_block(arr):
    assert arr.ndim == 2
    return pl.BlockSpec(arr.shape, lambda i: (0, 0))


def encoder_forward(x_nchw, params):
    """Encoder.forward: (N, 3, H, W) NCHW -> (N, C_last, H', W') NCHW."""
    n, cin, H, W = x_nchw.shape
    x_flat = jnp.transpose(x_nchw, (0, 2, 3, 1)).reshape(n, H * W * cin)
    ops, (ho, wo), c_last = build_fused_operands(params, (H, W), cin)

    out_flat = pl.pallas_call(
        _encoder_fused_kernel,
        out_shape=jax.ShapeDtypeStruct((n, ho * wo * c_last), jnp.float32),
        grid=(1,),
        in_specs=[_full_block(x_flat)] + [_full_block(a) for a in ops],
        out_specs=pl.BlockSpec((n, ho * wo * c_last), lambda i: (0, 0)),
        compiler_params=pltpu.CompilerParams(
            dimension_semantics=("arbitrary",),
            vmem_limit_bytes=32 * 1024 * 1024),
    )(x_flat, *ops)

    return jnp.transpose(out_flat.reshape(n, ho, wo, c_last), (0, 3, 1, 2))


# ---------------------------------------------------------------------------
# Parameters (same shapes as the PyTorch module) and pure-JAX references.
# ---------------------------------------------------------------------------
def init_encoder_params(key, channels, in_ch=3):
    params = []
    cin = in_ch
    for i, cout in enumerate(channels):
        kw_, kb_ = jax.random.split(jax.random.fold_in(key, i))
        fan_in = cin * KSIZE * KSIZE
        w = jax.random.normal(kw_, (KSIZE, KSIZE, cin, cout), jnp.float32) / jnp.sqrt(fan_in)
        b = jax.random.normal(kb_, (cout,), jnp.float32) * 0.01   # cancels under batch-stat BN
        gamma = jnp.ones((cout,), jnp.float32)                    # BatchNorm2d default init
        beta = jnp.zeros((cout,), jnp.float32)
        params.append((w, b, gamma, beta))
        cin = cout
    return params


def _reference_forward(x_flat, ops):
    """Pure-JAX (XLA) reference of the same fused computation (standard BN form)."""
    n = x_flat.shape[0]
    x = x_flat
    for l in range(len(ops) // 5):
        t, _s, _b, gamma, beta = ops[5 * l:5 * (l + 1)]
        c = gamma.shape[-1]
        y = jnp.dot(x.astype(jnp.bfloat16), t, preferred_element_type=jnp.float32)
        yr = y.reshape(n, -1, c)
        mean = jnp.mean(yr, axis=(0, 1), keepdims=True)
        var = jnp.mean((yr - mean) ** 2, axis=(0, 1), keepdims=True)
        yn = ((yr - mean) * jax.lax.rsqrt(var + BN_EPS) * gamma.reshape(1, 1, c)
              + beta.reshape(1, 1, c))
        x = jnp.where(yn > 0, yn, LEAKY_SLOPE * yn).reshape(n, -1)
    return x


def _check_conv_matrices(params, in_hw, in_ch, key):
    """Sanity check: the Toeplitz construction matches lax.conv (f32, outside Pallas)."""
    H, W = in_hw
    cin = in_ch
    for idx, (w, _b, _g, _be) in enumerate(params):
        w_np = np.asarray(w, dtype=np.float32)
        cout = w_np.shape[-1]
        t_np, ho, wo = _conv_as_matrix(w_np, H, W)
        key, sub = jax.random.split(key)
        xt = jax.random.normal(sub, (2, H, W, cin), jnp.float32)
        ref = jax.lax.conv_general_dilated(
            xt, jnp.asarray(w_np), window_strides=(STRIDE, STRIDE),
            padding=((PAD, PAD), (PAD, PAD)),
            dimension_numbers=("NHWC", "HWIO", "NHWC"),
            precision=jax.lax.Precision.HIGHEST)
        got = jnp.dot(xt.reshape(2, H * W * cin), jnp.asarray(t_np),
                      precision=jax.lax.Precision.HIGHEST).reshape(2, ho, wo, cout)
        assert jnp.allclose(ref, got, atol=1e-3, rtol=1e-3), f"conv matrix mismatch, layer {idx}"
        H, W, cin = ho, wo, cout


if __name__ == "__main__":
    key = jax.random.PRNGKey(0)
    channels = [8, 16, 32, 32, 64]

    kx, kp = jax.random.split(key)
    x = jax.random.normal(kx, (2, 3, 16, 16), jnp.float32)      # NCHW, like the torch module
    params = init_encoder_params(kp, channels, in_ch=3)

    out = jax.block_until_ready(encoder_forward(x, params))

    # Spatial flow for k=3, s=2, p=1: 16 -> 8 -> 4 -> 2 -> 1 -> 1.
    assert out.shape == (2, channels[-1], 1, 1), out.shape
    assert bool(jnp.all(jnp.isfinite(out)))

    # Correctness: (a) Toeplitz construction == lax.conv; (b) fused kernel ==
    # pure-JAX reference of the same math (mean-abs metric is robust to the
    # rare near-degenerate-variance BN channels when batch-stat count m=2).
    _check_conv_matrices(params, (16, 16), 3, jax.random.fold_in(key, 123))
    n, cin, H, W = x.shape
    x_flat = jnp.transpose(x, (0, 2, 3, 1)).reshape(n, H * W * cin)
    ops, (ho, wo), c_last = build_fused_operands(params, (H, W), cin)
    ref = jnp.transpose(_reference_forward(x_flat, ops).reshape(n, ho, wo, c_last),
                        (0, 3, 1, 2))
    mad = float(jnp.mean(jnp.abs(out - ref)))
    assert mad < 5e-2, f"fused kernel vs reference mean|diff| = {mad}"

    print("KERNEL_OK")
</pallas_src>

<mosaic_0001>
module attributes {stable_mosaic.version = 11 : i64} {
  func.func @_encoder_fused_kernel(%arg0: i32, %arg1: memref<2x768xf32, #tpu.memory_space<vmem>>, %arg2: memref<768x512xbf16, #tpu.memory_space<vmem>>, %arg3: memref<512x8xf32, #tpu.memory_space<vmem>>, %arg4: memref<8x512xf32, #tpu.memory_space<vmem>>, %arg5: memref<1x8xf32, #tpu.memory_space<vmem>>, %arg6: memref<1x8xf32, #tpu.memory_space<vmem>>, %arg7: memref<512x256xbf16, #tpu.memory_space<vmem>>, %arg8: memref<256x16xf32, #tpu.memory_space<vmem>>, %arg9: memref<16x256xf32, #tpu.memory_space<vmem>>, %arg10: memref<1x16xf32, #tpu.memory_space<vmem>>, %arg11: memref<1x16xf32, #tpu.memory_space<vmem>>, %arg12: memref<256x128xbf16, #tpu.memory_space<vmem>>, %arg13: memref<128x32xf32, #tpu.memory_space<vmem>>, %arg14: memref<32x128xf32, #tpu.memory_space<vmem>>, %arg15: memref<1x32xf32, #tpu.memory_space<vmem>>, %arg16: memref<1x32xf32, #tpu.memory_space<vmem>>, %arg17: memref<128x32xbf16, #tpu.memory_space<vmem>>, %arg18: memref<32x32xf32, #tpu.memory_space<vmem>>, %arg19: memref<32x32xf32, #tpu.memory_space<vmem>>, %arg20: memref<1x32xf32, #tpu.memory_space<vmem>>, %arg21: memref<1x32xf32, #tpu.memory_space<vmem>>, %arg22: memref<32x64xbf16, #tpu.memory_space<vmem>>, %arg23: memref<64x64xf32, #tpu.memory_space<vmem>>, %arg24: memref<64x64xf32, #tpu.memory_space<vmem>>, %arg25: memref<1x64xf32, #tpu.memory_space<vmem>>, %arg26: memref<1x64xf32, #tpu.memory_space<vmem>>, %arg27: memref<2x64xf32, #tpu.memory_space<vmem>>) attributes {dimension_semantics = [#tpu.dimension_semantics<arbitrary>], iteration_bounds = array<i64: 1>, scalar_prefetch = 0 : i64, scratch_operands = 0 : i64, tpu.core_type = #tpu.core_type<tc>, window_params = [{pipeline_mode = #tpu.pipeline_mode<synchronous>, transform_indices = @transform_0, window_bounds = array<i64: 2, 768>}, {pipeline_mode = #tpu.pipeline_mode<synchronous>, transform_indices = @transform_1, window_bounds = array<i64: 768, 512>}, {pipeline_mode = #tpu.pipeline_mode<synchronous>, transform_indices = @transform_2, window_bounds = array<i64: 512, 8>}, {pipeline_mode = #tpu.pipeline_mode<synchronous>, transform_indices = @transform_3, window_bounds = array<i64: 8, 512>}, {pipeline_mode = #tpu.pipeline_mode<synchronous>, transform_indices = @transform_4, window_bounds = array<i64: 1, 8>}, {pipeline_mode = #tpu.pipeline_mode<synchronous>, transform_indices = @transform_5, window_bounds = array<i64: 1, 8>}, {pipeline_mode = #tpu.pipeline_mode<synchronous>, transform_indices = @transform_6, window_bounds = array<i64: 512, 256>}, {pipeline_mode = #tpu.pipeline_mode<synchronous>, transform_indices = @transform_7, window_bounds = array<i64: 256, 16>}, {pipeline_mode = #tpu.pipeline_mode<synchronous>, transform_indices = @transform_8, window_bounds = array<i64: 16, 256>}, {pipeline_mode = #tpu.pipeline_mode<synchronous>, transform_indices = @transform_9, window_bounds = array<i64: 1, 16>}, {pipeline_mode = #tpu.pipeline_mode<synchronous>, transform_indices = @transform_10, window_bounds = array<i64: 1, 16>}, {pipeline_mode = #tpu.pipeline_mode<synchronous>, transform_indices = @transform_11, window_bounds = array<i64: 256, 128>}, {pipeline_mode = #tpu.pipeline_mode<synchronous>, transform_indices = @transform_12, window_bounds = array<i64: 128, 32>}, {pipeline_mode = #tpu.pipeline_mode<synchronous>, transform_indices = @transform_13, window_bounds = array<i64: 32, 128>}, {pipeline_mode = #tpu.pipeline_mode<synchronous>, transform_indices = @transform_14, window_bounds = array<i64: 1, 32>}, {pipeline_mode = #tpu.pipeline_mode<synchronous>, transform_indices = @transform_15, window_bounds = array<i64: 1, 32>}, {pipeline_mode = #tpu.pipeline_mode<synchronous>, transform_indices = @transform_16, window_bounds = array<i64: 128, 32>}, {pipeline_mode = #tpu.pipeline_mode<synchronous>, transform_indices = @transform_17, window_bounds = array<i64: 32, 32>}, {pipeline_mode = #tpu.pipeline_mode<synchronous>, transform_indices = @transform_18, window_bounds = array<i64: 32, 32>}, {pipeline_mode = #tpu.pipeline_mode<synchronous>, transform_indices = @transform_19, window_bounds = array<i64: 1, 32>}, {pipeline_mode = #tpu.pipeline_mode<synchronous>, transform_indices = @transform_20, window_bounds = array<i64: 1, 32>}, {pipeline_mode = #tpu.pipeline_mode<synchronous>, transform_indices = @transform_21, window_bounds = array<i64: 32, 64>}, {pipeline_mode = #tpu.pipeline_mode<synchronous>, transform_indices = @transform_22, window_bounds = array<i64: 64, 64>}, {pipeline_mode = #tpu.pipeline_mode<synchronous>, transform_indices = @transform_23, window_bounds = array<i64: 64, 64>}, {pipeline_mode = #tpu.pipeline_mode<synchronous>, transform_indices = @transform_24, window_bounds = array<i64: 1, 64>}, {pipeline_mode = #tpu.pipeline_mode<synchronous>, transform_indices = @transform_25, window_bounds = array<i64: 1, 64>}, {pipeline_mode = #tpu.pipeline_mode<synchronous>, transform_indices = @transform_26, window_bounds = array<i64: 2, 64>}]} {
    %c0 = arith.constant 0 : index
    %c0_0 = arith.constant 0 : index
    %0 = vector.load %arg1[%c0, %c0_0] : memref<2x768xf32, #tpu.memory_space<vmem>>, vector<2x768xf32>
    %1 = arith.truncf %0 : vector<2x768xf32> to vector<2x768xbf16>
    %c0_1 = arith.constant 0 : index
    %c0_2 = arith.constant 0 : index
    %2 = vector.load %arg2[%c0_1, %c0_2] : memref<768x512xbf16, #tpu.memory_space<vmem>>, vector<768x512xbf16>
    %cst = arith.constant dense<0.000000e+00> : vector<2x512xf32>
    %3 = tpu.matmul %1, %2, %cst {dimension_numbers = #tpu.dot_dimension_numbers<[1], [0], [0], [1], [0, 0, 1, 1], [], []>} : vector<2x768xbf16>, vector<768x512xbf16>, vector<2x512xf32> -> vector<2x512xf32>
    %c0_3 = arith.constant 0 : index
    %c0_4 = arith.constant 0 : index
    %4 = vector.load %arg3[%c0_3, %c0_4] : memref<512x8xf32, #tpu.memory_space<vmem>>, vector<512x8xf32>
    %c0_5 = arith.constant 0 : index
    %c0_6 = arith.constant 0 : index
    %5 = vector.load %arg4[%c0_5, %c0_6] : memref<8x512xf32, #tpu.memory_space<vmem>>, vector<8x512xf32>
    %cst_7 = arith.constant dense<0.000000e+00> : vector<2x8xf32>
    %6 = tpu.matmul %3, %4, %cst_7 {dimension_numbers = #tpu.dot_dimension_numbers<[1], [0], [0], [1], [0, 0, 1, 1], [], []>} : vector<2x512xf32>, vector<512x8xf32>, vector<2x8xf32> -> vector<2x8xf32>
    %cst_8 = arith.constant dense<0.000000e+00> : vector<8xf32>
    %7 = vector.multi_reduction <add>, %6, %cst_8 [0] : vector<2x8xf32> to vector<8xf32>
    %8 = vector.shape_cast %7 : vector<8xf32> to vector<1x8xf32>
    %cst_9 = arith.constant 7.812500e-03 : f32
    %9 = vector.broadcast %cst_9 : f32 to vector<1x8xf32>
    %10 = arith.mulf %8, %9 : vector<1x8xf32>
    %cst_10 = arith.constant dense<0.000000e+00> : vector<1x512xf32>
    %11 = tpu.matmul %10, %5, %cst_10 {dimension_numbers = #tpu.dot_dimension_numbers<[1], [0], [0], [1], [0, 0, 1, 1], [], []>} : vector<1x8xf32>, vector<8x512xf32>, vector<1x512xf32> -> vector<1x512xf32>
    %12 = vector.broadcast %11 : vector<1x512xf32> to vector<2x512xf32>
    %13 = arith.subf %3, %12 : vector<2x512xf32>
    %14 = arith.mulf %13, %13 : vector<2x512xf32>
    %cst_11 = arith.constant dense<0.000000e+00> : vector<2x8xf32>
    %15 = tpu.matmul %14, %4, %cst_11 {dimension_numbers = #tpu.dot_dimension_numbers<[1], [0], [0], [1], [0, 0, 1, 1], [], []>} : vector<2x512xf32>, vector<512x8xf32>, vector<2x8xf32> -> vector<2x8xf32>
    %cst_12 = arith.constant dense<0.000000e+00> : vector<8xf32>
    %16 = vector.multi_reduction <add>, %15, %cst_12 [0] : vector<2x8xf32> to vector<8xf32>
    %17 = vector.shape_cast %16 : vector<8xf32> to vector<1x8xf32>
    %cst_13 = arith.constant 7.812500e-03 : f32
    %18 = vector.broadcast %cst_13 : f32 to vector<1x8xf32>
    %19 = arith.mulf %17, %18 : vector<1x8xf32>
    %c0_14 = arith.constant 0 : index
    %c0_15 = arith.constant 0 : index
    %20 = vector.load %arg5[%c0_14, %c0_15] : memref<1x8xf32, #tpu.memory_space<vmem>>, vector<1x8xf32>
    %cst_16 = arith.constant 9.99999974E-6 : f32
    %21 = vector.broadcast %cst_16 : f32 to vector<1x8xf32>
    %22 = arith.addf %19, %21 : vector<1x8xf32>
    %23 = math.rsqrt %22 : vector<1x8xf32>
    %24 = arith.mulf %20, %23 : vector<1x8xf32>
    %cst_17 = arith.constant dense<0.000000e+00> : vector<1x512xf32>
    %25 = tpu.matmul %24, %5, %cst_17 {dimension_numbers = #tpu.dot_dimension_numbers<[1], [0], [0], [1], [0, 0, 1, 1], [], []>} : vector<1x8xf32>, vector<8x512xf32>, vector<1x512xf32> -> vector<1x512xf32>
    %26 = vector.broadcast %25 : vector<1x512xf32> to vector<2x512xf32>
    %27 = arith.mulf %13, %26 : vector<2x512xf32>
    %c0_18 = arith.constant 0 : index
    %c0_19 = arith.constant 0 : index
    %28 = vector.load %arg6[%c0_18, %c0_19] : memref<1x8xf32, #tpu.memory_space<vmem>>, vector<1x8xf32>
    %cst_20 = arith.constant dense<0.000000e+00> : vector<1x512xf32>
    %29 = tpu.matmul %28, %5, %cst_20 {dimension_numbers = #tpu.dot_dimension_numbers<[1], [0], [0], [1], [0, 0, 1, 1], [], []>} : vector<1x8xf32>, vector<8x512xf32>, vector<1x512xf32> -> vector<1x512xf32>
    %30 = vector.broadcast %29 : vector<1x512xf32> to vector<2x512xf32>
    %31 = arith.addf %27, %30 : vector<2x512xf32>
    %cst_21 = arith.constant 0.000000e+00 : f32
    %32 = vector.broadcast %cst_21 : f32 to vector<2x512xf32>
    %33 = arith.cmpf ogt, %31, %32 : vector<2x512xf32>
    %cst_22 = arith.constant 0.00999999977 : f32
    %34 = vector.broadcast %cst_22 : f32 to vector<2x512xf32>
    %35 = arith.mulf %34, %31 : vector<2x512xf32>
    %36 = arith.select %33, %31, %35 : vector<2x512xi1>, vector<2x512xf32>
    %37 = arith.truncf %36 : vector<2x512xf32> to vector<2x512xbf16>
    %c0_23 = arith.constant 0 : index
    %c0_24 = arith.constant 0 : index
    %38 = vector.load %arg7[%c0_23, %c0_24] : memref<512x256xbf16, #tpu.memory_space<vmem>>, vector<512x256xbf16>
    %cst_25 = arith.constant dense<0.000000e+00> : vector<2x256xf32>
    %39 = tpu.matmul %37, %38, %cst_25 {dimension_numbers = #tpu.dot_dimension_numbers<[1], [0], [0], [1], [0, 0, 1, 1], [], []>} : vector<2x512xbf16>, vector<512x256xbf16>, vector<2x256xf32> -> vector<2x256xf32>
    %c0_26 = arith.constant 0 : index
    %c0_27 = arith.constant 0 : index
    %40 = vector.load %arg8[%c0_26, %c0_27] : memref<256x16xf32, #tpu.memory_space<vmem>>, vector<256x16xf32>
    %c0_28 = arith.constant 0 : index
    %c0_29 = arith.constant 0 : index
    %41 = vector.load %arg9[%c0_28, %c0_29] : memref<16x256xf32, #tpu.memory_space<vmem>>, vector<16x256xf32>
    %cst_30 = arith.constant dense<0.000000e+00> : vector<2x16xf32>
    %42 = tpu.matmul %39, %40, %cst_30 {dimension_numbers = #tpu.dot_dimension_numbers<[1], [0], [0], [1], [0, 0, 1, 1], [], []>} : vector<2x256xf32>, vector<256x16xf32>, vector<2x16xf32> -> vector<2x16xf32>
    %cst_31 = arith.constant dense<0.000000e+00> : vector<16xf32>
    %43 = vector.multi_reduction <add>, %42, %cst_31 [0] : vector<2x16xf32> to vector<16xf32>
    %44 = vector.shape_cast %43 : vector<16xf32> to vector<1x16xf32>
    %cst_32 = arith.constant 3.125000e-02 : f32
    %45 = vector.broadcast %cst_32 : f32 to vector<1x16xf32>
    %46 = arith.mulf %44, %45 : vector<1x16xf32>
    %cst_33 = arith.constant dense<0.000000e+00> : vector<1x256xf32>
    %47 = tpu.matmul %46, %41, %cst_33 {dimension_numbers = #tpu.dot_dimension_numbers<[1], [0], [0], [1], [0, 0, 1, 1], [], []>} : vector<1x16xf32>, vector<16x256xf32>, vector<1x256xf32> -> vector<1x256xf32>
    %48 = vector.broadcast %47 : vector<1x256xf32> to vector<2x256xf32>
    %49 = arith.subf %39, %48 : vector<2x256xf32>
    %50 = arith.mulf %49, %49 : vector<2x256xf32>
    %cst_34 = arith.constant dense<0.000000e+00> : vector<2x16xf32>
    %51 = tpu.matmul %50, %40, %cst_34 {dimension_numbers = #tpu.dot_dimension_numbers<[1], [0], [0], [1], [0, 0, 1, 1], [], []>} : vector<2x256xf32>, vector<256x16xf32>, vector<2x16xf32> -> vector<2x16xf32>
    %cst_35 = arith.constant dense<0.000000e+00> : vector<16xf32>
    %52 = vector.multi_reduction <add>, %51, %cst_35 [0] : vector<2x16xf32> to vector<16xf32>
    %53 = vector.shape_cast %52 : vector<16xf32> to vector<1x16xf32>
    %cst_36 = arith.constant 3.125000e-02 : f32
    %54 = vector.broadcast %cst_36 : f32 to vector<1x16xf32>
    %55 = arith.mulf %53, %54 : vector<1x16xf32>
    %c0_37 = arith.constant 0 : index
    %c0_38 = arith.constant 0 : index
    %56 = vector.load %arg10[%c0_37, %c0_38] : memref<1x16xf32, #tpu.memory_space<vmem>>, vector<1x16xf32>
    %cst_39 = arith.constant 9.99999974E-6 : f32
    %57 = vector.broadcast %cst_39 : f32 to vector<1x16xf32>
    %58 = arith.addf %55, %57 : vector<1x16xf32>
    %59 = math.rsqrt %58 : vector<1x16xf32>
    %60 = arith.mulf %56, %59 : vector<1x16xf32>
    %cst_40 = arith.constant dense<0.000000e+00> : vector<1x256xf32>
    %61 = tpu.matmul %60, %41, %cst_40 {dimension_numbers = #tpu.dot_dimension_numbers<[1], [0], [0], [1], [0, 0, 1, 1], [], []>} : vector<1x16xf32>, vector<16x256xf32>, vector<1x256xf32> -> vector<1x256xf32>
    %62 = vector.broadcast %61 : vector<1x256xf32> to vector<2x256xf32>
    %63 = arith.mulf %49, %62 : vector<2x256xf32>
    %c0_41 = arith.constant 0 : index
    %c0_42 = arith.constant 0 : index
    %64 = vector.load %arg11[%c0_41, %c0_42] : memref<1x16xf32, #tpu.memory_space<vmem>>, vector<1x16xf32>
    %cst_43 = arith.constant dense<0.000000e+00> : vector<1x256xf32>
    %65 = tpu.matmul %64, %41, %cst_43 {dimension_numbers = #tpu.dot_dimension_numbers<[1], [0], [0], [1], [0, 0, 1, 1], [], []>} : vector<1x16xf32>, vector<16x256xf32>, vector<1x256xf32> -> vector<1x256xf32>
    %66 = vector.broadcast %65 : vector<1x256xf32> to vector<2x256xf32>
    %67 = arith.addf %63, %66 : vector<2x256xf32>
    %cst_44 = arith.constant 0.000000e+00 : f32
    %68 = vector.broadcast %cst_44 : f32 to vector<2x256xf32>
    %69 = arith.cmpf ogt, %67, %68 : vector<2x256xf32>
    %cst_45 = arith.constant 0.00999999977 : f32
    %70 = vector.broadcast %cst_45 : f32 to vector<2x256xf32>
    %71 = arith.mulf %70, %67 : vector<2x256xf32>
    %72 = arith.select %69, %67, %71 : vector<2x256xi1>, vector<2x256xf32>
    %73 = arith.truncf %72 : vector<2x256xf32> to vector<2x256xbf16>
    %c0_46 = arith.constant 0 : index
    %c0_47 = arith.constant 0 : index
    %74 = vector.load %arg12[%c0_46, %c0_47] : memref<256x128xbf16, #tpu.memory_space<vmem>>, vector<256x128xbf16>
    %cst_48 = arith.constant dense<0.000000e+00> : vector<2x128xf32>
    %75 = tpu.matmul %73, %74, %cst_48 {dimension_numbers = #tpu.dot_dimension_numbers<[1], [0], [0], [1], [0, 0, 1, 1], [], []>} : vector<2x256xbf16>, vector<256x128xbf16>, vector<2x128xf32> -> vector<2x128xf32>
    %c0_49 = arith.constant 0 : index
    %c0_50 = arith.constant 0 : index
    %76 = vector.load %arg13[%c0_49, %c0_50] : memref<128x32xf32, #tpu.memory_space<vmem>>, vector<128x32xf32>
    %c0_51 = arith.constant 0 : index
    %c0_52 = arith.constant 0 : index
    %77 = vector.load %arg14[%c0_51, %c0_52] : memref<32x128xf32, #tpu.memory_space<vmem>>, vector<32x128xf32>
    %cst_53 = arith.constant dense<0.000000e+00> : vector<2x32xf32>
    %78 = tpu.matmul %75, %76, %cst_53 {dimension_numbers = #tpu.dot_dimension_numbers<[1], [0], [0], [1], [0, 0, 1, 1], [], []>} : vector<2x128xf32>, vector<128x32xf32>, vector<2x32xf32> -> vector<2x32xf32>
    %cst_54 = arith.constant dense<0.000000e+00> : vector<32xf32>
    %79 = vector.multi_reduction <add>, %78, %cst_54 [0] : vector<2x32xf32> to vector<32xf32>
    %80 = vector.shape_cast %79 : vector<32xf32> to vector<1x32xf32>
    %cst_55 = arith.constant 1.250000e-01 : f32
    %81 = vector.broadcast %cst_55 : f32 to vector<1x32xf32>
    %82 = arith.mulf %80, %81 : vector<1x32xf32>
    %cst_56 = arith.constant dense<0.000000e+00> : vector<1x128xf32>
    %83 = tpu.matmul %82, %77, %cst_56 {dimension_numbers = #tpu.dot_dimension_numbers<[1], [0], [0], [1], [0, 0, 1, 1], [], []>} : vector<1x32xf32>, vector<32x128xf32>, vector<1x128xf32> -> vector<1x128xf32>
    %84 = vector.broadcast %83 : vector<1x128xf32> to vector<2x128xf32>
    %85 = arith.subf %75, %84 : vector<2x128xf32>
    %86 = arith.mulf %85, %85 : vector<2x128xf32>
    %cst_57 = arith.constant dense<0.000000e+00> : vector<2x32xf32>
    %87 = tpu.matmul %86, %76, %cst_57 {dimension_numbers = #tpu.dot_dimension_numbers<[1], [0], [0], [1], [0, 0, 1, 1], [], []>} : vector<2x128xf32>, vector<128x32xf32>, vector<2x32xf32> -> vector<2x32xf32>
    %cst_58 = arith.constant dense<0.000000e+00> : vector<32xf32>
    %88 = vector.multi_reduction <add>, %87, %cst_58 [0] : vector<2x32xf32> to vector<32xf32>
    %89 = vector.shape_cast %88 : vector<32xf32> to vector<1x32xf32>
    %cst_59 = arith.constant 1.250000e-01 : f32
    %90 = vector.broadcast %cst_59 : f32 to vector<1x32xf32>
    %91 = arith.mulf %89, %90 : vector<1x32xf32>
    %c0_60 = arith.constant 0 : index
    %c0_61 = arith.constant 0 : index
    %92 = vector.load %arg15[%c0_60, %c0_61] : memref<1x32xf32, #tpu.memory_space<vmem>>, vector<1x32xf32>
    %cst_62 = arith.constant 9.99999974E-6 : f32
    %93 = vector.broadcast %cst_62 : f32 to vector<1x32xf32>
    %94 = arith.addf %91, %93 : vector<1x32xf32>
    %95 = math.rsqrt %94 : vector<1x32xf32>
    %96 = arith.mulf %92, %95 : vector<1x32xf32>
    %cst_63 = arith.constant dense<0.000000e+00> : vector<1x128xf32>
    %97 = tpu.matmul %96, %77, %cst_63 {dimension_numbers = #tpu.dot_dimension_numbers<[1], [0], [0], [1], [0, 0, 1, 1], [], []>} : vector<1x32xf32>, vector<32x128xf32>, vector<1x128xf32> -> vector<1x128xf32>
    %98 = vector.broadcast %97 : vector<1x128xf32> to vector<2x128xf32>
    %99 = arith.mulf %85, %98 : vector<2x128xf32>
    %c0_64 = arith.constant 0 : index
    %c0_65 = arith.constant 0 : index
    %100 = vector.load %arg16[%c0_64, %c0_65] : memref<1x32xf32, #tpu.memory_space<vmem>>, vector<1x32xf32>
    %cst_66 = arith.constant dense<0.000000e+00> : vector<1x128xf32>
    %101 = tpu.matmul %100, %77, %cst_66 {dimension_numbers = #tpu.dot_dimension_numbers<[1], [0], [0], [1], [0, 0, 1, 1], [], []>} : vector<1x32xf32>, vector<32x128xf32>, vector<1x128xf32> -> vector<1x128xf32>
    %102 = vector.broadcast %101 : vector<1x128xf32> to vector<2x128xf32>
    %103 = arith.addf %99, %102 : vector<2x128xf32>
    %cst_67 = arith.constant 0.000000e+00 : f32
    %104 = vector.broadcast %cst_67 : f32 to vector<2x128xf32>
    %105 = arith.cmpf ogt, %103, %104 : vector<2x128xf32>
    %cst_68 = arith.constant 0.00999999977 : f32
    %106 = vector.broadcast %cst_68 : f32 to vector<2x128xf32>
    %107 = arith.mulf %106, %103 : vector<2x128xf32>
    %108 = arith.select %105, %103, %107 : vector<2x128xi1>, vector<2x128xf32>
    %109 = arith.truncf %108 : vector<2x128xf32> to vector<2x128xbf16>
    %c0_69 = arith.constant 0 : index
    %c0_70 = arith.constant 0 : index
    %110 = vector.load %arg17[%c0_69, %c0_70] : memref<128x32xbf16, #tpu.memory_space<vmem>>, vector<128x32xbf16>
    %cst_71 = arith.constant dense<0.000000e+00> : vector<2x32xf32>
    %111 = tpu.matmul %109, %110, %cst_71 {dimension_numbers = #tpu.dot_dimension_numbers<[1], [0], [0], [1], [0, 0, 1, 1], [], []>} : vector<2x128xbf16>, vector<128x32xbf16>, vector<2x32xf32> -> vector<2x32xf32>
    %c0_72 = arith.constant 0 : index
    %c0_73 = arith.constant 0 : index
    %112 = vector.load %arg18[%c0_72, %c0_73] : memref<32x32xf32, #tpu.memory_space<vmem>>, vector<32x32xf32>
    %c0_74 = arith.constant 0 : index
    %c0_75 = arith.constant 0 : index
    %113 = vector.load %arg19[%c0_74, %c0_75] : memref<32x32xf32, #tpu.memory_space<vmem>>, vector<32x32xf32>
    %cst_76 = arith.constant dense<0.000000e+00> : vector<2x32xf32>
    %114 = tpu.matmul %111, %112, %cst_76 {dimension_numbers = #tpu.dot_dimension_numbers<[1], [0], [0], [1], [0, 0, 1, 1], [], []>} : vector<2x32xf32>, vector<32x32xf32>, vector<2x32xf32> -> vector<2x32xf32>
    %cst_77 = arith.constant dense<0.000000e+00> : vector<32xf32>
    %115 = vector.multi_reduction <add>, %114, %cst_77 [0] : vector<2x32xf32> to vector<32xf32>
    %116 = vector.shape_cast %115 : vector<32xf32> to vector<1x32xf32>
    %cst_78 = arith.constant 5.000000e-01 : f32
    %117 = vector.broadcast %cst_78 : f32 to vector<1x32xf32>
    %118 = arith.mulf %116, %117 : vector<1x32xf32>
    %cst_79 = arith.constant dense<0.000000e+00> : vector<1x32xf32>
    %119 = tpu.matmul %118, %113, %cst_79 {dimension_numbers = #tpu.dot_dimension_numbers<[1], [0], [0], [1], [0, 0, 1, 1], [], []>} : vector<1x32xf32>, vector<32x32xf32>, vector<1x32xf32> -> vector<1x32xf32>
    %120 = vector.broadcast %119 : vector<1x32xf32> to vector<2x32xf32>
    %121 = arith.subf %111, %120 : vector<2x32xf32>
    %122 = arith.mulf %121, %121 : vector<2x32xf32>
    %cst_80 = arith.constant dense<0.000000e+00> : vector<2x32xf32>
    %123 = tpu.matmul %122, %112, %cst_80 {dimension_numbers = #tpu.dot_dimension_numbers<[1], [0], [0], [1], [0, 0, 1, 1], [], []>} : vector<2x32xf32>, vector<32x32xf32>, vector<2x32xf32> -> vector<2x32xf32>
    %cst_81 = arith.constant dense<0.000000e+00> : vector<32xf32>
    %124 = vector.multi_reduction <add>, %123, %cst_81 [0] : vector<2x32xf32> to vector<32xf32>
    %125 = vector.shape_cast %124 : vector<32xf32> to vector<1x32xf32>
    %cst_82 = arith.constant 5.000000e-01 : f32
    %126 = vector.broadcast %cst_82 : f32 to vector<1x32xf32>
    %127 = arith.mulf %125, %126 : vector<1x32xf32>
    %c0_83 = arith.constant 0 : index
    %c0_84 = arith.constant 0 : index
    %128 = vector.load %arg20[%c0_83, %c0_84] : memref<1x32xf32, #tpu.memory_space<vmem>>, vector<1x32xf32>
    %cst_85 = arith.constant 9.99999974E-6 : f32
    %129 = vector.broadcast %cst_85 : f32 to vector<1x32xf32>
    %130 = arith.addf %127, %129 : vector<1x32xf32>
    %131 = math.rsqrt %130 : vector<1x32xf32>
    %132 = arith.mulf %128, %131 : vector<1x32xf32>
    %cst_86 = arith.constant dense<0.000000e+00> : vector<1x32xf32>
    %133 = tpu.matmul %132, %113, %cst_86 {dimension_numbers = #tpu.dot_dimension_numbers<[1], [0], [0], [1], [0, 0, 1, 1], [], []>} : vector<1x32xf32>, vector<32x32xf32>, vector<1x32xf32> -> vector<1x32xf32>
    %134 = vector.broadcast %133 : vector<1x32xf32> to vector<2x32xf32>
    %135 = arith.mulf %121, %134 : vector<2x32xf32>
    %c0_87 = arith.constant 0 : index
    %c0_88 = arith.constant 0 : index
    %136 = vector.load %arg21[%c0_87, %c0_88] : memref<1x32xf32, #tpu.memory_space<vmem>>, vector<1x32xf32>
    %cst_89 = arith.constant dense<0.000000e+00> : vector<1x32xf32>
    %137 = tpu.matmul %136, %113, %cst_89 {dimension_numbers = #tpu.dot_dimension_numbers<[1], [0], [0], [1], [0, 0, 1, 1], [], []>} : vector<1x32xf32>, vector<32x32xf32>, vector<1x32xf32> -> vector<1x32xf32>
    %138 = vector.broadcast %137 : vector<1x32xf32> to vector<2x32xf32>
    %139 = arith.addf %135, %138 : vector<2x32xf32>
    %cst_90 = arith.constant 0.000000e+00 : f32
    %140 = vector.broadcast %cst_90 : f32 to vector<2x32xf32>
    %141 = arith.cmpf ogt, %139, %140 : vector<2x32xf32>
    %cst_91 = arith.constant 0.00999999977 : f32
    %142 = vector.broadcast %cst_91 : f32 to vector<2x32xf32>
    %143 = arith.mulf %142, %139 : vector<2x32xf32>
    %144 = arith.select %141, %139, %143 : vector<2x32xi1>, vector<2x32xf32>
    %145 = arith.truncf %144 : vector<2x32xf32> to vector<2x32xbf16>
    %c0_92 = arith.constant 0 : index
    %c0_93 = arith.constant 0 : index
    %146 = vector.load %arg22[%c0_92, %c0_93] : memref<32x64xbf16, #tpu.memory_space<vmem>>, vector<32x64xbf16>
    %cst_94 = arith.constant dense<0.000000e+00> : vector<2x64xf32>
    %147 = tpu.matmul %145, %146, %cst_94 {dimension_numbers = #tpu.dot_dimension_numbers<[1], [0], [0], [1], [0, 0, 1, 1], [], []>} : vector<2x32xbf16>, vector<32x64xbf16>, vector<2x64xf32> -> vector<2x64xf32>
    %c0_95 = arith.constant 0 : index
    %c0_96 = arith.constant 0 : index
    %148 = vector.load %arg23[%c0_95, %c0_96] : memref<64x64xf32, #tpu.memory_space<vmem>>, vector<64x64xf32>
    %c0_97 = arith.constant 0 : index
    %c0_98 = arith.constant 0 : index
    %149 = vector.load %arg24[%c0_97, %c0_98] : memref<64x64xf32, #tpu.memory_space<vmem>>, vector<64x64xf32>
    %cst_99 = arith.constant dense<0.000000e+00> : vector<2x64xf32>
    %150 = tpu.matmul %147, %148, %cst_99 {dimension_numbers = #tpu.dot_dimension_numbers<[1], [0], [0], [1], [0, 0, 1, 1], [], []>} : vector<2x64xf32>, vector<64x64xf32>, vector<2x64xf32> -> vector<2x64xf32>
    %cst_100 = arith.constant dense<0.000000e+00> : vector<64xf32>
    %151 = vector.multi_reduction <add>, %150, %cst_100 [0] : vector<2x64xf32> to vector<64xf32>
    %152 = vector.shape_cast %151 : vector<64xf32> to vector<1x64xf32>
    %cst_101 = arith.constant 5.000000e-01 : f32
    %153 = vector.broadcast %cst_101 : f32 to vector<1x64xf32>
    %154 = arith.mulf %152, %153 : vector<1x64xf32>
    %cst_102 = arith.constant dense<0.000000e+00> : vector<1x64xf32>
    %155 = tpu.matmul %154, %149, %cst_102 {dimension_numbers = #tpu.dot_dimension_numbers<[1], [0], [0], [1], [0, 0, 1, 1], [], []>} : vector<1x64xf32>, vector<64x64xf32>, vector<1x64xf32> -> vector<1x64xf32>
    %156 = vector.broadcast %155 : vector<1x64xf32> to vector<2x64xf32>
    %157 = arith.subf %147, %156 : vector<2x64xf32>
    %158 = arith.mulf %157, %157 : vector<2x64xf32>
    %cst_103 = arith.constant dense<0.000000e+00> : vector<2x64xf32>
    %159 = tpu.matmul %158, %148, %cst_103 {dimension_numbers = #tpu.dot_dimension_numbers<[1], [0], [0], [1], [0, 0, 1, 1], [], []>} : vector<2x64xf32>, vector<64x64xf32>, vector<2x64xf32> -> vector<2x64xf32>
    %cst_104 = arith.constant dense<0.000000e+00> : vector<64xf32>
    %160 = vector.multi_reduction <add>, %159, %cst_104 [0] : vector<2x64xf32> to vector<64xf32>
    %161 = vector.shape_cast %160 : vector<64xf32> to vector<1x64xf32>
    %cst_105 = arith.constant 5.000000e-01 : f32
    %162 = vector.broadcast %cst_105 : f32 to vector<1x64xf32>
    %163 = arith.mulf %161, %162 : vector<1x64xf32>
    %c0_106 = arith.constant 0 : index
    %c0_107 = arith.constant 0 : index
    %164 = vector.load %arg25[%c0_106, %c0_107] : memref<1x64xf32, #tpu.memory_space<vmem>>, vector<1x64xf32>
    %cst_108 = arith.constant 9.99999974E-6 : f32
    %165 = vector.broadcast %cst_108 : f32 to vector<1x64xf32>
    %166 = arith.addf %163, %165 : vector<1x64xf32>
    %167 = math.rsqrt %166 : vector<1x64xf32>
    %168 = arith.mulf %164, %167 : vector<1x64xf32>
    %cst_109 = arith.constant dense<0.000000e+00> : vector<1x64xf32>
    %169 = tpu.matmul %168, %149, %cst_109 {dimension_numbers = #tpu.dot_dimension_numbers<[1], [0], [0], [1], [0, 0, 1, 1], [], []>} : vector<1x64xf32>, vector<64x64xf32>, vector<1x64xf32> -> vector<1x64xf32>
    %170 = vector.broadcast %169 : vector<1x64xf32> to vector<2x64xf32>
    %171 = arith.mulf %157, %170 : vector<2x64xf32>
    %c0_110 = arith.constant 0 : index
    %c0_111 = arith.constant 0 : index
    %172 = vector.load %arg26[%c0_110, %c0_111] : memref<1x64xf32, #tpu.memory_space<vmem>>, vector<1x64xf32>
    %cst_112 = arith.constant dense<0.000000e+00> : vector<1x64xf32>
    %173 = tpu.matmul %172, %149, %cst_112 {dimension_numbers = #tpu.dot_dimension_numbers<[1], [0], [0], [1], [0, 0, 1, 1], [], []>} : vector<1x64xf32>, vector<64x64xf32>, vector<1x64xf32> -> vector<1x64xf32>
    %174 = vector.broadcast %173 : vector<1x64xf32> to vector<2x64xf32>
    %175 = arith.addf %171, %174 : vector<2x64xf32>
    %cst_113 = arith.constant 0.000000e+00 : f32
    %176 = vector.broadcast %cst_113 : f32 to vector<2x64xf32>
    %177 = arith.cmpf ogt, %175, %176 : vector<2x64xf32>
    %cst_114 = arith.constant 0.00999999977 : f32
    %178 = vector.broadcast %cst_114 : f32 to vector<2x64xf32>
    %179 = arith.mulf %178, %175 : vector<2x64xf32>
    %180 = arith.select %177, %175, %179 : vector<2x64xi1>, vector<2x64xf32>
    %c0_115 = arith.constant 0 : index
    %c0_116 = arith.constant 0 : index
    %181 = vector.load %arg27[%c0_115, %c0_116] : memref<2x64xf32, #tpu.memory_space<vmem>>, vector<2x64xf32>
    tpu.vector_store %arg27[%c0_115, %c0_116], %180 {strides = array<i32>} : memref<2x64xf32, #tpu.memory_space<vmem>>, vector<2x64xf32>,
    return
  }
  func.func @transform_0(%arg0: i32) -> (i32, i32) {
    %c0_i32 = arith.constant 0 : i32
    %c0_i32_0 = arith.constant 0 : i32
    %c0_i32_1 = arith.constant 0 : i32
    return %c0_i32, %c0_i32_0 : i32, i32
  }
  func.func @transform_1(%arg0: i32) -> (i32, i32) {
    %c0_i32 = arith.constant 0 : i32
    %c0_i32_0 = arith.constant 0 : i32
    %c0_i32_1 = arith.constant 0 : i32
    return %c0_i32, %c0_i32_0 : i32, i32
  }
  func.func @transform_2(%arg0: i32) -> (i32, i32) {
    %c0_i32 = arith.constant 0 : i32
    %c0_i32_0 = arith.constant 0 : i32
    %c0_i32_1 = arith.constant 0 : i32
    return %c0_i32, %c0_i32_0 : i32, i32
  }
  func.func @transform_3(%arg0: i32) -> (i32, i32) {
    %c0_i32 = arith.constant 0 : i32
    %c0_i32_0 = arith.constant 0 : i32
    %c0_i32_1 = arith.constant 0 : i32
    return %c0_i32, %c0_i32_0 : i32, i32
  }
  func.func @transform_4(%arg0: i32) -> (i32, i32) {
    %c0_i32 = arith.constant 0 : i32
    %c0_i32_0 = arith.constant 0 : i32
    %c0_i32_1 = arith.constant 0 : i32
    return %c0_i32, %c0_i32_0 : i32, i32
  }
  func.func @transform_5(%arg0: i32) -> (i32, i32) {
    %c0_i32 = arith.constant 0 : i32
    %c0_i32_0 = arith.constant 0 : i32
    %c0_i32_1 = arith.constant 0 : i32
    return %c0_i32, %c0_i32_0 : i32, i32
  }
  func.func @transform_6(%arg0: i32) -> (i32, i32) {
    %c0_i32 = arith.constant 0 : i32
    %c0_i32_0 = arith.constant 0 : i32
    %c0_i32_1 = arith.constant 0 : i32
    return %c0_i32, %c0_i32_0 : i32, i32
  }
  func.func @transform_7(%arg0: i32) -> (i32, i32) {
    %c0_i32 = arith.constant 0 : i32
    %c0_i32_0 = arith.constant 0 : i32
    %c0_i32_1 = arith.constant 0 : i32
    return %c0_i32, %c0_i32_0 : i32, i32
  }
  func.func @transform_8(%arg0: i32) -> (i32, i32) {
    %c0_i32 = arith.constant 0 : i32
    %c0_i32_0 = arith.constant 0 : i32
    %c0_i32_1 = arith.constant 0 : i32
    return %c0_i32, %c0_i32_0 : i32, i32
  }
  func.func @transform_9(%arg0: i32) -> (i32, i32) {
    %c0_i32 = arith.constant 0 : i32
    %c0_i32_0 = arith.constant 0 : i32
    %c0_i32_1 = arith.constant 0 : i32
    return %c0_i32, %c0_i32_0 : i32, i32
  }
  func.func @transform_10(%arg0: i32) -> (i32, i32) {
    %c0_i32 = arith.constant 0 : i32
    %c0_i32_0 = arith.constant 0 : i32
    %c0_i32_1 = arith.constant 0 : i32
    return %c0_i32, %c0_i32_0 : i32, i32
  }
  func.func @transform_11(%arg0: i32) -> (i32, i32) {
    %c0_i32 = arith.constant 0 : i32
    %c0_i32_0 = arith.constant 0 : i32
    %c0_i32_1 = arith.constant 0 : i32
    return %c0_i32, %c0_i32_0 : i32, i32
  }
  func.func @transform_12(%arg0: i32) -> (i32, i32) {
    %c0_i32 = arith.constant 0 : i32
    %c0_i32_0 = arith.constant 0 : i32
    %c0_i32_1 = arith.constant 0 : i32
    return %c0_i32, %c0_i32_0 : i32, i32
  }
  func.func @transform_13(%arg0: i32) -> (i32, i32) {
    %c0_i32 = arith.constant 0 : i32
    %c0_i32_0 = arith.constant 0 : i32
    %c0_i32_1 = arith.constant 0 : i32
    return %c0_i32, %c0_i32_0 : i32, i32
  }
  func.func @transform_14(%arg0: i32) -> (i32, i32) {
    %c0_i32 = arith.constant 0 : i32
    %c0_i32_0 = arith.constant 0 : i32
    %c0_i32_1 = arith.constant 0 : i32
    return %c0_i32, %c0_i32_0 : i32, i32
  }
  func.func @transform_15(%arg0: i32) -> (i32, i32) {
    %c0_i32 = arith.constant 0 : i32
    %c0_i32_0 = arith.constant 0 : i32
    %c0_i32_1 = arith.constant 0 : i32
    return %c0_i32, %c0_i32_0 : i32, i32
  }
  func.func @transform_16(%arg0: i32) -> (i32, i32) {
    %c0_i32 = arith.constant 0 : i32
    %c0_i32_0 = arith.constant 0 : i32
    %c0_i32_1 = arith.constant 0 : i32
    return %c0_i32, %c0_i32_0 : i32, i32
  }
  func.func @transform_17(%arg0: i32) -> (i32, i32) {
    %c0_i32 = arith.constant 0 : i32
    %c0_i32_0 = arith.constant 0 : i32
    %c0_i32_1 = arith.constant 0 : i32
    return %c0_i32, %c0_i32_0 : i32, i32
  }
  func.func @transform_18(%arg0: i32) -> (i32, i32) {
    %c0_i32 = arith.constant 0 : i32
    %c0_i32_0 = arith.constant 0 : i32
    %c0_i32_1 = arith.constant 0 : i32
    return %c0_i32, %c0_i32_0 : i32, i32
  }
  func.func @transform_19(%arg0: i32) -> (i32, i32) {
    %c0_i32 = arith.constant 0 : i32
    %c0_i32_0 = arith.constant 0 : i32
    %c0_i32_1 = arith.constant 0 : i32
    return %c0_i32, %c0_i32_0 : i32, i32
  }
  func.func @transform_20(%arg0: i32) -> (i32, i32) {
    %c0_i32 = arith.constant 0 : i32
    %c0_i32_0 = arith.constant 0 : i32
    %c0_i32_1 = arith.constant 0 : i32
    return %c0_i32, %c0_i32_0 : i32, i32
  }
  func.func @transform_21(%arg0: i32) -> (i32, i32) {
    %c0_i32 = arith.constant 0 : i32
    %c0_i32_0 = arith.constant 0 : i32
    %c0_i32_1 = arith.constant 0 : i32
    return %c0_i32, %c0_i32_0 : i32, i32
  }
  func.func @transform_22(%arg0: i32) -> (i32, i32) {
    %c0_i32 = arith.constant 0 : i32
    %c0_i32_0 = arith.constant 0 : i32
    %c0_i32_1 = arith.constant 0 : i32
    return %c0_i32, %c0_i32_0 : i32, i32
  }
  func.func @transform_23(%arg0: i32) -> (i32, i32) {
    %c0_i32 = arith.constant 0 : i32
    %c0_i32_0 = arith.constant 0 : i32
    %c0_i32_1 = arith.constant 0 : i32
    return %c0_i32, %c0_i32_0 : i32, i32
  }
  func.func @transform_24(%arg0: i32) -> (i32, i32) {
    %c0_i32 = arith.constant 0 : i32
    %c0_i32_0 = arith.constant 0 : i32
    %c0_i32_1 = arith.constant 0 : i32
    return %c0_i32, %c0_i32_0 : i32, i32
  }
  func.func @transform_25(%arg0: i32) -> (i32, i32) {
    %c0_i32 = arith.constant 0 : i32
    %c0_i32_0 = arith.constant 0 : i32
    %c0_i32_1 = arith.constant 0 : i32
    return %c0_i32, %c0_i32_0 : i32, i32
  }
  func.func @transform_26(%arg0: i32) -> (i32, i32) {
    %c0_i32 = arith.constant 0 : i32
    %c0_i32_0 = arith.constant 0 : i32
    %c0_i32_1 = arith.constant 0 : i32
    return %c0_i32, %c0_i32_0 : i32, i32
  }
}

</mosaic_0001>

<bundles_post_ra>
// kernel: tpu_custom_call.1
= control target key start
LH: loop header
LB: loop body
LE: loop exit
PB: predicated region body
PF: predicated region fallthrough
CT: control target
= control target key end

     0   :  { %s8139_s0 = inlined_call_operand.vmem [shape: f32[2,768], index: 0, kind: input, shape index: {}]   ;;  %s8140_s1 = inlined_call_operand.hbm [shape: bf16[768,512], index: 1, kind: input, shape index: {}]   ;;  %s8141_s2 = inlined_call_operand.vmem [shape: f32[512,8], index: 2, kind: input, shape index: {}]   ;;  %s8142_s3 = inlined_call_operand.vmem [shape: f32[8,512], index: 3, kind: input, shape index: {}]   ;;  %s8143_s4 = inlined_call_operand.vmem [shape: f32[1,8], index: 4, kind: input, shape index: {}]   ;;  %s8144_s5 = inlined_call_operand.vmem [shape: f32[1,8], index: 5, kind: input, shape index: {}]   ;;  %s8145_s6 = inlined_call_operand.vmem [shape: bf16[512,256], index: 6, kind: input, shape index: {}]   ;;  %s8146_s7 = inlined_call_operand.vmem [shape: f32[256,16], index: 7, kind: input, shape index: {}]   ;;  %s8147_s8 = inlined_call_operand.vmem [shape: f32[16,256], index: 8, kind: input, shape index: {}]   ;;  %s8148_s9 = inlined_call_operand.vmem [shape: f32[1,16], index: 9, kind: input, shape index: {}]   ;;  %s8149_s10 = inlined_call_operand.vmem [shape: f32[1,16], index: 10, kind: input, shape index: {}]   ;;  %s8150_s11 = inlined_call_operand.vmem [shape: bf16[256,128], index: 11, kind: input, shape index: {}]   ;;  %s8151_s12 = inlined_call_operand.vmem [shape: f32[128,32], index: 12, kind: input, shape index: {}]   ;;  %s8152_s13 = inlined_call_operand.vmem [shape: f32[32,128], index: 13, kind: input, shape index: {}]   ;;  %s8153_s14 = inlined_call_operand.vmem [shape: f32[1,32], index: 14, kind: input, shape index: {}]   ;;  %s8154_s15 = inlined_call_operand.vmem [shape: f32[1,32], index: 15, kind: input, shape index: {}]   ;;  %s8155_s16 = inlined_call_operand.vmem [shape: bf16[128,32], index: 16, kind: input, shape index: {}]   ;;  %s8156_s17 = inlined_call_operand.vmem [shape: f32[32,32], index: 17, kind: input, shape index: {}]   ;;  %s8157_s18 = inlined_call_operand.vmem [shape: f32[32,32], index: 18, kind: input, shape index: {}]   ;;  %s8158_s19 = inlined_call_operand.vmem [shape: f32[1,32], index: 19, kind: input, shape index: {}]   ;;  %s8159_s20 = inlined_call_operand.vmem [shape: f32[1,32], index: 20, kind: input, shape index: {}]   ;;  %s8160_s21 = inlined_call_operand.vmem [shape: bf16[32,64], index: 21, kind: input, shape index: {}]   ;;  %s8161_s22 = inlined_call_operand.vmem [shape: f32[64,64], index: 22, kind: input, shape index: {}]   ;;  %s8162_s23 = inlined_call_operand.vmem [shape: f32[64,64], index: 23, kind: input, shape index: {}]   ;;  %s8163_s24 = inlined_call_operand.vmem [shape: f32[1,64], index: 24, kind: input, shape index: {}]   ;;  %s8164_s25 = inlined_call_operand.vmem [shape: f32[1,64], index: 25, kind: input, shape index: {}]   ;;  %s8165_s26 = inlined_call_operand.hbm [shape: f32[2,64], index: 26, kind: output, shape index: {}]  }
   0x1   :  { %8173 = sst [smem:[#allocation8_spill]] %s8139_s0 }
   0x2   :  { %8174 = sst [smem:[#allocation9_spill]] %s8140_s1 }
   0x3   :  { %8175 = sst [smem:[#allocation10_spill]] %s8141_s2 }
   0x4   :  { %8176 = sst [smem:[#allocation11_spill]] %s8142_s3 }
   0x5   :  { %8177 = sst [smem:[#allocation12_spill]] %s8143_s4 }
   0x6   :  { %8178 = sst [smem:[#allocation13_spill]] %s8144_s5 }
   0x7   :  { %8179 = sst [smem:[#allocation14_spill]] %s8145_s6 }
   0x8   :  { %8180 = sst [smem:[#allocation15_spill]] %s8146_s7 }
   0x9   :  { %8181 = sst [smem:[#allocation16_spill]] %s8147_s8 }
   0xa   :  { %8182 = sst [smem:[#allocation17_spill]] %s8148_s9 }
   0xb   :  { %8183 = sst [smem:[#allocation18_spill]] %s8149_s10 }
   0xc   :  { %31 = vsyncpa [#allocation3], 0 }
   0xd   :  { %32 = vsyncpa [#allocation4], 0  ;;  %s6764_s27 = smov [#allocation2]   ;;  %s8184_s8 = sld [smem:[#allocation9_spill]] }
   0xe   :  { %s40_s3 = sshll.u32 %s6764_s27, 4  ;;  %s41_s3 = int_to_ptr.vmem [resolvable:$true] %s40_s3 }
  0x13   :  { %s6716_s4 = scalar_lea.hbm %s8184_s8, 24576 }
  0x14   :  { %p6717_p0 = scmp.ne.s32.totalorder %s8184_s8, %s6716_s4  ;;  %p6720_p1 = scmp.lt.u32.totalorder %s6716_s4, %s8184_s8 }
  0x16   :  { %p6722_p2 = pnand %p6720_p1, %p6717_p0 }
  0x18   :  { %6725 = shalt.err (!%p6722_p2)
}
  0x19   :  { %s6726_s2 = scalar_lea.vmem %s41_s3, 24576  ;;  %p6731_p4 = scmp.lt.s32.totalorder %s41_s3, %s41_s3 }
  0x1a   :  { %p6727_p3 = scmp.ne.s32.totalorder %s41_s3, %s6726_s2  ;;  %p6732_p5 = scmp.lt.s32.totalorder %s6726_s2, %s6726_s2 }
  0x1c   :  { %p6733_p6 = por %p6732_p5, %p6731_p4 }
  0x1e   :  { %p6734_p7 = pnand %p6733_p6, %p6727_p3 }
  0x20   :  { %6737 = shalt.err (!%p6734_p7)
}
  0x21   :  { %s6765_s5 = smov 256   ;;  %s6766_s10 = smov 16  }
  0x22   :  { %46 = dma.hbm_to_vmem [thread:$0]  %s8184_s8, 24576, %s41_s3, [#allocation3], %s6765_s5, %s6765_s5, %s6766_s10  }
  0x23   :  { %6760 = dma.done.wait [#allocation3], 24576  }
  0x24   :  { %6761 = vsyncadd [#allocation3], 4294942720  ;;  %v6295_v0 = vld [vmem:[#allocation2 + $0x4] ss:$16 sps:$4 sm:$0xff]   ;;  %v6297_v1 = vld [vmem:[#allocation2 + $0xc] ss:$16 sps:$4 sm:$0xff]   ;;  %v107_v38 = vlaneseq }
  0x25   :  { %1292 = vmatprep.subr.bf16.mxu0 %v6295_v0  ;;  %v6299_v2 = vld [vmem:[#allocation2] ss:$16 sps:$4 sm:$0xff]   ;;  %v6300_v3 = vld [vmem:[#allocation2 + $0x8] ss:$16 sps:$4 sm:$0xff]   ;;  %1415 = vmatprep.subr.bf16.mxu1 %v6297_v1  ;;  %v6301_v4 = vld [vmem:[#allocation2 + $0x24] ss:$16 sps:$4 sm:$0xff]  }
  0x26   :  { %1293 = vmatpush1.bf16.msra.mxu0 %v6299_v2  ;;  %1416 = vmatpush1.bf16.msra.mxu1 %v6300_v3  ;;  %v6303_v5 = vld [vmem:[#allocation2 + $0x2c] ss:$16 sps:$4 sm:$0xff]   ;;  %v6305_v6 = vld [vmem:[#allocation2 + $0x20] ss:$16 sps:$4 sm:$0xff]   ;;  %v6306_v7 = vld [vmem:[#allocation2 + $0x28] ss:$16 sps:$4 sm:$0xff]  }
  0x27   :  { %1294 = vmatprep.subr.bf16.mxu0 %v6301_v4  ;;  %1417 = vmatprep.subr.bf16.mxu1 %v6303_v5  ;;  %v6307_v8 = vld [vmem:[#allocation2 + $0x44] ss:$16 sps:$4 sm:$0xff]   ;;  %v6309_v9 = vld [vmem:[#allocation2 + $0x4c] ss:$16 sps:$4 sm:$0xff]   ;;  %v6311_v10 = vld [vmem:[#allocation2 + $0x40] ss:$16 sps:$4 sm:$0xff]  }
  0x28   :  { %v6312_v11 = vld [vmem:[#allocation2 + $0x48] ss:$16 sps:$4 sm:$0xff]   ;;  %v6313_v12 = vld [vmem:[#allocation2 + $0x64] ss:$16 sps:$4 sm:$0xff]   ;;  %v6315_v13 = vld [vmem:[#allocation2 + $0x6c] ss:$16 sps:$4 sm:$0xff]  }
  0x29   :  { %v6317_v14 = vld [vmem:[#allocation2 + $0x60] ss:$16 sps:$4 sm:$0xff]   ;;  %v6318_v15 = vld [vmem:[#allocation2 + $0x68] ss:$16 sps:$4 sm:$0xff]   ;;  %v6319_v16 = vld [vmem:[#allocation2 + $0x84] ss:$16 sps:$4 sm:$0xff]  }
  0x2a   :  { %1295 = vmatpush1.bf16.msra.mxu0 %v6305_v6  ;;  %1418 = vmatpush1.bf16.msra.mxu1 %v6306_v7  ;;  %v6321_v17 = vld [vmem:[#allocation2 + $0x8c] ss:$16 sps:$4 sm:$0xff]   ;;  %v6323_v18 = vld [vmem:[#allocation2 + $0x80] ss:$16 sps:$4 sm:$0xff]   ;;  %v6324_v19 = vld [vmem:[#allocation2 + $0x88] ss:$16 sps:$4 sm:$0xff]  }
  0x2b   :  { %1296 = vmatprep.subr.bf16.mxu0 %v6307_v8  ;;  %1419 = vmatprep.subr.bf16.mxu1 %v6309_v9  ;;  %v6325_v20 = vld [vmem:[#allocation2 + $0xa4] ss:$16 sps:$4 sm:$0xff]   ;;  %v6327_v21 = vld [vmem:[#allocation2 + $0xac] ss:$16 sps:$4 sm:$0xff]   ;;  %v6329_v22 = vld [vmem:[#allocation2 + $0xa0] ss:$16 sps:$4 sm:$0xff]  }
  0x2c   :  { %v6330_v23 = vld [vmem:[#allocation2 + $0xa8] ss:$16 sps:$4 sm:$0xff]   ;;  %v6331_v24 = vld [vmem:[#allocation2 + $0xc4] ss:$16 sps:$4 sm:$0xff]   ;;  %v6333_v25 = vld [vmem:[#allocation2 + $0xcc] ss:$16 sps:$4 sm:$0xff]  }
  0x2d   :  { %v6335_v26 = vld [vmem:[#allocation2 + $0xc0] ss:$16 sps:$4 sm:$0xff]   ;;  %v6336_v27 = vld [vmem:[#allocation2 + $0xc8] ss:$16 sps:$4 sm:$0xff]   ;;  %v6337_v28 = vld [vmem:[#allocation2 + $0xe4] ss:$16 sps:$4 sm:$0xff]  }
  0x2e   :  { %1297 = vmatpush1.bf16.msra.mxu0 %v6311_v10  ;;  %1420 = vmatpush1.bf16.msra.mxu1 %v6312_v11  ;;  %v6339_v29 = vld [vmem:[#allocation2 + $0xec] ss:$16 sps:$4 sm:$0xff]   ;;  %v6341_v30 = vld [vmem:[#allocation2 + $0xe0] ss:$16 sps:$4 sm:$0xff]   ;;  %v6342_v31 = vld [vmem:[#allocation2 + $0xe8] ss:$16 sps:$4 sm:$0xff]  }
  0x2f   :  { %1298 = vmatprep.subr.bf16.mxu0 %v6313_v12  ;;  %1421 = vmatprep.subr.bf16.mxu1 %v6315_v13  ;;  %v6343_v32 = vld [vmem:[#allocation2 + $0x104] ss:$16 sps:$4 sm:$0xff]   ;;  %v6345_v33 = vld [vmem:[#allocation2 + $0x10c] ss:$16 sps:$4 sm:$0xff]   ;;  %v6347_v34 = vld [vmem:[#allocation2 + $0x100] ss:$16 sps:$4 sm:$0xff]  }
  0x30   :  { %v6348_v35 = vld [vmem:[#allocation2 + $0x108] ss:$16 sps:$4 sm:$0xff]   ;;  %v6767_v36 = vmov 1983009808   ;;  %v6349_v39 = vld [vmem:[#allocation2 + $0x124] ss:$16 sps:$4 sm:$0xff]  }
  0x31   :  { %v105_v37 = vunpack.c.l.s4 %v6767_v36  ;;  %v6351_v40 = vld [vmem:[#allocation2 + $0x12c] ss:$16 sps:$4 sm:$0xff]   ;;  %v6353_v41 = vld [vmem:[#allocation2 + $0x120] ss:$16 sps:$4 sm:$0xff]   ;;  %v6919_v43 = vshrl.u32 %v107_v38, 7  ;;  %s8185_s7 = sld [smem:[#allocation8_spill]] }
  0x32   :  { %1299 = vmatpush1.bf16.msra.mxu0 %v6317_v14  ;;  %1422 = vmatpush1.bf16.msra.mxu1 %v6318_v15  ;;  %v6354_v44 = vld [vmem:[#allocation2 + $0x128] ss:$16 sps:$4 sm:$0xff]   ;;  %v6355_v45 = vld [vmem:[#allocation2 + $0x144] ss:$16 sps:$4 sm:$0xff]   ;;  %v6357_v46 = vld [vmem:[#allocation2 + $0x14c] ss:$16 sps:$4 sm:$0xff]  }
  0x33   :  { %1300 = vmatprep.subr.bf16.mxu0 %v6319_v16  ;;  %1423 = vmatprep.subr.bf16.mxu1 %v6321_v17  ;;  %v106_v42 = vunpack.c.0.s8 %v105_v37  ;;  %v6359_v47 = vld [vmem:[#allocation2 + $0x140] ss:$16 sps:$4 sm:$0xff]   ;;  %v6360_v48 = vld [vmem:[#allocation2 + $0x148] ss:$16 sps:$4 sm:$0xff]   ;;  %v6361_v50 = vld [vmem:[#allocation2 + $0x164] ss:$16 sps:$4 sm:$0xff]  }
  0x34   :  { %v6363_v51 = vld [vmem:[#allocation2 + $0x16c] ss:$16 sps:$4 sm:$0xff]   ;;  %v6365_v53 = vld [vmem:[#allocation2 + $0x160] ss:$16 sps:$4 sm:$0xff]   ;;  %v6366_v55 = vld [vmem:[#allocation2 + $0x168] ss:$16 sps:$4 sm:$0xff]  }
  0x35   :  { %v109_v49 = vsub.s32 %v106_v42, %v6919_v43  ;;  %v6367_v56 = vld [vmem:[#allocation2 + $0x184] ss:$16 sps:$4 sm:$0xff]   ;;  %v6369_v57 = vld [vmem:[#allocation2 + $0x18c] ss:$16 sps:$4 sm:$0xff]   ;;  %v6371_v59 = vld [vmem:[#allocation2 + $0x180] ss:$16 sps:$4 sm:$0xff]  }
  0x36   :  { %1301 = vmatpush1.bf16.msra.mxu0 %v6323_v18  ;;  %1424 = vmatpush1.bf16.msra.mxu1 %v6324_v19  ;;  %v6372_v61 = vld [vmem:[#allocation2 + $0x188] ss:$16 sps:$4 sm:$0xff]   ;;  %v6373_v62 = vld [vmem:[#allocation2 + $0x1a4] ss:$16 sps:$4 sm:$0xff]   ;;  %v6375_v63 = vld [vmem:[#allocation2 + $0x1ac] ss:$16 sps:$4 sm:$0xff]  }
  0x37   :  { %1302 = vmatprep.subr.bf16.mxu0 %v6325_v20  ;;  %1425 = vmatprep.subr.bf16.mxu1 %v6327_v21  ;;  %v99_v52 = vld [vmem:[%s8185_s7] sm:$0xff]  ;;  %v6378_v1 = vld [vmem:[#allocation2 + $0x1a8] ss:$16 sps:$4 sm:$0xff]   ;;  %v6381_v3 = vld [vmem:[#allocation2 + $0x1cc] ss:$16 sps:$4 sm:$0xff]   ;;  %s8186_s0 = sld [smem:[#allocation10_spill]] }
  0x38   :  { %v110_v54 = vrot.slane %v99_v52, %v109_v49  ;;  %v6377_v0 = vld [vmem:[#allocation2 + $0x1a0] ss:$16 sps:$4 sm:$0xff]   ;;  %v6379_v2 = vld [vmem:[#allocation2 + $0x1c4] ss:$16 sps:$4 sm:$0xff]   ;;  %v103_v4 = vcombine.high %v99_v52, %v99_v52  ;;  %v6384_v6 = vld [vmem:[#allocation2 + $0x1c8] ss:$16 sps:$4 sm:$0xff]  }
  0x39   :  { %v6383_v5 = vld [vmem:[#allocation2 + $0x1c0] ss:$16 sps:$4 sm:$0xff]   ;;  %v6385_v7 = vld [vmem:[#allocation2 + $0x1e4] ss:$16 sps:$4 sm:$0xff]   ;;  %v6387_v8 = vld [vmem:[#allocation2 + $0x1ec] ss:$16 sps:$4 sm:$0xff]  }
  0x3a   :  { %1303 = vmatpush1.bf16.msra.mxu0 %v6329_v22  ;;  %1426 = vmatpush1.bf16.msra.mxu1 %v6330_v23  ;;  %v118_v58 = vcombine.high %v110_v54, %v110_v54  ;;  %v6925_v9 = vrot.slane %v103_v4, %v109_v49  ;;  %v6389_v10 = vld [vmem:[#allocation2 + $0x1e0] ss:$16 sps:$4 sm:$0xff]   ;;  %v6390_v11 = vld [vmem:[#allocation2 + $0x1e8] ss:$16 sps:$4 sm:$0xff]   ;;  %v6394_v12 = vld [vmem:[#allocation2 + $0x204] ss:$16 sps:$4 sm:$0xff]   ;;  %v134_v16 = vpack.c.bf16 %v110_v54, %v110_v54 }
  0x3b   :  { %1304 = vmatprep.subr.bf16.mxu0 %v6331_v24  ;;  %1427 = vmatprep.subr.bf16.mxu1 %v6333_v25  ;;  %v6397_v13 = vld [vmem:[#allocation2 + $0x20c] ss:$16 sps:$4 sm:$0xff]   ;;  %v6392_v15 = vld [vmem:[#allocation2 + $0x200] ss:$16 sps:$4 sm:$0xff]   ;;  %v6395_v17 = vld [vmem:[#allocation2 + $0x208] ss:$16 sps:$4 sm:$0xff]  }
  0x3c   :  { %v135_v60 = vpack.c.bf16 %v118_v58, %v118_v58  ;;  %v119_v14 = vcombine.high %v6925_v9, %v6925_v9  ;;  %v6400_v18 = vld [vmem:[#allocation2 + $0x224] ss:$16 sps:$4 sm:$0xff]   ;;  %v6403_v19 = vld [vmem:[#allocation2 + $0x22c] ss:$16 sps:$4 sm:$0xff]   ;;  %v6398_v21 = vld [vmem:[#allocation2 + $0x220] ss:$16 sps:$4 sm:$0xff]  }
  0x3d   :  { %v6401_v22 = vld [vmem:[#allocation2 + $0x228] ss:$16 sps:$4 sm:$0xff]   ;;  %v6406_v23 = vld [vmem:[#allocation2 + $0x244] ss:$16 sps:$4 sm:$0xff]   ;;  %v6409_v24 = vld [vmem:[#allocation2 + $0x24c] ss:$16 sps:$4 sm:$0xff]  }
  0x3e   :  { %1305 = vmatpush1.bf16.msra.mxu0 %v6335_v26  ;;  %1428 = vmatpush1.bf16.msra.mxu1 %v6336_v27  ;;  %v137_v20 = vpack.c.bf16 %v119_v14, %v119_v14  ;;  %v6404_v25 = vld [vmem:[#allocation2 + $0x240] ss:$16 sps:$4 sm:$0xff]   ;;  %v6407_v26 = vld [vmem:[#allocation2 + $0x248] ss:$16 sps:$4 sm:$0xff]   ;;  %v6412_v27 = vld [vmem:[#allocation2 + $0x264] ss:$16 sps:$4 sm:$0xff]  }
  0x3f   :  { %1306 = vmatprep.subr.bf16.mxu0 %v6337_v28  ;;  %1429 = vmatprep.subr.bf16.mxu1 %v6339_v29  ;;  %v6415_v28 = vld [vmem:[#allocation2 + $0x26c] ss:$16 sps:$4 sm:$0xff]   ;;  %v6410_v29 = vld [vmem:[#allocation2 + $0x260] ss:$16 sps:$4 sm:$0xff]   ;;  %v6425_v38 = vld [vmem:[#allocation2 + $0x2a8] ss:$16 sps:$4 sm:$0xff]  }
  0x40   :  { %1324 = vmatprep.mubr.bf16.mxu0 %v135_v60  ;;  %1447 = vmatprep.mubr.bf16.mxu1 %v135_v60  ;;  %v6427_v36 = vld [vmem:[#allocation2 + $0x2ac] ss:$16 sps:$4 sm:$0xff]   ;;  %v6422_v37 = vld [vmem:[#allocation2 + $0x2a0] ss:$16 sps:$4 sm:$0xff]   ;;  %v6431_v42 = vld [vmem:[#allocation2 + $0x2c8] ss:$16 sps:$4 sm:$0xff]  }
  0x41   :  { %v6445_v49 = vld [vmem:[#allocation2 + $0x30c] ss:$16 sps:$4 sm:$0xff]   ;;  %v6448_v52 = vld [vmem:[#allocation2 + $0x324] ss:$16 sps:$4 sm:$0xff]   ;;  %v6446_v54 = vld [vmem:[#allocation2 + $0x320] ss:$16 sps:$4 sm:$0xff]  }
  0x42   :  { %1307 = vmatpush1.bf16.msra.mxu0 %v6341_v30  ;;  %1430 = vmatpush1.bf16.msra.mxu1 %v6342_v31  ;;  %v6413_v30 = vld [vmem:[#allocation2 + $0x268] ss:$16 sps:$4 sm:$0xff]   ;;  %v6418_v31 = vld [vmem:[#allocation2 + $0x284] ss:$16 sps:$4 sm:$0xff]   ;;  %v6452_v58 = vld [vmem:[#allocation2 + $0x340] ss:$16 sps:$4 sm:$0xff]  }
  0x43   :  { %1308 = vmatprep.subr.bf16.mxu0 %v6343_v32  ;;  %1431 = vmatprep.subr.bf16.mxu1 %v6345_v33  ;;  %v6421_v32 = vld [vmem:[#allocation2 + $0x28c] ss:$16 sps:$4 sm:$0xff]   ;;  %v6416_v33 = vld [vmem:[#allocation2 + $0x280] ss:$16 sps:$4 sm:$0xff]   ;;  %v6460_v60 = vld [vmem:[#allocation2 + $0x364] ss:$16 sps:$4 sm:$0xff]  }
  0x44   :  { %v6472_v4 = vld [vmem:[#allocation2 + $0x3a4] ss:$16 sps:$4 sm:$0xff]   ;;  %v6487_v14 = vld [vmem:[#allocation2 + $0x3ec] ss:$16 sps:$4 sm:$0xff]   ;;  %s8187_s30 = sld [smem:[#allocation11_spill]]  ;;  %vm1746_vm0 = vcmask 58368  }
  0x45   :  { %vm1755_vm1 = vcmask 64512   ;;  %s8188_s28 = sld [smem:[#allocation12_spill]]  ;;  %s8189_s29 = sld [smem:[#allocation14_spill]]  ;;  %vm2996_vm6 = vcmask 123904   ;;  %vm3005_vm7 = vcmask 130048   ;;  %vm6770_vm10 = vmmov 0  }
  0x46   :  { %1309 = vmatpush1.bf16.msra.mxu0 %v6347_v34  ;;  %1432 = vmatpush1.bf16.msra.mxu1 %v6348_v35  ;;  %v6419_v34 = vld [vmem:[#allocation2 + $0x288] ss:$16 sps:$4 sm:$0xff]   ;;  %v6424_v35 = vld [vmem:[#allocation2 + $0x2a4] ss:$16 sps:$4 sm:$0xff]   ;;  %s8191_s4 = sld [smem:[#allocation15_spill]]  ;;  %s8192_s27 = sld [smem:[#allocation16_spill]] }
  0x47   :  { %1310 = vmatprep.subr.bf16.mxu0 %v6349_v39  ;;  %1433 = vmatprep.subr.bf16.mxu1 %v6351_v40  ;;  %v6430_v39 = vld [vmem:[#allocation2 + $0x2c4] ss:$16 sps:$4 sm:$0xff]   ;;  %v6433_v40 = vld [vmem:[#allocation2 + $0x2cc] ss:$16 sps:$4 sm:$0xff]   ;;  %s8193_s2 = sld [smem:[#allocation17_spill]]  ;;  %s8194_s1 = sld [smem:[#allocation18_spill]] }
  0x48   :  { %vm3609_vm11 = vcmask 254976   ;;  %vm3618_vm12 = vcmask 261120   ;;  %vm4534_vm15 = vcmask 523264  }
  0x4a   :  { %1311 = vmatpush1.bf16.msra.mxu0 %v6353_v41  ;;  %1434 = vmatpush1.bf16.msra.mxu1 %v6354_v44  ;;  %v6428_v41 = vld [vmem:[#allocation2 + $0x2c0] ss:$16 sps:$4 sm:$0xff]   ;;  %v6436_v44 = vld [vmem:[#allocation2 + $0x2e4] ss:$16 sps:$4 sm:$0xff]  }
  0x4b   :  { %1312 = vmatprep.subr.bf16.mxu0 %v6355_v45  ;;  %1435 = vmatprep.subr.bf16.mxu1 %v6357_v46  ;;  %v6439_v45 = vld [vmem:[#allocation2 + $0x2ec] ss:$16 sps:$4 sm:$0xff]   ;;  %v6434_v46 = vld [vmem:[#allocation2 + $0x2e0] ss:$16 sps:$4 sm:$0xff]  }
  0x4e   :  { %1313 = vmatpush1.bf16.msra.mxu0 %v6359_v47  ;;  %1436 = vmatpush1.bf16.msra.mxu1 %v6360_v48  ;;  %v6437_v47 = vld [vmem:[#allocation2 + $0x2e8] ss:$16 sps:$4 sm:$0xff]   ;;  %v6442_v48 = vld [vmem:[#allocation2 + $0x304] ss:$16 sps:$4 sm:$0xff]  }
  0x4f   :  { %1314 = vmatprep.subr.bf16.mxu0 %v6361_v50  ;;  %1437 = vmatprep.subr.bf16.mxu1 %v6363_v51  ;;  %v6440_v50 = vld [vmem:[#allocation2 + $0x300] ss:$16 sps:$4 sm:$0xff]   ;;  %v6443_v51 = vld [vmem:[#allocation2 + $0x308] ss:$16 sps:$4 sm:$0xff]  }
  0x52   :  { %1315 = vmatpush1.bf16.msra.mxu0 %v6365_v53  ;;  %1438 = vmatpush1.bf16.msra.mxu1 %v6366_v55  ;;  %v6451_v53 = vld [vmem:[#allocation2 + $0x32c] ss:$16 sps:$4 sm:$0xff]   ;;  %v6449_v55 = vld [vmem:[#allocation2 + $0x328] ss:$16 sps:$4 sm:$0xff]  }
  0x53   :  { %1316 = vmatprep.subr.bf16.mxu0 %v6367_v56  ;;  %1439 = vmatprep.subr.bf16.mxu1 %v6369_v57  ;;  %v6454_v56 = vld [vmem:[#allocation2 + $0x344] ss:$16 sps:$4 sm:$0xff]   ;;  %v6457_v57 = vld [vmem:[#allocation2 + $0x34c] ss:$16 sps:$4 sm:$0xff]  }
  0x56   :  { %1317 = vmatpush1.bf16.msra.mxu0 %v6371_v59  ;;  %1440 = vmatpush1.bf16.msra.mxu1 %v6372_v61  ;;  %v6455_v59 = vld [vmem:[#allocation2 + $0x348] ss:$16 sps:$4 sm:$0xff]   ;;  %v6463_v61 = vld [vmem:[#allocation2 + $0x36c] ss:$16 sps:$4 sm:$0xff]  }
  0x57   :  { %1318 = vmatprep.subr.bf16.mxu0 %v6373_v62  ;;  %1441 = vmatprep.subr.bf16.mxu1 %v6375_v63  ;;  %v6458_v62 = vld [vmem:[#allocation2 + $0x360] ss:$16 sps:$4 sm:$0xff]   ;;  %v6461_v63 = vld [vmem:[#allocation2 + $0x368] ss:$16 sps:$4 sm:$0xff]  }
  0x5a   :  { %1319 = vmatpush1.bf16.msra.mxu0 %v6377_v0  ;;  %1442 = vmatpush1.bf16.msra.mxu1 %v6378_v1  ;;  %v6466_v0 = vld [vmem:[#allocation2 + $0x384] ss:$16 sps:$4 sm:$0xff]   ;;  %v6469_v1 = vld [vmem:[#allocation2 + $0x38c] ss:$16 sps:$4 sm:$0xff]  }
  0x5b   :  { %1320 = vmatprep.subr.bf16.mxu0 %v6379_v2  ;;  %1443 = vmatprep.subr.bf16.mxu1 %v6381_v3  ;;  %v6464_v2 = vld [vmem:[#allocation2 + $0x380] ss:$16 sps:$4 sm:$0xff]   ;;  %v6467_v3 = vld [vmem:[#allocation2 + $0x388] ss:$16 sps:$4 sm:$0xff]  }
  0x5e   :  { %1321 = vmatpush1.bf16.msra.mxu0 %v6383_v5  ;;  %1444 = vmatpush1.bf16.msra.mxu1 %v6384_v6  ;;  %v6475_v5 = vld [vmem:[#allocation2 + $0x3ac] ss:$16 sps:$4 sm:$0xff]   ;;  %v6470_v6 = vld [vmem:[#allocation2 + $0x3a0] ss:$16 sps:$4 sm:$0xff]  }
  0x5f   :  { %1322 = vmatprep.subr.bf16.mxu0 %v6385_v7  ;;  %1445 = vmatprep.subr.bf16.mxu1 %v6387_v8  ;;  %v6473_v7 = vld [vmem:[#allocation2 + $0x3a8] ss:$16 sps:$4 sm:$0xff]   ;;  %v6478_v8 = vld [vmem:[#allocation2 + $0x3c4] ss:$16 sps:$4 sm:$0xff]  }
  0x62   :  { %1323 = vmatpush1.bf16.msra.mxu0 %v6389_v10  ;;  %1446 = vmatpush1.bf16.msra.mxu1 %v6390_v11  ;;  %v6481_v10 = vld [vmem:[#allocation2 + $0x3cc] ss:$16 sps:$4 sm:$0xff]   ;;  %v6476_v11 = vld [vmem:[#allocation2 + $0x3c0] ss:$16 sps:$4 sm:$0xff]  }
  0x63   :  { %1333 = vmatprep.subr.bf16.mxu0 %v6394_v12  ;;  %1456 = vmatprep.subr.bf16.mxu1 %v6397_v13  ;;  %v6479_v12 = vld [vmem:[#allocation2 + $0x3c8] ss:$16 sps:$4 sm:$0xff]   ;;  %v6484_v13 = vld [vmem:[#allocation2 + $0x3e4] ss:$16 sps:$4 sm:$0xff]  }
  0x65   :  { %1325 = vmatmul.mubr.bf16.vlgmr.msra.gmra.mrb[0].mxu0 %v134_v16  ;;  %1448 = vmatmul.mubr.bf16.vlgmr.msra.gmra.mrb[0].mxu1 %v134_v16  ;;  %v6485_v16 = vld [vmem:[#allocation2 + $0x3e8] ss:$16 sps:$4 sm:$0xff]  }
  0x66   :  { %1334 = vmatpush1.bf16.msra.mxu0 %v6392_v15  ;;  %1457 = vmatpush1.bf16.msra.mxu1 %v6395_v17  ;;  %v6482_v15 = vld [vmem:[#allocation2 + $0x3e0] ss:$16 sps:$4 sm:$0xff]   ;;  %v6490_v17 = vld [vmem:[#allocation2 + $0x404] ss:$16 sps:$4 sm:$0xff]  }
  0x67   :  { %1335 = vmatprep.subr.bf16.mxu0 %v6400_v18  ;;  %1458 = vmatprep.subr.bf16.mxu1 %v6403_v19  ;;  %v6493_v18 = vld [vmem:[#allocation2 + $0x40c] ss:$16 sps:$4 sm:$0xff]   ;;  %v6488_v19 = vld [vmem:[#allocation2 + $0x400] ss:$16 sps:$4 sm:$0xff]  }
  0x68   :  { %1365 = vmatprep.mubr.bf16.mxu0 %v137_v20  ;;  %1488 = vmatprep.mubr.bf16.mxu1 %v137_v20  ;;  %v136_v20 = vpack.c.bf16 %v6925_v9, %v6925_v9  ;;  %v6494_v9 = vld [vmem:[#allocation2 + $0x420] ss:$16 sps:$4 sm:$0xff]  }
  0x6a   :  { %1336 = vmatpush1.bf16.msra.mxu0 %v6398_v21  ;;  %1459 = vmatpush1.bf16.msra.mxu1 %v6401_v22  ;;  %v6491_v21 = vld [vmem:[#allocation2 + $0x408] ss:$16 sps:$4 sm:$0xff]  }
  0x6b   :  { %1337 = vmatprep.subr.bf16.mxu0 %v6406_v23  ;;  %1460 = vmatprep.subr.bf16.mxu1 %v6409_v24  ;;  %v6934_v22 = vld.sshfl [vmem:[%s8185_s7 + $0x8] sm:$0x33 pattern:$0x76325410]  ;;  %v6496_v23 = vld [vmem:[#allocation2 + $0x424] ss:$16 sps:$4 sm:$0xff]  }
  0x6c   :  { %v6499_v24 = vld [vmem:[#allocation2 + $0x42c] ss:$16 sps:$4 sm:$0xff]  }
  0x6e   :  { %1338 = vmatpush1.bf16.msra.mxu0 %v6404_v25  ;;  %1461 = vmatpush1.bf16.msra.mxu1 %v6407_v26  ;;  %v127_v25 = vcombine.high %v6934_v22, %v6934_v22 }
  0x6f   :  { %1339 = vmatprep.subr.bf16.mxu0 %v6412_v27  ;;  %1462 = vmatprep.subr.bf16.mxu1 %v6415_v28  ;;  %v6497_v27 = vld [vmem:[#allocation2 + $0x428] ss:$16 sps:$4 sm:$0xff]   ;;  %v6502_v28 = vld [vmem:[#allocation2 + $0x444] ss:$16 sps:$4 sm:$0xff]  }
  0x70   :  { %v139_v26 = vpack.c.bf16 %v127_v25, %v127_v25  ;;  %v6578_v25 = vld [vmem:[#allocation2 + $0x5e0] ss:$16 sps:$4 sm:$0xff]  }
  0x72   :  { %1340 = vmatpush1.bf16.msra.mxu0 %v6410_v29  ;;  %1463 = vmatpush1.bf16.msra.mxu1 %v6413_v30  ;;  %v6505_v29 = vld [vmem:[#allocation2 + $0x44c] ss:$16 sps:$4 sm:$0xff]   ;;  %v6500_v30 = vld [vmem:[#allocation2 + $0x440] ss:$16 sps:$4 sm:$0xff]  }
  0x73   :  { %1341 = vmatprep.subr.bf16.mxu0 %v6418_v31  ;;  %1464 = vmatprep.subr.bf16.mxu1 %v6421_v32  ;;  %v6503_v31 = vld [vmem:[#allocation2 + $0x448] ss:$16 sps:$4 sm:$0xff]   ;;  %v6508_v32 = vld [vmem:[#allocation2 + $0x464] ss:$16 sps:$4 sm:$0xff]  }
  0x76   :  { %1342 = vmatpush1.bf16.msra.mxu0 %v6416_v33  ;;  %1465 = vmatpush1.bf16.msra.mxu1 %v6419_v34  ;;  %v6511_v33 = vld [vmem:[#allocation2 + $0x46c] ss:$16 sps:$4 sm:$0xff]   ;;  %v6506_v34 = vld [vmem:[#allocation2 + $0x460] ss:$16 sps:$4 sm:$0xff]  }
  0x77   :  { %1343 = vmatprep.subr.bf16.mxu0 %v6424_v35  ;;  %1466 = vmatprep.subr.bf16.mxu1 %v6427_v36  ;;  %v6509_v35 = vld [vmem:[#allocation2 + $0x468] ss:$16 sps:$4 sm:$0xff]   ;;  %v6514_v36 = vld [vmem:[#allocation2 + $0x484] ss:$16 sps:$4 sm:$0xff]  }
  0x7a   :  { %1344 = vmatpush1.bf16.msra.mxu0 %v6422_v37  ;;  %1467 = vmatpush1.bf16.msra.mxu1 %v6425_v38  ;;  %v6517_v37 = vld [vmem:[#allocation2 + $0x48c] ss:$16 sps:$4 sm:$0xff]   ;;  %v6512_v38 = vld [vmem:[#allocation2 + $0x480] ss:$16 sps:$4 sm:$0xff]  }
  0x7b   :  { %1345 = vmatprep.subr.bf16.mxu0 %v6430_v39  ;;  %1468 = vmatprep.subr.bf16.mxu1 %v6433_v40  ;;  %v6515_v39 = vld [vmem:[#allocation2 + $0x488] ss:$16 sps:$4 sm:$0xff]   ;;  %v6520_v40 = vld [vmem:[#allocation2 + $0x4a4] ss:$16 sps:$4 sm:$0xff]  }
  0x7e   :  { %1346 = vmatpush1.bf16.msra.mxu0 %v6428_v41  ;;  %1469 = vmatpush1.bf16.msra.mxu1 %v6431_v42  ;;  %v6523_v41 = vld [vmem:[#allocation2 + $0x4ac] ss:$16 sps:$4 sm:$0xff]   ;;  %v6518_v42 = vld [vmem:[#allocation2 + $0x4a0] ss:$16 sps:$4 sm:$0xff]  }
  0x7f   :  { %1347 = vmatprep.subr.bf16.mxu0 %v6436_v44  ;;  %1470 = vmatprep.subr.bf16.mxu1 %v6439_v45  ;;  %v6521_v44 = vld [vmem:[#allocation2 + $0x4a8] ss:$16 sps:$4 sm:$0xff]   ;;  %v6526_v45 = vld [vmem:[#allocation2 + $0x4c4] ss:$16 sps:$4 sm:$0xff]  }
  0x82   :  { %1348 = vmatpush1.bf16.msra.mxu0 %v6434_v46  ;;  %1471 = vmatpush1.bf16.msra.mxu1 %v6437_v47  ;;  %v6529_v46 = vld [vmem:[#allocation2 + $0x4cc] ss:$16 sps:$4 sm:$0xff]   ;;  %v6524_v47 = vld [vmem:[#allocation2 + $0x4c0] ss:$16 sps:$4 sm:$0xff]  }
  0x83   :  { %1349 = vmatprep.subr.bf16.mxu0 %v6442_v48  ;;  %1472 = vmatprep.subr.bf16.mxu1 %v6445_v49  ;;  %v6527_v48 = vld [vmem:[#allocation2 + $0x4c8] ss:$16 sps:$4 sm:$0xff]   ;;  %v6532_v49 = vld [vmem:[#allocation2 + $0x4e4] ss:$16 sps:$4 sm:$0xff]  }
  0x86   :  { %1350 = vmatpush1.bf16.msra.mxu0 %v6440_v50  ;;  %1473 = vmatpush1.bf16.msra.mxu1 %v6443_v51  ;;  %v6535_v50 = vld [vmem:[#allocation2 + $0x4ec] ss:$16 sps:$4 sm:$0xff]   ;;  %v6530_v51 = vld [vmem:[#allocation2 + $0x4e0] ss:$16 sps:$4 sm:$0xff]  }
  0x87   :  { %1351 = vmatprep.subr.bf16.mxu0 %v6448_v52  ;;  %1474 = vmatprep.subr.bf16.mxu1 %v6451_v53  ;;  %v6533_v52 = vld [vmem:[#allocation2 + $0x4e8] ss:$16 sps:$4 sm:$0xff]   ;;  %v6538_v53 = vld [vmem:[#allocation2 + $0x504] ss:$16 sps:$4 sm:$0xff]  }
  0x8a   :  { %1352 = vmatpush1.bf16.msra.mxu0 %v6446_v54  ;;  %1475 = vmatpush1.bf16.msra.mxu1 %v6449_v55  ;;  %v6541_v54 = vld [vmem:[#allocation2 + $0x50c] ss:$16 sps:$4 sm:$0xff]   ;;  %v6536_v55 = vld [vmem:[#allocation2 + $0x500] ss:$16 sps:$4 sm:$0xff]  }
  0x8b   :  { %1353 = vmatprep.subr.bf16.mxu0 %v6454_v56  ;;  %1476 = vmatprep.subr.bf16.mxu1 %v6457_v57  ;;  %v6539_v56 = vld [vmem:[#allocation2 + $0x508] ss:$16 sps:$4 sm:$0xff]   ;;  %v6544_v57 = vld [vmem:[#allocation2 + $0x524] ss:$16 sps:$4 sm:$0xff]  }
  0x8e   :  { %1354 = vmatpush1.bf16.msra.mxu0 %v6452_v58  ;;  %1477 = vmatpush1.bf16.msra.mxu1 %v6455_v59  ;;  %v6547_v58 = vld [vmem:[#allocation2 + $0x52c] ss:$16 sps:$4 sm:$0xff]   ;;  %v6542_v59 = vld [vmem:[#allocation2 + $0x520] ss:$16 sps:$4 sm:$0xff]  }
  0x8f   :  { %1355 = vmatprep.subr.bf16.mxu0 %v6460_v60  ;;  %1478 = vmatprep.subr.bf16.mxu1 %v6463_v61  ;;  %v6545_v60 = vld [vmem:[#allocation2 + $0x528] ss:$16 sps:$4 sm:$0xff]   ;;  %v6550_v61 = vld [vmem:[#allocation2 + $0x544] ss:$16 sps:$4 sm:$0xff]  }
  0x92   :  { %1356 = vmatpush1.bf16.msra.mxu0 %v6458_v62  ;;  %1479 = vmatpush1.bf16.msra.mxu1 %v6461_v63  ;;  %v6553_v62 = vld [vmem:[#allocation2 + $0x54c] ss:$16 sps:$4 sm:$0xff]   ;;  %v6548_v63 = vld [vmem:[#allocation2 + $0x540] ss:$16 sps:$4 sm:$0xff]  }
  0x93   :  { %1357 = vmatprep.subr.bf16.mxu0 %v6466_v0  ;;  %1480 = vmatprep.subr.bf16.mxu1 %v6469_v1  ;;  %v6551_v0 = vld [vmem:[#allocation2 + $0x548] ss:$16 sps:$4 sm:$0xff]   ;;  %v6556_v1 = vld [vmem:[#allocation2 + $0x564] ss:$16 sps:$4 sm:$0xff]  }
  0x96   :  { %1358 = vmatpush1.bf16.msra.mxu0 %v6464_v2  ;;  %1481 = vmatpush1.bf16.msra.mxu1 %v6467_v3  ;;  %v6559_v2 = vld [vmem:[#allocation2 + $0x56c] ss:$16 sps:$4 sm:$0xff]   ;;  %v6554_v3 = vld [vmem:[#allocation2 + $0x560] ss:$16 sps:$4 sm:$0xff]  }
  0x97   :  { %1359 = vmatprep.subr.bf16.mxu0 %v6472_v4  ;;  %1482 = vmatprep.subr.bf16.mxu1 %v6475_v5  ;;  %v6557_v4 = vld [vmem:[#allocation2 + $0x568] ss:$16 sps:$4 sm:$0xff]   ;;  %v6562_v5 = vld [vmem:[#allocation2 + $0x584] ss:$16 sps:$4 sm:$0xff]  }
  0x9a   :  { %1360 = vmatpush1.bf16.msra.mxu0 %v6470_v6  ;;  %1483 = vmatpush1.bf16.msra.mxu1 %v6473_v7  ;;  %v6565_v6 = vld [vmem:[#allocation2 + $0x58c] ss:$16 sps:$4 sm:$0xff]   ;;  %v6560_v7 = vld [vmem:[#allocation2 + $0x580] ss:$16 sps:$4 sm:$0xff]  }
  0x9b   :  { %1361 = vmatprep.subr.bf16.mxu0 %v6478_v8  ;;  %1484 = vmatprep.subr.bf16.mxu1 %v6481_v10  ;;  %v6563_v8 = vld [vmem:[#allocation2 + $0x588] ss:$16 sps:$4 sm:$0xff]   ;;  %v6568_v10 = vld [vmem:[#allocation2 + $0x5a4] ss:$16 sps:$4 sm:$0xff]  }
  0x9e   :  { %1362 = vmatpush1.bf16.msra.mxu0 %v6476_v11  ;;  %1485 = vmatpush1.bf16.msra.mxu1 %v6479_v12  ;;  %v6571_v11 = vld [vmem:[#allocation2 + $0x5ac] ss:$16 sps:$4 sm:$0xff]   ;;  %v6566_v12 = vld [vmem:[#allocation2 + $0x5a0] ss:$16 sps:$4 sm:$0xff]  }
  0x9f   :  { %1363 = vmatprep.subr.bf16.mxu0 %v6484_v13  ;;  %1486 = vmatprep.subr.bf16.mxu1 %v6487_v14  ;;  %v6569_v13 = vld [vmem:[#allocation2 + $0x5a8] ss:$16 sps:$4 sm:$0xff]   ;;  %v6574_v14 = vld [vmem:[#allocation2 + $0x5c4] ss:$16 sps:$4 sm:$0xff]  }
  0xa2   :  { %1364 = vmatpush1.bf16.msra.mxu0 %v6482_v15  ;;  %1487 = vmatpush1.bf16.msra.mxu1 %v6485_v16  ;;  %v6577_v15 = vld [vmem:[#allocation2 + $0x5cc] ss:$16 sps:$4 sm:$0xff]   ;;  %v6572_v16 = vld [vmem:[#allocation2 + $0x5c0] ss:$16 sps:$4 sm:$0xff]  }
  0xa3   :  { %1374 = vmatprep.subr.bf16.mxu0 %v6490_v17  ;;  %1497 = vmatprep.subr.bf16.mxu1 %v6493_v18  ;;  %v6575_v17 = vld [vmem:[#allocation2 + $0x5c8] ss:$16 sps:$4 sm:$0xff]   ;;  %v6580_v18 = vld [vmem:[#allocation2 + $0x5e4] ss:$16 sps:$4 sm:$0xff]  }
  0xa5   :  { %1366 = vmatmul.mubr.bf16.vlgmr.msra.gmra.mrb[0].mxu0 %v136_v20  ;;  %1489 = vmatmul.mubr.bf16.vlgmr.msra.gmra.mrb[0].mxu1 %v136_v20  ;;  %v1554_v20 = vld [vmem:[%s8186_s0 + $0x80] sm:$0xff] }
  0xa6   :  { %1375 = vmatpush1.bf16.msra.mxu0 %v6488_v19  ;;  %1498 = vmatpush1.bf16.msra.mxu1 %v6491_v21  ;;  %v6583_v19 = vld [vmem:[#allocation2 + $0x5ec] ss:$16 sps:$4 sm:$0xff]  }
  0xa7   :  { %1376 = vmatprep.subr.bf16.mxu0 %v6496_v23  ;;  %1499 = vmatprep.subr.bf16.mxu1 %v6499_v24  ;;  %v1555_v21 = vld [vmem:[%s8186_s0 + $0x88] sm:$0xff]  ;;  %v1586_v23 = vld [vmem:[%s8186_s0 + $0x180] sm:$0xff] }
  0xa8   :  { %1406 = vmatprep.mubr.bf16.mxu0 %v139_v26  ;;  %1529 = vmatprep.mubr.bf16.mxu1 %v139_v26  ;;  %v1587_v24 = vld [vmem:[%s8186_s0 + $0x188] sm:$0xff] }
  0xa9   :  { %v6581_v26 = vld [vmem:[#allocation2 + $0x5e8] ss:$16 sps:$4 sm:$0xff]  }
  0xaa   :  { %1377 = vmatpush1.bf16.msra.mxu0 %v6494_v9  ;;  %1500 = vmatpush1.bf16.msra.mxu1 %v6497_v27  ;;  %v1538_v9 = vld [vmem:[%s8186_s0] sm:$0xff]  ;;  %v1539_v27 = vld [vmem:[%s8186_s0 + $0x8] sm:$0xff] }
  0xab   :  { %1378 = vmatprep.subr.bf16.mxu0 %v6502_v28  ;;  %1501 = vmatprep.subr.bf16.mxu1 %v6505_v29  ;;  %v6956_v28 = vpack.c.bf16 %v1555_v21, %v1554_v20  ;;  %v6958_v29 = vpack.c.bf16 %v1587_v24, %v1586_v23  ;;  %v1596_v20 = vld [vmem:[%s8186_s0 + $0x1d0] sm:$0xff]  ;;  %v1597_v21 = vld [vmem:[%s8186_s0 + $0x1d8] sm:$0xff] }
  0xae   :  { %1379 = vmatpush1.bf16.msra.mxu0 %v6500_v30  ;;  %1502 = vmatpush1.bf16.msra.mxu1 %v6503_v31  ;;  %v1570_v30 = vld [vmem:[%s8186_s0 + $0x100] sm:$0xff]  ;;  %v1571_v31 = vld [vmem:[%s8186_s0 + $0x108] sm:$0xff] }
  0xaf   :  { %1380 = vmatprep.subr.bf16.mxu0 %v6508_v32  ;;  %1503 = vmatprep.subr.bf16.mxu1 %v6511_v33  ;;  %v1556_v32 = vld [vmem:[%s8186_s0 + $0x90] sm:$0xff]  ;;  %v1557_v33 = vld [vmem:[%s8186_s0 + $0x98] sm:$0xff] }
  0xb2   :  { %1381 = vmatpush1.bf16.msra.mxu0 %v6506_v34  ;;  %1504 = vmatpush1.bf16.msra.mxu1 %v6509_v35  ;;  %v1588_v34 = vld [vmem:[%s8186_s0 + $0x190] sm:$0xff]  ;;  %v1589_v35 = vld [vmem:[%s8186_s0 + $0x198] sm:$0xff] }
  0xb3   :  { %1382 = vmatprep.subr.bf16.mxu0 %v6514_v36  ;;  %1505 = vmatprep.subr.bf16.mxu1 %v6517_v37  ;;  %v138_v36 = vpack.c.bf16 %v6934_v22, %v6934_v22  ;;  %v6980_v37 = vpack.c.bf16 %v1539_v27, %v1538_v9  ;;  %v6994_v22 = vpack.c.bf16 %v1589_v35, %v1588_v34  ;;  %v1598_v34 = vld [vmem:[%s8186_s0 + $0x1e0] sm:$0xff]  ;;  %v1599_v35 = vld [vmem:[%s8186_s0 + $0x1e8] sm:$0xff] }
  0xb4   :  { %v7138_v27 = vpack.c.bf16 %v1597_v21, %v1596_v20 }
  0xb6   :  { %1383 = vmatpush1.bf16.msra.mxu0 %v6512_v38  ;;  %1506 = vmatpush1.bf16.msra.mxu1 %v6515_v39  ;;  %v6982_v38 = vpack.c.bf16 %v1571_v31, %v1570_v30  ;;  %v1540_v39 = vld [vmem:[%s8186_s0 + $0x10] sm:$0xff]  ;;  %v1581_v31 = vld [vmem:[%s8186_s0 + $0x158] sm:$0xff] }
  0xb7   :  { %1384 = vmatprep.subr.bf16.mxu0 %v6520_v40  ;;  %1507 = vmatprep.subr.bf16.mxu1 %v6523_v41  ;;  %v1541_v40 = vld [vmem:[%s8186_s0 + $0x18] sm:$0xff]  ;;  %v6992_v41 = vpack.c.bf16 %v1557_v33, %v1556_v32  ;;  %v1580_v30 = vld [vmem:[%s8186_s0 + $0x150] sm:$0xff]  ;;  %v1566_v32 = vld [vmem:[%s8186_s0 + $0xe0] sm:$0xff] }
  0xb8   :  { %v1567_v33 = vld [vmem:[%s8186_s0 + $0xe8] sm:$0xff] }
  0xba   :  { %1385 = vmatpush1.bf16.msra.mxu0 %v6518_v42  ;;  %1508 = vmatpush1.bf16.msra.mxu1 %v6521_v44  ;;  %v1572_v42 = vld [vmem:[%s8186_s0 + $0x110] sm:$0xff]  ;;  %v1573_v44 = vld [vmem:[%s8186_s0 + $0x118] sm:$0xff] }
  0xbb   :  { %1386 = vmatprep.subr.bf16.mxu0 %v6526_v45  ;;  %1509 = vmatprep.subr.bf16.mxu1 %v6529_v46  ;;  %v1558_v45 = vld [vmem:[%s8186_s0 + $0xa0] sm:$0xff]  ;;  %v1559_v46 = vld [vmem:[%s8186_s0 + $0xa8] sm:$0xff] }
  0xbe   :  { %1387 = vmatpush1.bf16.msra.mxu0 %v6524_v47  ;;  %1510 = vmatpush1.bf16.msra.mxu1 %v6527_v48  ;;  %v1590_v47 = vld [vmem:[%s8186_s0 + $0x1a0] sm:$0xff]  ;;  %v1591_v48 = vld [vmem:[%s8186_s0 + $0x1a8] sm:$0xff] }
  0xbf   :  { %1388 = vmatprep.subr.bf16.mxu0 %v6532_v49  ;;  %1511 = vmatprep.subr.bf16.mxu1 %v6535_v50  ;;  %v7016_v49 = vpack.c.bf16 %v1541_v40, %v1540_v39  ;;  %v7018_v50 = vpack.c.bf16 %v1573_v44, %v1572_v42  ;;  %v7160_v39 = vpack.c.bf16 %v1581_v31, %v1580_v30  ;;  %v1550_v40 = vld [vmem:[%s8186_s0 + $0x60] sm:$0xff]  ;;  %v1551_v42 = vld [vmem:[%s8186_s0 + $0x68] sm:$0xff] }
  0xc0   :  { %v5931_v44 = vpack.c.bf16 %v1567_v33, %v1566_v32  ;;  %v7260_v33 = vld [vmem:[%s8187_s30 + $0x10] sm:$0xff] }
  0xc2   :  { %1389 = vmatpush1.bf16.msra.mxu0 %v6530_v51  ;;  %1512 = vmatpush1.bf16.msra.mxu1 %v6533_v52  ;;  %v1542_v51 = vld [vmem:[%s8186_s0 + $0x20] sm:$0xff]  ;;  %v1543_v52 = vld [vmem:[%s8186_s0 + $0x28] sm:$0xff] }
  0xc3   :  { %1390 = vmatprep.subr.bf16.mxu0 %v6538_v53  ;;  %1513 = vmatprep.subr.bf16.mxu1 %v6541_v54  ;;  %v7028_v53 = vpack.c.bf16 %v1559_v46, %v1558_v45  ;;  %v7030_v54 = vpack.c.bf16 %v1591_v48, %v1590_v47  ;;  %v7170_v45 = vpack.c.bf16 %v1599_v35, %v1598_v34  ;;  %v1582_v46 = vld [vmem:[%s8186_s0 + $0x160] sm:$0xff]  ;;  %v1583_v47 = vld [vmem:[%s8186_s0 + $0x168] sm:$0xff]  ;;  %v1568_v48 = vld [vmem:[%s8186_s0 + $0xf0] sm:$0xff] }
  0xc6   :  { %1391 = vmatpush1.bf16.msra.mxu0 %v6536_v55  ;;  %1514 = vmatpush1.bf16.msra.mxu1 %v6539_v56  ;;  %v1574_v55 = vld [vmem:[%s8186_s0 + $0x120] sm:$0xff]  ;;  %v1575_v56 = vld [vmem:[%s8186_s0 + $0x128] sm:$0xff] }
  0xc7   :  { %1392 = vmatprep.subr.bf16.mxu0 %v6544_v57  ;;  %1515 = vmatprep.subr.bf16.mxu1 %v6547_v58  ;;  %v1560_v57 = vld [vmem:[%s8186_s0 + $0xb0] sm:$0xff]  ;;  %v1561_v58 = vld [vmem:[%s8186_s0 + $0xb8] sm:$0xff] }
  0xca   :  { %1393 = vmatpush1.bf16.msra.mxu0 %v6542_v59  ;;  %1516 = vmatpush1.bf16.msra.mxu1 %v6545_v60  ;;  %v1592_v59 = vld [vmem:[%s8186_s0 + $0x1b0] sm:$0xff]  ;;  %v1593_v60 = vld [vmem:[%s8186_s0 + $0x1b8] sm:$0xff] }
  0xcb   :  { %1394 = vmatprep.subr.bf16.mxu0 %v6550_v61  ;;  %1517 = vmatprep.subr.bf16.mxu1 %v6553_v62  ;;  %v7052_v61 = vpack.c.bf16 %v1543_v52, %v1542_v51  ;;  %v7054_v62 = vpack.c.bf16 %v1575_v56, %v1574_v55  ;;  %v1569_v51 = vld [vmem:[%s8186_s0 + $0xf8] sm:$0xff]  ;;  %v1600_v52 = vld [vmem:[%s8186_s0 + $0x1f0] sm:$0xff]  ;;  %v5933_v56 = vpack.c.bf16 %v1551_v42, %v1550_v40 }
  0xcc   :  { %v1601_v55 = vld [vmem:[%s8186_s0 + $0x1f8] sm:$0xff] }
  0xce   :  { %1395 = vmatpush1.bf16.msra.mxu0 %v6548_v63  ;;  %1518 = vmatpush1.bf16.msra.mxu1 %v6551_v0  ;;  %v1544_v63 = vld [vmem:[%s8186_s0 + $0x30] sm:$0xff]  ;;  %v1545_v0 = vld [vmem:[%s8186_s0 + $0x38] sm:$0xff] }
  0xcf   :  { %1396 = vmatprep.subr.bf16.mxu0 %v6556_v1  ;;  %1519 = vmatprep.subr.bf16.mxu1 %v6559_v2  ;;  %v7064_v1 = vpack.c.bf16 %v1561_v58, %v1560_v57  ;;  %v7066_v2 = vpack.c.bf16 %v1593_v60, %v1592_v59  ;;  %v7191_v57 = vpack.c.bf16 %v1583_v47, %v1582_v46  ;;  %v1552_v60 = vld [vmem:[%s8186_s0 + $0x70] sm:$0xff] }
  0xd0   :  { %v5935_v58 = vpack.c.bf16 %v1569_v51, %v1568_v48  ;;  %v7194_v59 = vpack.c.bf16 %v1601_v55, %v1600_v52 }
  0xd2   :  { %1397 = vmatpush1.bf16.msra.mxu0 %v6554_v3  ;;  %1520 = vmatpush1.bf16.msra.mxu1 %v6557_v4  ;;  %v1576_v3 = vld [vmem:[%s8186_s0 + $0x130] sm:$0xff]  ;;  %v1577_v4 = vld [vmem:[%s8186_s0 + $0x138] sm:$0xff] }
  0xd3   :  { %1398 = vmatprep.subr.bf16.mxu0 %v6562_v5  ;;  %1521 = vmatprep.subr.bf16.mxu1 %v6565_v6  ;;  %v1562_v5 = vld [vmem:[%s8186_s0 + $0xc0] sm:$0xff]  ;;  %v1563_v6 = vld [vmem:[%s8186_s0 + $0xc8] sm:$0xff] }
  0xd6   :  { %1399 = vmatpush1.bf16.msra.mxu0 %v6560_v7  ;;  %1522 = vmatpush1.bf16.msra.mxu1 %v6563_v8  ;;  %v1594_v7 = vld [vmem:[%s8186_s0 + $0x1c0] sm:$0xff]  ;;  %v1595_v8 = vld [vmem:[%s8186_s0 + $0x1c8] sm:$0xff] }
  0xd7   :  { %1400 = vmatprep.subr.bf16.mxu0 %v6568_v10  ;;  %1523 = vmatprep.subr.bf16.mxu1 %v6571_v11  ;;  %v7088_v10 = vpack.c.bf16 %v1545_v0, %v1544_v63  ;;  %v7090_v11 = vpack.c.bf16 %v1577_v4, %v1576_v3  ;;  %v1553_v63 = vld [vmem:[%s8186_s0 + $0x78] sm:$0xff]  ;;  %v1584_v0 = vld [vmem:[%s8186_s0 + $0x170] sm:$0xff] }
  0xd8   :  { %v5937_v3 = vpack.c.bf16 %v1553_v63, %v1552_v60  ;;  %v1585_v4 = vld [vmem:[%s8186_s0 + $0x178] sm:$0xff] }
  0xda   :  { %1401 = vmatpush1.bf16.msra.mxu0 %v6566_v12  ;;  %1524 = vmatpush1.bf16.msra.mxu1 %v6569_v13  ;;  %v1546_v12 = vld [vmem:[%s8186_s0 + $0x40] sm:$0xff]  ;;  %v1547_v13 = vld [vmem:[%s8186_s0 + $0x48] sm:$0xff] }
  0xdb   :  { %1402 = vmatprep.subr.bf16.mxu0 %v6574_v14  ;;  %1525 = vmatprep.subr.bf16.mxu1 %v6577_v15  ;;  %v7100_v14 = vpack.c.bf16 %v1563_v6, %v1562_v5  ;;  %v7102_v15 = vpack.c.bf16 %v1595_v8, %v1594_v7  ;;  %v7124_v23 = vpack.c.bf16 %v1547_v13, %v1546_v12 }
  0xdc   :  { %v7210_v5 = vpack.c.bf16 %v1585_v4, %v1584_v0 }
  0xde   :  { %1403 = vmatpush1.bf16.msra.mxu0 %v6572_v16  ;;  %1526 = vmatpush1.bf16.msra.mxu1 %v6575_v17  ;;  %v1578_v16 = vld [vmem:[%s8186_s0 + $0x140] sm:$0xff]  ;;  %v1579_v17 = vld [vmem:[%s8186_s0 + $0x148] sm:$0xff] }
  0xdf   :  { %1404 = vmatprep.subr.bf16.mxu0 %v6580_v18  ;;  %1527 = vmatprep.subr.bf16.mxu1 %v6583_v19  ;;  %v1564_v18 = vld [vmem:[%s8186_s0 + $0xd0] sm:$0xff]  ;;  %v1565_v19 = vld [vmem:[%s8186_s0 + $0xd8] sm:$0xff]  ;;  %v7126_v24 = vpack.c.bf16 %v1579_v17, %v1578_v16 }
  0xe0   :  { %v7136_v9 = vpack.c.bf16 %v1565_v19, %v1564_v18 }
  0xe2   :  { %1405 = vmatpush1.bf16.msra.mxu0 %v6578_v25  ;;  %1528 = vmatpush1.bf16.msra.mxu1 %v6581_v26  ;;  %v1548_v25 = vld [vmem:[%s8186_s0 + $0x50] sm:$0xff]  ;;  %v1549_v26 = vld [vmem:[%s8186_s0 + $0x58] sm:$0xff] }
  0xe3   :  { %5908 = vmatprep.subr.bf16.mxu0 %v6956_v28  ;;  %5940 = vmatprep.subr.bf16.mxu1 %v6958_v29 }
  0xe5   :  { %1407 = vmatmul.mubr.bf16.vlgmr.msra.gmra.mrb[0].mxu0 %v138_v36  ;;  %1530 = vmatmul.mubr.bf16.vlgmr.msra.gmra.mrb[0].mxu1 %v138_v36  ;;  %v5929_v36 = vpack.c.bf16 %v1549_v26, %v1548_v25 }
  0xe6   :  { %5910 = vmatpush3.bf16.msra.mxu0 %v6980_v37  ;;  %5942 = vmatpush3.bf16.msra.mxu1 %v6982_v38 }
  0xe7   :  { %5912 = vmatprep.subr.bf16.mxu0 %v6992_v41  ;;  %5944 = vmatprep.subr.bf16.mxu1 %v6994_v22 }
  0xea   :  { %5914 = vmatpush3.bf16.msra.mxu0 %v7016_v49  ;;  %5946 = vmatpush3.bf16.msra.mxu1 %v7018_v50 }
  0xeb   :  { %5916 = vmatprep.subr.bf16.mxu0 %v7028_v53  ;;  %5948 = vmatprep.subr.bf16.mxu1 %v7030_v54 }
  0xee   :  { %5918 = vmatpush3.bf16.msra.mxu0 %v7052_v61  ;;  %5950 = vmatpush3.bf16.msra.mxu1 %v7054_v62 }
  0xef   :  { %5920 = vmatprep.subr.bf16.mxu0 %v7064_v1  ;;  %5952 = vmatprep.subr.bf16.mxu1 %v7066_v2 }
  0xf2   :  { %5922 = vmatpush3.bf16.msra.mxu0 %v7088_v10  ;;  %5954 = vmatpush3.bf16.msra.mxu1 %v7090_v11 }
  0xf3   :  { %5924 = vmatprep.subr.bf16.mxu0 %v7100_v14  ;;  %5956 = vmatprep.subr.bf16.mxu1 %v7102_v15 }
  0xf6   :  { %5926 = vmatpush3.bf16.msra.mxu0 %v7124_v23  ;;  %5958 = vmatpush3.bf16.msra.mxu1 %v7126_v24 }
  0xf7   :  { %5928 = vmatprep.subr.bf16.mxu0 %v7136_v9  ;;  %5960 = vmatprep.subr.bf16.mxu1 %v7138_v27 }
  0xfa   :  { %5930 = vmatpush3.bf16.msra.mxu0 %v5929_v36  ;;  %5962 = vmatpush3.bf16.msra.mxu1 %v7160_v39 }
  0xfb   :  { %5932 = vmatprep.subr.bf16.mxu0 %v5931_v44  ;;  %5964 = vmatprep.subr.bf16.mxu1 %v7170_v45 }
  0xfe   :  { %5934 = vmatpush3.bf16.msra.mxu0 %v5933_v56  ;;  %5966 = vmatpush3.bf16.msra.mxu1 %v7191_v57 }
  0xff   :  { %5936 = vmatprep.subr.bf16.mxu0 %v5935_v58  ;;  %5968 = vmatprep.subr.bf16.mxu1 %v7194_v59 }
 0x102   :  { %5938 = vmatpush3.bf16.msra.mxu0 %v5937_v3  ;;  %5970 = vmatpush3.bf16.msra.mxu1 %v7210_v5 }
 0x103   :  { %5972 = vmatprep.subr.bf16.mxu0 %v6956_v28  ;;  %v7239_v28 = vld [vmem:[%s8187_s30 + $0x8] sm:$0xff] }
 0x104   :  { %1759 = vmatprep.subr.mxu1 %v7239_v28 }
 0x1b8   :  { %v7214_v6 = vpop.f32.mrb[0].mxu0  ;;  %v7216_v7 = vpop.f32.mrb[0].mxu1 }
 0x1b9   :  { %v7218_v8 = vpop.f32.mrb[1].mxu0  ;;  %v7220_v12 = vpop.f32.mrb[1].mxu1 }
 0x1ba   :  { %v1412_v13 = vpop.f32.mrb[2].mxu0  ;;  %v1535_v16 = vpop.f32.mrb[2].mxu1  ;;  %1670 = vmatprep.mubr.f32.mxu0 %v7218_v8  ;;  %1740 = vmatprep.mubr.f32.mxu1 %v7220_v12 }
 0x1bb   :  { %v1413_v17 = vpop.f32.mrb[3].mxu0  ;;  %v1536_v18 = vpop.f32.mrb[3].mxu1  ;;  %1671 = vmatmul.mubr.f32.vlgmr.msra.gmra.mrb[4].mxu0 %v7214_v6  ;;  %1741 = vmatmul.mubr.f32.vlgmr.msra.gmra.mrb[4].mxu1 %v7216_v7  ;;  %v6587_v13 = vld [vmem:[%s8189_s29 + $0x10] ss:$8 sps:$4 sm:$0xff]   ;;  %v6592_v16 = vld [vmem:[%s8189_s29 + $0x24] ss:$8 sps:$4 sm:$0xff]  }
 0x1bc   :  { %5974 = vmatpush3.bf16.msra.mxu0 %v6980_v37  ;;  %v7245_v37 = vld [vmem:[%s8187_s30] sm:$0xff]  ;;  %v6595_v18 = vld [vmem:[%s8189_s29 + $0x34] ss:$8 sps:$4 sm:$0xff]  }
 0x1bd   :  { %5976 = vmatprep.subr.bf16.mxu0 %v6992_v41  ;;  %v7250_v41 = vld [vmem:[%s8187_s30 + $0x18] sm:$0xff]  ;;  %1760 = vmatpush1.msra.mxu1 %v7245_v37  ;;  %s8190_s30 = sld [smem:[#allocation13_spill]]  ;;  %v6590_v17 = vld [vmem:[%s8189_s29 + $0x20] ss:$8 sps:$4 sm:$0xff]  }
 0x1be   :  { %1830 = vmatprep.subr.mxu1 %v7250_v41 }
 0x1c0   :  { %5978 = vmatpush3.bf16.msra.mxu0 %v7016_v49  ;;  %v6768_v49 = vmov 0.0  }
 0x1c1   :  { %5980 = vmatprep.subr.bf16.mxu0 %v7028_v53  ;;  %1823 = vmatprep.mubr.f32.mxu1 %v6768_v49 }
 0x1c4   :  { %5982 = vmatpush3.bf16.msra.mxu0 %v7052_v61 }
 0x1c5   :  { %5984 = vmatprep.subr.bf16.mxu0 %v7064_v1 }
 0x1c8   :  { %5986 = vmatpush3.bf16.msra.mxu0 %v7088_v10 }
 0x1c9   :  { %5988 = vmatprep.subr.bf16.mxu0 %v7100_v14 }
 0x1cc   :  { %5990 = vmatpush3.bf16.msra.mxu0 %v7124_v23 }
 0x1cd   :  { %5992 = vmatprep.subr.bf16.mxu0 %v7136_v9 }
 0x1d0   :  { %5994 = vmatpush3.bf16.msra.mxu0 %v5929_v36 }
 0x1d1   :  { %5996 = vmatprep.subr.bf16.mxu0 %v5931_v44 }
 0x1d4   :  { %5998 = vmatpush3.bf16.msra.mxu0 %v5933_v56 }
 0x1d5   :  { %6000 = vmatprep.subr.bf16.mxu0 %v5935_v58 }
 0x1d8   :  { %6002 = vmatpush3.bf16.msra.mxu0 %v5937_v3  ;;  %v2073_v3 = vld [vmem:[%s8188_s28] sm:$0x1] }
 0x1d9   :  { %2080 = vmatprep.subr.mxu0 %v7239_v28 }
 0x28e   :  { %v5295_v53 = vpop.f32.mrb[4].mxu0  ;;  %v5330_v61 = vpop.f32.mrb[4].mxu1 }
 0x28f   :  { %v5296_v1 = vpop.f32.mrb[5].mxu0  ;;  %v5331_v10 = vpop.f32.mrb[5].mxu1 }
 0x290   :  { %v5297_v14 = vadd.f32 %v5296_v1, %v5295_v53  ;;  %v5332_v19 = vadd.f32 %v5331_v10, %v5330_v61  ;;  %v6601_v53 = vld [vmem:[%s8189_s29 + $0x54] ss:$8 sps:$4 sm:$0xff]   ;;  %v6599_v61 = vld [vmem:[%s8189_s29 + $0x50] ss:$8 sps:$4 sm:$0xff]   ;;  %v6604_v1 = vld [vmem:[%s8189_s29 + $0x64] ss:$8 sps:$4 sm:$0xff]  }
 0x291   :  { %v6602_v10 = vld [vmem:[%s8189_s29 + $0x60] ss:$8 sps:$4 sm:$0xff]  }
 0x292   :  { %v1743_v20 = vadd.f32 %v5332_v19, %v5297_v14  ;;  %v6607_v14 = vld [vmem:[%s8189_s29 + $0x74] ss:$8 sps:$4 sm:$0xff]   ;;  %v6605_v19 = vld [vmem:[%s8189_s29 + $0x70] ss:$8 sps:$4 sm:$0xff]  }
 0x294   :  { %v1747_v21 = vsel %vm1746_vm0, %v1743_v20, 0.0  ;;  %v6610_v20 = vld [vmem:[%s8189_s29 + $0x84] ss:$8 sps:$4 sm:$0xff]  }
 0x295   :  { %v1748_v23 = vrot.slane %v1747_v21, 4 }
 0x297   :  { %v1749_v25 = vadd.f32 %v1748_v23, %v1747_v21  ;;  %v6608_v21 = vld [vmem:[%s8189_s29 + $0x80] ss:$8 sps:$4 sm:$0xff]   ;;  %v6613_v23 = vld [vmem:[%s8189_s29 + $0x94] ss:$8 sps:$4 sm:$0xff]  }
 0x299   :  { %v1750_v26 = vrot.slane %v1749_v25, 2 }
 0x29b   :  { %v1751_v9 = vadd.f32 %v1750_v26, %v1749_v25  ;;  %v6611_v25 = vld [vmem:[%s8189_s29 + $0x90] ss:$8 sps:$4 sm:$0xff]   ;;  %v6616_v26 = vld [vmem:[%s8189_s29 + $0xa4] ss:$8 sps:$4 sm:$0xff]  }
 0x29d   :  { %v1752_v30 = vrot.slane %v1751_v9, 1 }
 0x29f   :  { %v1753_v31 = vadd.f32 %v1752_v30, %v1751_v9  ;;  %v6614_v9 = vld [vmem:[%s8189_s29 + $0xa0] ss:$8 sps:$4 sm:$0xff]   ;;  %v6619_v30 = vld [vmem:[%s8189_s29 + $0xb4] ss:$8 sps:$4 sm:$0xff]  }
 0x2a1   :  { %v1754_v32 = vmul.f32 0.0078125, %v1753_v31  ;;  %v6617_v31 = vld [vmem:[%s8189_s29 + $0xb0] ss:$8 sps:$4 sm:$0xff]  }
 0x2a3   :  { %5150 = vmatmul.mubr.msk.f32.vlgmr.msra.gmra.mrb[6].mxu1 %vm1755_vm1, %v1754_v32 }
 0x2a4   :  { %1831 = vmatpush1.msra.mxu1 %v7260_v33  ;;  %1894 = vmatprep.mubr.f32.mxu1 %v6768_v49 }
 0x2a5   :  { %6004 = vmatprep.subr.bf16.mxu1 %v6958_v29  ;;  %v7284_v29 = vsub.s32 0, %v6919_v43 }
 0x2a7   :  { %5151 = vmatmul.mubr.msk.f32.vlgmr.msra.gmra.mrb[8].mxu1 %vm1755_vm1, %v1754_v32  ;;  %v6622_v32 = vld [vmem:[%s8189_s29 + $0xc4] ss:$8 sps:$4 sm:$0xff]  }
 0x2a8   :  { %6006 = vmatpush3.bf16.msra.mxu1 %v6982_v38 }
 0x2a9   :  { %6008 = vmatprep.subr.bf16.mxu1 %v6994_v22 }
 0x2ac   :  { %6010 = vmatpush3.bf16.msra.mxu1 %v7018_v50 }
 0x2ad   :  { %6012 = vmatprep.subr.bf16.mxu1 %v7030_v54 }
 0x2b0   :  { %6014 = vmatpush3.bf16.msra.mxu1 %v7054_v62 }
 0x2b1   :  { %6016 = vmatprep.subr.bf16.mxu1 %v7066_v2 }
 0x2b4   :  { %6018 = vmatpush3.bf16.msra.mxu1 %v7090_v11 }
 0x2b5   :  { %6020 = vmatprep.subr.bf16.mxu1 %v7102_v15 }
 0x2b8   :  { %6022 = vmatpush3.bf16.msra.mxu1 %v7126_v24 }
 0x2b9   :  { %6024 = vmatprep.subr.bf16.mxu1 %v7138_v27 }
 0x2bc   :  { %6026 = vmatpush3.bf16.msra.mxu1 %v7160_v39 }
 0x2bd   :  { %6028 = vmatprep.subr.bf16.mxu1 %v7170_v45 }
 0x2c0   :  { %6030 = vmatpush3.bf16.msra.mxu1 %v7191_v57 }
 0x2c1   :  { %6032 = vmatprep.subr.bf16.mxu1 %v7194_v59 }
 0x2c4   :  { %6034 = vmatpush3.bf16.msra.mxu1 %v7210_v5 }
 0x2c5   :  { %2151 = vmatprep.subr.mxu1 %v7250_v41 }
 0x376   :  { %v1825_v38 = vpop.f32.mrb[6].mxu1 }
 0x377   :  { %v1904_v22 = vrot.slane %v1825_v38, %v7284_v29  ;;  %v1827_v50 = vpop.f32.mrb[7].mxu1  ;;  %v6625_v38 = vld [vmem:[%s8189_s29 + $0xd4] ss:$8 sps:$4 sm:$0xff]  }
 0x378   :  { %v1908_v54 = vrot.slane %v1827_v50, %v7284_v29  ;;  %v6628_v50 = vld [vmem:[%s8189_s29 + $0xe4] ss:$8 sps:$4 sm:$0xff]  }
 0x379   :  { %v7289_v62 = vsub.f32 %v7214_v6, %v1904_v22  ;;  %v6586_v6 = vld [vmem:[%s8189_s29 + $0x4] ss:$8 sps:$4 sm:$0xff]   ;;  %v6623_v22 = vld [vmem:[%s8189_s29 + $0xd0] ss:$8 sps:$4 sm:$0xff]  }
 0x37a   :  { %v7292_v2 = vsub.f32 %v7218_v8, %v1908_v54  ;;  %v1896_v11 = vpop.f32.mrb[8].mxu1  ;;  %v6584_v8 = vld [vmem:[%s8189_s29] ss:$8 sps:$4 sm:$0xff]  }
 0x37b   :  { %v1912_v15 = vrot.slane %v1896_v11, %v7284_v29  ;;  %v1898_v24 = vpop.f32.mrb[9].mxu1  ;;  %v1921_v34 = vmul.f32 %v7289_v62, %v7289_v62  ;;  %v6626_v54 = vld [vmem:[%s8189_s29 + $0xe0] ss:$8 sps:$4 sm:$0xff]   ;;  %v6631_v11 = vld [vmem:[%s8189_s29 + $0xf4] ss:$8 sps:$4 sm:$0xff]  }
 0x37c   :  { %v1916_v27 = vrot.slane %v1898_v24, %v7284_v29  ;;  %v1922_v43 = vmul.f32 %v7292_v2, %v7292_v2  ;;  %v6634_v24 = vld [vmem:[%s8189_s29 + $0x104] ss:$8 sps:$4 sm:$0xff]  }
 0x37d   :  { %v7301_v35 = vsub.f32 %v7216_v7, %v1912_v15  ;;  %v2242_v7 = vld [vmem:[%s8190_s30] sm:$0x1]  ;;  %v6629_v15 = vld [vmem:[%s8189_s29 + $0xf0] ss:$8 sps:$4 sm:$0xff]  }
 0x37e   :  { %v7304_v36 = vsub.f32 %v7220_v12, %v1916_v27  ;;  %1989 = vmatprep.mubr.f32.mxu0 %v1922_v43  ;;  %v6589_v12 = vld [vmem:[%s8189_s29 + $0x14] ss:$8 sps:$4 sm:$0xff]   ;;  %v2906_v27 = vld [vmem:[%s8191_s4 + $0x80] sm:$0xff]  ;;  %v2907_v43 = vld [vmem:[%s8191_s4 + $0x88] sm:$0xff] }
 0x37f   :  { %1990 = vmatmul.mubr.f32.vlgmr.msra.gmra.mrb[6].mxu0 %v1921_v34  ;;  %v1923_v40 = vmul.f32 %v7301_v35, %v7301_v35  ;;  %v2890_v34 = vld [vmem:[%s8191_s4] sm:$0xff] }
 0x380   :  { %v1924_v39 = vmul.f32 %v7304_v36, %v7304_v36  ;;  %2081 = vmatpush1.msra.mxu0 %v7245_v37  ;;  %2144 = vmatprep.mubr.f32.mxu0 %v6768_v49 }
 0x381   :  { %2246 = vmatprep.subr.mxu0 %v7239_v28  ;;  %v6593_v28 = vld [vmem:[%s8189_s29 + $0x30] ss:$8 sps:$4 sm:$0xff]  }
 0x382   :  { %2059 = vmatprep.mubr.f32.mxu1 %v1924_v39  ;;  %v7439_v39 = vpack.c.bf16 %v2907_v43, %v2906_v27 }
 0x383   :  { %2060 = vmatmul.mubr.f32.vlgmr.msra.gmra.mrb[10].mxu1 %v1923_v40  ;;  %v2891_v40 = vld [vmem:[%s8191_s4 + $0x8] sm:$0xff] }
 0x384   :  { %2152 = vmatpush1.msra.mxu1 %v7260_v33  ;;  %2215 = vmatprep.mubr.f32.mxu1 %v6768_v49 }
 0x385   :  { %2317 = vmatprep.subr.mxu1 %v7250_v41  ;;  %v6596_v41 = vld [vmem:[%s8189_s29 + $0x40] ss:$8 sps:$4 sm:$0xff]  }
 0x452   :  { %v5365_v42 = vpop.f32.mrb[6].mxu0 }
 0x453   :  { %v5366_v44 = vpop.f32.mrb[7].mxu0 }
 0x454   :  { %v5367_v45 = vadd.f32 %v5366_v44, %v5365_v42  ;;  %v2908_v42 = vld [vmem:[%s8191_s4 + $0x90] sm:$0xff]  ;;  %v2909_v44 = vld [vmem:[%s8191_s4 + $0x98] sm:$0xff] }
 0x456   :  { %v5400_v46 = vpop.f32.mrb[10].mxu1 }
 0x457   :  { %v5401_v47 = vpop.f32.mrb[11].mxu1 }
 0x458   :  { %v5402_v48 = vadd.f32 %v5401_v47, %v5400_v46  ;;  %v7452_v46 = vpack.c.bf16 %v2909_v44, %v2908_v42  ;;  %v2892_v47 = vld [vmem:[%s8191_s4 + $0x10] sm:$0xff] }
 0x45a   :  { %v2062_v51 = vadd.f32 %v5402_v48, %v5367_v45  ;;  %v7450_v45 = vpack.c.bf16 %v2891_v40, %v2890_v34  ;;  %v2893_v48 = vld [vmem:[%s8191_s4 + $0x18] sm:$0xff] }
 0x45c   :  { %v2065_v52 = vsel %vm1746_vm0, %v2062_v51, 0.0  ;;  %v2910_v51 = vld [vmem:[%s8191_s4 + $0xa0] sm:$0xff]  ;;  %vm4608_vm0 = vcmask 517120  }
 0x45d   :  { %v2066_v55 = vrot.slane %v2065_v52, 4 }
 0x45f   :  { %v2067_v56 = vadd.f32 %v2066_v55, %v2065_v52  ;;  %v2911_v52 = vld [vmem:[%s8191_s4 + $0xa8] sm:$0xff]  ;;  %v7468_v55 = vpack.c.bf16 %v2893_v48, %v2892_v47 }
 0x461   :  { %v2068_v57 = vrot.slane %v2067_v56, 2 }
 0x463   :  { %v2069_v58 = vadd.f32 %v2068_v57, %v2067_v56  ;;  %v7471_v56 = vpack.c.bf16 %v2911_v52, %v2910_v51  ;;  %v2894_v57 = vld [vmem:[%s8191_s4 + $0x20] sm:$0xff] }
 0x465   :  { %v2070_v59 = vrot.slane %v2069_v58, 1 }
 0x467   :  { %v2071_v60 = vadd.f32 %v2070_v59, %v2069_v58  ;;  %v2895_v58 = vld [vmem:[%s8191_s4 + $0x28] sm:$0xff]  ;;  %v2912_v59 = vld [vmem:[%s8191_s4 + $0xb0] sm:$0xff] }
 0x469   :  { %v2072_v63 = vmul.f32 0.0078125, %v2071_v60  ;;  %v2913_v60 = vld [vmem:[%s8191_s4 + $0xb8] sm:$0xff] }
 0x46b   :  { %v2074_v0 = vadd.f32 1e-05, %v2072_v63  ;;  %v7486_v63 = vpack.c.bf16 %v2895_v58, %v2894_v57 }
 0x46d   :  { %6706 = vrsqrt.f32 %v2074_v0  ;;  %v7489_v0 = vpack.c.bf16 %v2913_v60, %v2912_v59 }
 0x477   :  { %v6707_v4 = vpop.eup %6706 }
 0x478   :  { %v2076_v5 = vmul.f32 %v6707_v4, %v2073_v3  ;;  %v2896_v3 = vld [vmem:[%s8191_s4 + $0x30] sm:$0xff]  ;;  %v2897_v4 = vld [vmem:[%s8191_s4 + $0x38] sm:$0xff] }
 0x47a   :  { %5152 = vmatmul.mubr.msk.f32.vlgmr.msra.gmra.mrb[8].mxu0 %vm1755_vm1, %v2076_v5  ;;  %5153 = vmatmul.mubr.msk.f32.vlgmr.msra.gmra.mrb[12].mxu1 %vm1755_vm1, %v2076_v5  ;;  %v2914_v5 = vld [vmem:[%s8191_s4 + $0xc0] sm:$0xff] }
 0x47b   :  { %2247 = vmatpush1.msra.mxu0 %v7245_v37  ;;  %2310 = vmatprep.mubr.f32.mxu0 %v6768_v49  ;;  %v6598_v37 = vld [vmem:[%s8189_s29 + $0x44] ss:$8 sps:$4 sm:$0xff]  }
 0x47c   :  { %2318 = vmatpush1.msra.mxu1 %v7260_v33  ;;  %2381 = vmatprep.mubr.f32.mxu1 %v6768_v49  ;;  %v6620_v33 = vld [vmem:[%s8189_s29 + $0xc0] ss:$8 sps:$4 sm:$0xff]  }
 0x47d   :  { %2808 = vmatprep.subr.bf16.mxu0 %v6586_v6  ;;  %6036 = vmatprep.subr.bf16.mxu1 %v7439_v39  ;;  %v2915_v6 = vld [vmem:[%s8191_s4 + $0xc8] sm:$0xff] }
 0x47e   :  { %5154 = vmatmul.mubr.msk.f32.vlgmr.msra.gmra.mrb[10].mxu0 %vm1755_vm1, %v2242_v7  ;;  %5155 = vmatmul.mubr.msk.f32.vlgmr.msra.gmra.mrb[14].mxu1 %vm1755_vm1, %v2242_v7  ;;  %v7504_v7 = vpack.c.bf16 %v2897_v4, %v2896_v3 }
 0x47f   :  { %2809 = vmatpush1.bf16.msra.mxu0 %v6584_v8  ;;  %6038 = vmatpush3.bf16.msra.mxu1 %v7450_v45  ;;  %v7507_v8 = vpack.c.bf16 %v2915_v6, %v2914_v5  ;;  %v6637_v5 = vld [vmem:[%s8189_s29 + $0x114] ss:$8 sps:$4 sm:$0xff]  }
 0x480   :  { %2810 = vmatprep.subr.bf16.mxu0 %v6589_v12  ;;  %6040 = vmatprep.subr.bf16.mxu1 %v7452_v46  ;;  %v2898_v12 = vld [vmem:[%s8191_s4 + $0x40] sm:$0xff] }
 0x483   :  { %2811 = vmatpush1.bf16.msra.mxu0 %v6587_v13  ;;  %6042 = vmatpush3.bf16.msra.mxu1 %v7468_v55  ;;  %v2899_v13 = vld [vmem:[%s8191_s4 + $0x48] sm:$0xff] }
 0x484   :  { %2812 = vmatprep.subr.bf16.mxu0 %v6592_v16  ;;  %6044 = vmatprep.subr.bf16.mxu1 %v7471_v56  ;;  %v2916_v16 = vld [vmem:[%s8191_s4 + $0xd0] sm:$0xff] }
 0x487   :  { %2813 = vmatpush1.bf16.msra.mxu0 %v6590_v17  ;;  %6046 = vmatpush3.bf16.msra.mxu1 %v7486_v63  ;;  %v2917_v17 = vld [vmem:[%s8191_s4 + $0xd8] sm:$0xff] }
 0x488   :  { %2814 = vmatprep.subr.bf16.mxu0 %v6595_v18  ;;  %6048 = vmatprep.subr.bf16.mxu1 %v7489_v0  ;;  %v7522_v18 = vpack.c.bf16 %v2899_v13, %v2898_v12  ;;  %v6635_v12 = vld [vmem:[%s8189_s29 + $0x110] ss:$8 sps:$4 sm:$0xff]   ;;  %v6640_v13 = vld [vmem:[%s8189_s29 + $0x124] ss:$8 sps:$4 sm:$0xff]  }
 0x48b   :  { %2815 = vmatpush1.bf16.msra.mxu0 %v6593_v28  ;;  %6050 = vmatpush3.bf16.msra.mxu1 %v7504_v7  ;;  %v7525_v28 = vpack.c.bf16 %v2917_v17, %v2916_v16  ;;  %v6638_v16 = vld [vmem:[%s8189_s29 + $0x120] ss:$8 sps:$4 sm:$0xff]   ;;  %v6643_v17 = vld [vmem:[%s8189_s29 + $0x134] ss:$8 sps:$4 sm:$0xff]  }
 0x48c   :  { %2816 = vmatprep.subr.bf16.mxu0 %v6598_v37  ;;  %6052 = vmatprep.subr.bf16.mxu1 %v7507_v8  ;;  %v2900_v37 = vld [vmem:[%s8191_s4 + $0x50] sm:$0xff] }
 0x48f   :  { %2817 = vmatpush1.bf16.msra.mxu0 %v6596_v41  ;;  %v2901_v41 = vld [vmem:[%s8191_s4 + $0x58] sm:$0xff]  ;;  %6054 = vmatpush3.bf16.msra.mxu1 %v7522_v18 }
 0x490   :  { %2818 = vmatprep.subr.bf16.mxu0 %v6601_v53  ;;  %v2918_v53 = vld [vmem:[%s8191_s4 + $0xe0] sm:$0xff]  ;;  %6056 = vmatprep.subr.bf16.mxu1 %v7525_v28 }
 0x493   :  { %2819 = vmatpush1.bf16.msra.mxu0 %v6599_v61  ;;  %v2919_v61 = vld [vmem:[%s8191_s4 + $0xe8] sm:$0xff] }
 0x494   :  { %2820 = vmatprep.subr.bf16.mxu0 %v6604_v1  ;;  %v7540_v1 = vpack.c.bf16 %v2901_v41, %v2900_v37  ;;  %v6641_v37 = vld [vmem:[%s8189_s29 + $0x130] ss:$8 sps:$4 sm:$0xff]   ;;  %v6646_v41 = vld [vmem:[%s8189_s29 + $0x144] ss:$8 sps:$4 sm:$0xff]  }
 0x496   :  { %6058 = vmatpush3.bf16.msra.mxu1 %v7540_v1 }
 0x497   :  { %2821 = vmatpush1.bf16.msra.mxu0 %v6602_v10  ;;  %v7543_v10 = vpack.c.bf16 %v2919_v61, %v2918_v53  ;;  %v6644_v53 = vld [vmem:[%s8189_s29 + $0x140] ss:$8 sps:$4 sm:$0xff]   ;;  %v6649_v61 = vld [vmem:[%s8189_s29 + $0x154] ss:$8 sps:$4 sm:$0xff]  }
 0x498   :  { %2822 = vmatprep.subr.bf16.mxu0 %v6607_v14  ;;  %v2902_v14 = vld [vmem:[%s8191_s4 + $0x60] sm:$0xff] }
 0x499   :  { %6060 = vmatprep.subr.bf16.mxu1 %v7543_v10 }
 0x49b   :  { %2823 = vmatpush1.bf16.msra.mxu0 %v6605_v19  ;;  %v2903_v19 = vld [vmem:[%s8191_s4 + $0x68] sm:$0xff] }
 0x49c   :  { %2824 = vmatprep.subr.bf16.mxu0 %v6610_v20  ;;  %v2920_v20 = vld [vmem:[%s8191_s4 + $0xf0] sm:$0xff] }
 0x49f   :  { %2825 = vmatpush1.bf16.msra.mxu0 %v6608_v21  ;;  %v2921_v21 = vld [vmem:[%s8191_s4 + $0xf8] sm:$0xff] }
 0x4a0   :  { %2826 = vmatprep.subr.bf16.mxu0 %v6613_v23  ;;  %v7558_v23 = vpack.c.bf16 %v2903_v19, %v2902_v14  ;;  %v6647_v14 = vld [vmem:[%s8189_s29 + $0x150] ss:$8 sps:$4 sm:$0xff]   ;;  %v6652_v19 = vld [vmem:[%s8189_s29 + $0x164] ss:$8 sps:$4 sm:$0xff]  }
 0x4a2   :  { %6062 = vmatpush3.bf16.msra.mxu1 %v7558_v23 }
 0x4a3   :  { %2827 = vmatpush1.bf16.msra.mxu0 %v6611_v25  ;;  %v7561_v25 = vpack.c.bf16 %v2921_v21, %v2920_v20  ;;  %v6650_v20 = vld [vmem:[%s8189_s29 + $0x160] ss:$8 sps:$4 sm:$0xff]   ;;  %v6655_v21 = vld [vmem:[%s8189_s29 + $0x174] ss:$8 sps:$4 sm:$0xff]  }
 0x4a4   :  { %2828 = vmatprep.subr.bf16.mxu0 %v6616_v26 }
 0x4a5   :  { %6064 = vmatprep.subr.bf16.mxu1 %v7561_v25 }
 0x4a7   :  { %2829 = vmatpush1.bf16.msra.mxu0 %v6614_v9 }
 0x4a8   :  { %2830 = vmatprep.subr.bf16.mxu0 %v6619_v30 }
 0x4ab   :  { %2831 = vmatpush1.bf16.msra.mxu0 %v6617_v31 }
 0x4ac   :  { %2832 = vmatprep.subr.bf16.mxu0 %v6622_v32 }
 0x4af   :  { %2833 = vmatpush1.bf16.msra.mxu0 %v6620_v33 }
 0x4b0   :  { %2834 = vmatprep.subr.bf16.mxu0 %v6625_v38 }
 0x4b3   :  { %2835 = vmatpush1.bf16.msra.mxu0 %v6623_v22 }
 0x4b4   :  { %2836 = vmatprep.subr.bf16.mxu0 %v6628_v50 }
 0x4b7   :  { %2837 = vmatpush1.bf16.msra.mxu0 %v6626_v54 }
 0x4b8   :  { %2838 = vmatprep.subr.bf16.mxu0 %v6631_v11 }
 0x4bb   :  { %2839 = vmatpush1.bf16.msra.mxu0 %v6629_v15 }
 0x4bc   :  { %2849 = vmatprep.subr.bf16.mxu0 %v6634_v24 }
 0x54d   :  { %v2146_v26 = vpop.f32.mrb[8].mxu0  ;;  %v2217_v9 = vpop.f32.mrb[12].mxu1 }
 0x54e   :  { %v2225_v30 = vrot.slane %v2146_v26, %v7284_v29  ;;  %v2233_v31 = vrot.slane %v2217_v9, %v7284_v29  ;;  %v2148_v32 = vpop.f32.mrb[9].mxu0  ;;  %v2219_v33 = vpop.f32.mrb[13].mxu1  ;;  %v6653_v26 = vld [vmem:[%s8189_s29 + $0x170] ss:$8 sps:$4 sm:$0xff]   ;;  %v6658_v9 = vld [vmem:[%s8189_s29 + $0x184] ss:$8 sps:$4 sm:$0xff]  }
 0x54f   :  { %v2229_v38 = vrot.slane %v2148_v32, %v7284_v29  ;;  %v2237_v22 = vrot.slane %v2219_v33, %v7284_v29  ;;  %v6659_v32 = vld [vmem:[%s8189_s29 + $0x190] ss:$8 sps:$4 sm:$0xff]   ;;  %v6664_v33 = vld [vmem:[%s8189_s29 + $0x1a4] ss:$8 sps:$4 sm:$0xff]  }
 0x550   :  { %v2238_v11 = vmul.f32 %v2225_v30, %v7289_v62  ;;  %v2240_v15 = vmul.f32 %v2233_v31, %v7301_v35  ;;  %v6656_v30 = vld [vmem:[%s8189_s29 + $0x180] ss:$8 sps:$4 sm:$0xff]   ;;  %v6661_v31 = vld [vmem:[%s8189_s29 + $0x194] ss:$8 sps:$4 sm:$0xff]  }
 0x551   :  { %v2312_v50 = vpop.f32.mrb[10].mxu0  ;;  %v2383_v54 = vpop.f32.mrb[14].mxu1  ;;  %v2239_v40 = vmul.f32 %v2229_v38, %v7292_v2  ;;  %v2241_v42 = vmul.f32 %v2237_v22, %v7304_v36  ;;  %v6632_v36 = vld [vmem:[%s8189_s29 + $0x100] ss:$8 sps:$4 sm:$0xff]   ;;  %v6667_v22 = vld [vmem:[%s8189_s29 + $0x1b4] ss:$8 sps:$4 sm:$0xff]  }
 0x552   :  { %v2391_v24 = vrot.slane %v2312_v50, %v7284_v29  ;;  %v2399_v27 = vrot.slane %v2383_v54, %v7284_v29  ;;  %v2314_v43 = vpop.f32.mrb[11].mxu0  ;;  %v2385_v34 = vpop.f32.mrb[15].mxu1  ;;  %v6662_v38 = vld [vmem:[%s8189_s29 + $0x1a0] ss:$8 sps:$4 sm:$0xff]   ;;  %v6665_v50 = vld [vmem:[%s8189_s29 + $0x1b0] ss:$8 sps:$4 sm:$0xff]  }
 0x553   :  { %v2395_v44 = vrot.slane %v2314_v43, %v7284_v29  ;;  %v2403_v47 = vrot.slane %v2385_v34, %v7284_v29  ;;  %v6670_v54 = vld [vmem:[%s8189_s29 + $0x1c4] ss:$8 sps:$4 sm:$0xff]   ;;  %v6674_v43 = vld [vmem:[%s8189_s29 + $0x1e0] ss:$8 sps:$4 sm:$0xff]   ;;  %v6679_v34 = vld [vmem:[%s8189_s29 + $0x1f4] ss:$8 sps:$4 sm:$0xff]  }
 0x554   :  { %v2404_v48 = vadd.f32 %v2391_v24, %v2238_v11  ;;  %v7577_v51 = vadd.f32 %v2399_v27, %v2240_v15  ;;  %v6668_v11 = vld [vmem:[%s8189_s29 + $0x1c0] ss:$8 sps:$4 sm:$0xff]   ;;  %v6673_v15 = vld [vmem:[%s8189_s29 + $0x1d4] ss:$8 sps:$4 sm:$0xff]   ;;  %v6671_v24 = vld [vmem:[%s8189_s29 + $0x1d0] ss:$8 sps:$4 sm:$0xff]  }
 0x555   :  { %v2405_v62 = vadd.f32 %v2395_v44, %v2239_v40  ;;  %v2407_v52 = vadd.f32 %v2403_v47, %v2241_v42  ;;  %v6676_v27 = vld [vmem:[%s8189_s29 + $0x1e4] ss:$8 sps:$4 sm:$0xff]   ;;  %v6677_v42 = vld [vmem:[%s8189_s29 + $0x1f0] ss:$8 sps:$4 sm:$0xff]  }
 0x556   :  { %vm2408_vm2 = vcmp.gt.f32.partialorder %v2404_v48, 0.0  ;;  %v2412_v35 = vmul.f32 0.01, %v2404_v48  ;;  %v2414_v40 = vmul.f32 0.01, %v7577_v51  ;;  %vm2410_vm5 = vcmp.gt.f32.partialorder %v7577_v51, 0.0 }
 0x557   :  { %v2413_v57 = vmul.f32 0.01, %v2405_v62  ;;  %v2415_v58 = vmul.f32 0.01, %v2407_v52  ;;  %vm2409_vm3 = vcmp.gt.f32.partialorder %v2405_v62, 0.0  ;;  %vm2411_vm4 = vcmp.gt.f32.partialorder %v2407_v52, 0.0 }
 0x558   :  { %v2416_v59 = vsel %vm2408_vm2, %v2404_v48, %v2412_v35  ;;  %v2418_v44 = vsel %vm2410_vm5, %v7577_v51, %v2414_v40  ;;  %v2904_v48 = vld [vmem:[%s8191_s4 + $0x70] sm:$0xff]  ;;  %v2923_v51 = vld [vmem:[%s8192_s27 + $0x8] sm:$0xff] }
 0x559   :  { %v2417_v60 = vsel %vm2409_vm3, %v2405_v62, %v2413_v57  ;;  %v2419_v2 = vsel %vm2411_vm4, %v2407_v52, %v2415_v58  ;;  %v2420_v4 = vpack.c.bf16 %v2416_v59, %v2416_v59  ;;  %v2422_v47 = vpack.c.bf16 %v2418_v44, %v2418_v44  ;;  %v2905_v62 = vld [vmem:[%s8191_s4 + $0x78] sm:$0xff]  ;;  %v6690_v40 = vld [vmem:[%s8150_s11 + $0x68] sm:$0xff]   ;;  %v6692_v44 = vld [vmem:[%s8150_s11 + $0x70] sm:$0xff]  }
 0x55a   :  { %v2421_v3 = vpack.c.bf16 %v2417_v60, %v2417_v60  ;;  %v2423_v6 = vpack.c.bf16 %v2419_v2, %v2419_v2  ;;  %v6065_v52 = vpack.c.bf16 %v2905_v62, %v2904_v48  ;;  %v2925_v60 = vld [vmem:[%s8192_s27 + $0x18] sm:$0xff] }
 0x55b   :  { %v6067_v2 = vpack.c.bf16 %v2925_v60, %v2923_v51  ;;  %v6694_v48 = vld [vmem:[%s8150_s11 + $0x78] sm:$0xff]  }
 0x55c   :  { %2840 = vmatprep.mubr.bf16.mxu0 %v2421_v3  ;;  %6066 = vmatpush3.bf16.msra.mxu1 %v6065_v52  ;;  %v2922_v3 = vld [vmem:[%s8192_s27] sm:$0xff]  ;;  %v6695_v62 = vld [vmem:[%s8150_s11 + $0x38] sm:$0xff]  }
 0x55d   :  { %2841 = vmatmul.mubr.bf16.vlgmr.msra.gmra.mrb[12].mxu0 %v2420_v4  ;;  %6068 = vmatprep.subr.bf16.mxu1 %v6067_v2 }
 0x55e   :  { %2850 = vmatpush1.bf16.msra.mxu0 %v6632_v36  ;;  %2881 = vmatprep.mubr.bf16.mxu0 %v2423_v6  ;;  %v2924_v36 = vld [vmem:[%s8192_s27 + $0x10] sm:$0xff] }
 0x55f   :  { %2851 = vmatprep.subr.bf16.mxu0 %v6637_v5  ;;  %v7694_v4 = vpack.c.bf16 %v2924_v36, %v2922_v3 }
 0x562   :  { %2852 = vmatpush1.bf16.msra.mxu0 %v6635_v12 }
 0x563   :  { %2853 = vmatprep.subr.bf16.mxu0 %v6640_v13 }
 0x566   :  { %2854 = vmatpush1.bf16.msra.mxu0 %v6638_v16 }
 0x567   :  { %2855 = vmatprep.subr.bf16.mxu0 %v6643_v17 }
 0x56a   :  { %2856 = vmatpush1.bf16.msra.mxu0 %v6641_v37 }
 0x56b   :  { %2857 = vmatprep.subr.bf16.mxu0 %v6646_v41 }
 0x56e   :  { %2858 = vmatpush1.bf16.msra.mxu0 %v6644_v53 }
 0x56f   :  { %2859 = vmatprep.subr.bf16.mxu0 %v6649_v61 }
 0x572   :  { %2860 = vmatpush1.bf16.msra.mxu0 %v6647_v14 }
 0x573   :  { %2861 = vmatprep.subr.bf16.mxu0 %v6652_v19 }
 0x576   :  { %2862 = vmatpush1.bf16.msra.mxu0 %v6650_v20 }
 0x577   :  { %2863 = vmatprep.subr.bf16.mxu0 %v6655_v21 }
 0x57a   :  { %2864 = vmatpush1.bf16.msra.mxu0 %v6653_v26 }
 0x57b   :  { %2865 = vmatprep.subr.bf16.mxu0 %v6658_v9 }
 0x57e   :  { %2866 = vmatpush1.bf16.msra.mxu0 %v6656_v30  ;;  %v3170_v30 = vld [vmem:[%s8193_s2] sm:$0x1] }
 0x57f   :  { %2867 = vmatprep.subr.bf16.mxu0 %v6661_v31 }
 0x582   :  { %2868 = vmatpush1.bf16.msra.mxu0 %v6659_v32 }
 0x583   :  { %2869 = vmatprep.subr.bf16.mxu0 %v6664_v33  ;;  %v6680_v33 = vld [vmem:[%s8150_s11 + $0x40] sm:$0xff]  }
 0x586   :  { %2870 = vmatpush1.bf16.msra.mxu0 %v6662_v38  ;;  %v3258_v38 = vld [vmem:[%s8194_s1] sm:$0x1] }
 0x587   :  { %2871 = vmatprep.subr.bf16.mxu0 %v6667_v22  ;;  %v6681_v22 = vld [vmem:[%s8150_s11] sm:$0xff]  }
 0x58a   :  { %2872 = vmatpush1.bf16.msra.mxu0 %v6665_v50  ;;  %v6682_v50 = vld [vmem:[%s8150_s11 + $0x48] sm:$0xff]  }
 0x58b   :  { %2873 = vmatprep.subr.bf16.mxu0 %v6670_v54  ;;  %v6683_v54 = vld [vmem:[%s8150_s11 + $0x8] sm:$0xff]  }
 0x58e   :  { %2874 = vmatpush1.bf16.msra.mxu0 %v6668_v11  ;;  %v6684_v11 = vld [vmem:[%s8150_s11 + $0x50] sm:$0xff]  }
 0x58f   :  { %2875 = vmatprep.subr.bf16.mxu0 %v6673_v15  ;;  %v6685_v15 = vld [vmem:[%s8150_s11 + $0x10] sm:$0xff]  }
 0x592   :  { %2876 = vmatpush1.bf16.msra.mxu0 %v6671_v24  ;;  %v6686_v24 = vld [vmem:[%s8150_s11 + $0x58] sm:$0xff]  }
 0x593   :  { %2877 = vmatprep.subr.bf16.mxu0 %v6676_v27  ;;  %v6687_v27 = vld [vmem:[%s8150_s11 + $0x18] sm:$0xff]  }
 0x596   :  { %2878 = vmatpush1.bf16.msra.mxu0 %v6674_v43  ;;  %v6688_v43 = vld [vmem:[%s8150_s11 + $0x60] sm:$0xff]  }
 0x597   :  { %2879 = vmatprep.subr.bf16.mxu0 %v6679_v34  ;;  %v6689_v34 = vld [vmem:[%s8150_s11 + $0x20] sm:$0xff]  }
 0x59a   :  { %2880 = vmatpush1.bf16.msra.mxu0 %v6677_v42  ;;  %v6691_v42 = vld [vmem:[%s8150_s11 + $0x28] sm:$0xff]  }
 0x59d   :  { %2882 = vmatmul.mubr.bf16.vlgmr.msra.gmra.mrb[12].mxu0 %v2422_v47  ;;  %v6693_v47 = vld [vmem:[%s8150_s11 + $0x30] sm:$0xff]  }
 0x59e   :  { %5669 = vmatprep.mubr.msk.f32.mxu0 %vm6770_vm10, %v6768_v49 }
 0x670   :  { %v2883_v35 = vpop.f32.mrb[12].mxu0 }
 0x671   :  { %v2885_v57 = vpop.f32.mrb[13].mxu0 }
 0x672   :  { %v2887_v58 = vpop.f32.mrb[14].mxu0  ;;  %2990 = vmatprep.mubr.f32.mxu1 %v2885_v57 }
 0x673   :  { %v2888_v59 = vpop.f32.mrb[15].mxu0  ;;  %2991 = vmatmul.mubr.f32.vlgmr.msra.gmra.mrb[16].mxu1 %v2883_v35 }
 0x674   :  { %3073 = vmatprep.mubr.f32.mxu1 %v6768_v49  ;;  %6070 = vmatpush1.bf16.msra.mxu1 %v7694_v4 }
 0x675   :  { %6072 = vmatprep.subr.bf16.mxu1 %v7439_v39 }
 0x746   :  { %v5435_v5 = vpop.f32.mrb[16].mxu1 }
 0x747   :  { %v5436_v6 = vpop.f32.mrb[17].mxu1 }
 0x748   :  { %v5437_v12 = vadd.f32 %v5436_v6, %v5435_v5 }
 0x74a   :  { %v2997_v13 = vsel %vm2996_vm6, %v5437_v12, 0.0 }
 0x74b   :  { %v2998_v16 = vrot.slane %v2997_v13, 4 }
 0x74d   :  { %v2999_v17 = vadd.f32 %v2998_v16, %v2997_v13  ;;  %v3519_v16 = vld [vmem:[%s8151_s12] sm:$0xff] }
 0x74f   :  { %v3000_v37 = vrot.slane %v2999_v17, 2 }
 0x751   :  { %v3001_v41 = vadd.f32 %v3000_v37, %v2999_v17  ;;  %v3520_v17 = vld [vmem:[%s8151_s12 + $0x8] sm:$0xff] }
 0x753   :  { %v3002_v53 = vrot.slane %v3001_v41, 1 }
 0x755   :  { %v3003_v61 = vadd.f32 %v3002_v53, %v3001_v41 }
 0x757   :  { %v3004_v14 = vmul.f32 0.03125, %v3003_v61  ;;  %v7799_v61 = vpack.c.bf16 %v3520_v17, %v3519_v16 }
 0x759   :  { %5220 = vmatmul.mubr.msk.f32.vlgmr.msra.gmra.mrb[18].mxu1 %vm3005_vm7, %v3004_v14 }
 0x75a   :  { %6074 = vmatpush3.bf16.msra.mxu1 %v7450_v45 }
 0x75b   :  { %6076 = vmatprep.subr.bf16.mxu1 %v7452_v46 }
 0x75e   :  { %6078 = vmatpush3.bf16.msra.mxu1 %v7468_v55 }
 0x75f   :  { %6080 = vmatprep.subr.bf16.mxu1 %v7471_v56 }
 0x762   :  { %6082 = vmatpush3.bf16.msra.mxu1 %v7486_v63 }
 0x763   :  { %6084 = vmatprep.subr.bf16.mxu1 %v7489_v0 }
 0x766   :  { %6086 = vmatpush3.bf16.msra.mxu1 %v7504_v7 }
 0x767   :  { %6088 = vmatprep.subr.bf16.mxu1 %v7507_v8 }
 0x76a   :  { %6090 = vmatpush3.bf16.msra.mxu1 %v7522_v18 }
 0x76b   :  { %6092 = vmatprep.subr.bf16.mxu1 %v7525_v28 }
 0x76e   :  { %6094 = vmatpush3.bf16.msra.mxu1 %v7540_v1 }
 0x76f   :  { %6096 = vmatprep.subr.bf16.mxu1 %v7543_v10 }
 0x772   :  { %6098 = vmatpush3.bf16.msra.mxu1 %v7558_v23 }
 0x773   :  { %6100 = vmatprep.subr.bf16.mxu1 %v7561_v25 }
 0x776   :  { %6102 = vmatpush3.bf16.msra.mxu1 %v6065_v52  ;;  %v6769_v52 = vmov 0.0|0.0  }
 0x777   :  { %6104 = vmatprep.subr.bf16.mxu1 %v6067_v2  ;;  %6135 = vmatprep.subr.bf16.mxu0 %v6769_v52 }
 0x82c   :  { %v3075_v39 = vpop.f32.mrb[18].mxu1 }
 0x82d   :  { %v3083_v45 = vrot.slane %v3075_v39, %v7284_v29  ;;  %v3077_v46 = vpop.f32.mrb[19].mxu1  ;;  %v3521_v39 = vld [vmem:[%s8151_s12 + $0x10] sm:$0xff] }
 0x82e   :  { %v3087_v55 = vrot.slane %v3077_v46, %v7284_v29 }
 0x82f   :  { %v7716_v56 = vsub.f32 %v2883_v35, %v3083_v45  ;;  %v3522_v45 = vld [vmem:[%s8151_s12 + $0x18] sm:$0xff] }
 0x830   :  { %v7718_v63 = vsub.f32 %v2885_v57, %v3087_v55  ;;  %v7808_v46 = vpack.c.bf16 %v3522_v45, %v3521_v39  ;;  %v3523_v55 = vld [vmem:[%s8151_s12 + $0x20] sm:$0xff] }
 0x831   :  { %v3090_v7 = vmul.f32 %v7716_v56, %v7716_v56  ;;  %v3858_v39 = vld [vmem:[%s8154_s15] sm:$0x1] }
 0x832   :  { %v3091_v0 = vmul.f32 %v7718_v63, %v7718_v63  ;;  %v6696_v45 = vld [vmem:[%s8155_s16] sm:$0xff]  }
 0x834   :  { %3156 = vmatprep.mubr.f32.mxu1 %v3091_v0  ;;  %v3525_v0 = vld [vmem:[%s8151_s12 + $0x30] sm:$0xff] }
 0x835   :  { %3157 = vmatmul.mubr.f32.vlgmr.msra.gmra.mrb[20].mxu1 %v3090_v7  ;;  %v3526_v7 = vld [vmem:[%s8151_s12 + $0x38] sm:$0xff] }
 0x836   :  { %6106 = vmatpush1.bf16.msra.mxu1 %v7694_v4  ;;  %3241 = vmatprep.mubr.f32.mxu1 %v6768_v49 }
 0x837   :  { %6108 = vmatprep.subr.bf16.mxu1 %v6067_v2 }
 0x908   :  { %v5470_v8 = vpop.f32.mrb[20].mxu1 }
 0x909   :  { %v5471_v18 = vpop.f32.mrb[21].mxu1 }
 0x90a   :  { %v5472_v28 = vadd.f32 %v5471_v18, %v5470_v8  ;;  %v7828_v8 = vpack.c.bf16 %v3526_v7, %v3525_v0  ;;  %v3527_v18 = vld [vmem:[%s8151_s12 + $0x40] sm:$0xff]  ;;  %v6701_v0 = vld [vmem:[%s8155_s16 + $0x28] sm:$0xff]   ;;  %v6702_v7 = vld [vmem:[%s8155_s16 + $0x30] sm:$0xff]  }
 0x90c   :  { %v3162_v1 = vsel %vm2996_vm6, %v5472_v28, 0.0  ;;  %v3528_v28 = vld [vmem:[%s8151_s12 + $0x48] sm:$0xff] }
 0x90d   :  { %v3163_v10 = vrot.slane %v3162_v1, 4 }
 0x90f   :  { %v3164_v23 = vadd.f32 %v3163_v10, %v3162_v1  ;;  %v7838_v1 = vpack.c.bf16 %v3528_v28, %v3527_v18  ;;  %v3529_v10 = vld [vmem:[%s8151_s12 + $0x50] sm:$0xff]  ;;  %v4045_v18 = vld [vmem:[%s8156_s17] sm:$0xff]  ;;  %v4046_v28 = vld [vmem:[%s8156_s17 + $0x8] sm:$0xff] }
 0x911   :  { %v3165_v25 = vrot.slane %v3164_v23, 2 }
 0x913   :  { %v3166_v19 = vadd.f32 %v3165_v25, %v3164_v23  ;;  %v3530_v23 = vld [vmem:[%s8151_s12 + $0x58] sm:$0xff] }
 0x914   :  { %v6127_v25 = vpack.c.bf16 %v3530_v23, %v3529_v10  ;;  %v6178_v10 = vpack.c.bf16 %v4046_v28, %v4045_v18  ;;  %v4048_v23 = vld [vmem:[%s8156_s17 + $0x18] sm:$0xff]  ;;  %v4518_v18 = vld [vmem:[%s8161_s22] sm:$0xff]  ;;  %v4519_v28 = vld [vmem:[%s8161_s22 + $0x8] sm:$0xff] }
 0x915   :  { %v3167_v20 = vrot.slane %v3166_v19, 1 }
 0x917   :  { %v3168_v21 = vadd.f32 %v3167_v20, %v3166_v19  ;;  %v3531_v19 = vld [vmem:[%s8151_s12 + $0x60] sm:$0xff]  ;;  %v3532_v20 = vld [vmem:[%s8151_s12 + $0x68] sm:$0xff] }
 0x919   :  { %v3169_v26 = vmul.f32 0.03125, %v3168_v21  ;;  %v6130_v21 = vpack.c.bf16 %v3532_v20, %v3531_v19 }
 0x91b   :  { %v3171_v9 = vadd.f32 1e-05, %v3169_v26  ;;  %v3533_v26 = vld [vmem:[%s8151_s12 + $0x70] sm:$0xff] }
 0x91d   :  { %6708 = vrsqrt.f32 %v3171_v9  ;;  %v3534_v9 = vld [vmem:[%s8151_s12 + $0x78] sm:$0xff] }
 0x927   :  { %v6709_v31 = vpop.eup %6708 }
 0x928   :  { %v3173_v32 = vmul.f32 %v6709_v31, %v3170_v30  ;;  %v6133_v30 = vpack.c.bf16 %v3534_v9, %v3533_v26 }
 0x92a   :  { %5221 = vmatmul.mubr.msk.f32.vlgmr.msra.gmra.mrb[22].mxu1 %vm3005_vm7, %v3173_v32 }
 0x92b   :  { %6110 = vmatpush1.bf16.msra.mxu1 %v7694_v4  ;;  %3326 = vmatprep.mubr.f32.mxu1 %v6768_v49 }
 0x92c   :  { %5473 = vmatprep.subr.bf16.mxu1 %v6680_v33 }
 0x92e   :  { %5222 = vmatmul.mubr.msk.f32.vlgmr.msra.gmra.mrb[24].mxu1 %vm3005_vm7, %v3258_v38 }
 0x92f   :  { %5474 = vmatpush3.bf16.msra.mxu1 %v6681_v22 }
 0x930   :  { %5475 = vmatprep.subr.bf16.mxu1 %v6682_v50  ;;  %v3535_v50 = vld [vmem:[%s8152_s13] sm:$0xff] }
 0x933   :  { %5476 = vmatpush3.bf16.msra.mxu1 %v6683_v54  ;;  %v3536_v54 = vld [vmem:[%s8152_s13 + $0x8] sm:$0xff] }
 0x934   :  { %5477 = vmatprep.subr.bf16.mxu1 %v6684_v11  ;;  %v7876_v11 = vpack.c.bf16 %v3536_v54, %v3535_v50 }
 0x936   :  { %6137 = vmatpush3.bf16.msra.mxu0 %v7876_v11 }
 0x937   :  { %5478 = vmatpush3.bf16.msra.mxu1 %v6685_v15  ;;  %6138 = vmatprep.subr.bf16.mxu0 %v6769_v52  ;;  %v3537_v15 = vld [vmem:[%s8152_s13 + $0x10] sm:$0xff] }
 0x938   :  { %5479 = vmatprep.subr.bf16.mxu1 %v6686_v24  ;;  %v3538_v24 = vld [vmem:[%s8152_s13 + $0x18] sm:$0xff] }
 0x93b   :  { %5480 = vmatpush3.bf16.msra.mxu1 %v6687_v27  ;;  %v6139_v27 = vpack.c.bf16 %v3538_v24, %v3537_v15  ;;  %v4049_v24 = vld [vmem:[%s8157_s18] sm:$0xff] }
 0x93c   :  { %5481 = vmatprep.subr.bf16.mxu1 %v6688_v43 }
 0x93d   :  { %6140 = vmatpush3.bf16.msra.mxu0 %v6139_v27 }
 0x93e   :  { %6141 = vmatprep.subr.bf16.mxu0 %v6769_v52 }
 0x93f   :  { %5482 = vmatpush3.bf16.msra.mxu1 %v6689_v34 }
 0x940   :  { %5483 = vmatprep.subr.bf16.mxu1 %v6690_v40 }
 0x943   :  { %5484 = vmatpush3.bf16.msra.mxu1 %v6691_v42 }
 0x944   :  { %5485 = vmatprep.subr.bf16.mxu1 %v6692_v44 }
 0x947   :  { %5486 = vmatpush3.bf16.msra.mxu1 %v6693_v47 }
 0x948   :  { %5487 = vmatprep.subr.bf16.mxu1 %v6694_v48 }
 0x94b   :  { %5488 = vmatpush3.bf16.msra.mxu1 %v6695_v62 }
 0x94c   :  { %6111 = vmatprep.subr.bf16.mxu1 %v6769_v52 }
 0x9fd   :  { %v3243_v35 = vpop.f32.mrb[22].mxu1 }
 0x9fe   :  { %v3251_v57 = vrot.slane %v3243_v35, %v7284_v29  ;;  %v3245_v58 = vpop.f32.mrb[23].mxu1 }
 0x9ff   :  { %v3255_v59 = vrot.slane %v3245_v58, %v7284_v29 }
 0xa00   :  { %v3256_v60 = vmul.f32 %v3251_v57, %v7716_v56  ;;  %v3524_v56 = vld [vmem:[%s8151_s12 + $0x28] sm:$0xff] }
 0xa01   :  { %v3328_v51 = vpop.f32.mrb[24].mxu1  ;;  %v3257_v36 = vmul.f32 %v3255_v59, %v7718_v63  ;;  %v7818_v63 = vpack.c.bf16 %v3524_v56, %v3523_v55  ;;  %v6698_v55 = vld [vmem:[%s8155_s16 + $0x10] sm:$0xff]   ;;  %v6699_v56 = vld [vmem:[%s8155_s16 + $0x18] sm:$0xff]  }
 0xa02   :  { %v3336_v2 = vrot.slane %v3328_v51, %v7284_v29  ;;  %v3330_v3 = vpop.f32.mrb[25].mxu1 }
 0xa03   :  { %v3340_v4 = vrot.slane %v3330_v3, %v7284_v29 }
 0xa04   :  { %v3341_v5 = vadd.f32 %v3336_v2, %v3256_v60 }
 0xa05   :  { %v3342_v6 = vadd.f32 %v3340_v4, %v3257_v36 }
 0xa06   :  { %vm3343_vm8 = vcmp.gt.f32.partialorder %v3341_v5, 0.0  ;;  %v3345_v12 = vmul.f32 0.01, %v3341_v5 }
 0xa07   :  { %v3346_v13 = vmul.f32 0.01, %v3342_v6  ;;  %vm3344_vm9 = vcmp.gt.f32.partialorder %v3342_v6, 0.0 }
 0xa08   :  { %v3347_v37 = vsel %vm3343_vm8, %v3341_v5, %v3345_v12 }
 0xa09   :  { %v3348_v41 = vsel %vm3344_vm9, %v3342_v6, %v3346_v13  ;;  %v3349_v14 = vpack.c.bf16 %v3347_v37, %v3347_v37 }
 0xa0a   :  { %v3350_v53 = vpack.c.bf16 %v3348_v41, %v3348_v41 }
 0xa0c   :  { %3511 = vmatprep.mubr.bf16.mxu1 %v3350_v53  ;;  %v3776_v53 = vld [vmem:[%s8153_s14] sm:$0x1] }
 0xa0d   :  { %3512 = vmatmul.mubr.bf16.vlgmr.msra.gmra.mrb[28].mxu1 %v3349_v14 }
 0xa0e   :  { %6113 = vmatpush3.bf16.msra.mxu1 %v7799_v61  ;;  %5658 = vmatprep.mubr.msk.f32.mxu1 %vm6770_vm10, %v6768_v49 }
 0xa0f   :  { %6114 = vmatprep.subr.bf16.mxu1 %v6769_v52 }
 0xa12   :  { %6116 = vmatpush3.bf16.msra.mxu1 %v7808_v46 }
 0xa13   :  { %6117 = vmatprep.subr.bf16.mxu1 %v6769_v52 }
 0xa16   :  { %6119 = vmatpush3.bf16.msra.mxu1 %v7818_v63 }
 0xa17   :  { %6120 = vmatprep.subr.bf16.mxu1 %v6769_v52 }
 0xa1a   :  { %6122 = vmatpush3.bf16.msra.mxu1 %v7828_v8 }
 0xa1b   :  { %6123 = vmatprep.subr.bf16.mxu1 %v6769_v52 }
 0xa1e   :  { %6125 = vmatpush3.bf16.msra.mxu1 %v7838_v1 }
 0xa1f   :  { %6126 = vmatprep.subr.bf16.mxu1 %v6769_v52 }
 0xa22   :  { %6128 = vmatpush3.bf16.msra.mxu1 %v6127_v25 }
 0xa23   :  { %6129 = vmatprep.subr.bf16.mxu1 %v6769_v52 }
 0xa26   :  { %6131 = vmatpush3.bf16.msra.mxu1 %v6130_v21 }
 0xa27   :  { %6132 = vmatprep.subr.bf16.mxu1 %v6769_v52 }
 0xa2a   :  { %6134 = vmatpush3.bf16.msra.mxu1 %v6133_v30 }
 0xa2b   :  { %6165 = vmatprep.subr.bf16.mxu1 %v6769_v52 }
 0xae0   :  { %v5489_v31 = vpop.f32.mrb[28].mxu1 }
 0xae1   :  { %v5490_v32 = vpop.f32.mrb[29].mxu1 }
 0xae2   :  { %v5491_v33 = vadd.f32 %v5490_v32, %v5489_v31  ;;  %v5492_v38 = vpop.f32.mrb[30].mxu1 }
 0xae3   :  { %v5493_v22 = vpop.f32.mrb[31].mxu1 }
 0xae4   :  { %5659 = vmatmul.mubr.f32.vlgmr.msra.gmra.mrb[26].mxu1 %v5491_v33 }
 0xae5   :  { %5715 = vmatprep.mubr.msk.f32.mxu1 %vm6770_vm10, %v6768_v49  ;;  %6167 = vmatpush3.bf16.msra.mxu1 %v7876_v11 }
 0xae6   :  { %6168 = vmatprep.subr.bf16.mxu1 %v6769_v52 }
 0xae9   :  { %6170 = vmatpush3.bf16.msra.mxu1 %v6139_v27 }
 0xaea   :  { %6171 = vmatprep.subr.bf16.mxu1 %v6769_v52 }
 0xbb7   :  { %v3605_v43 = vpop.f32.mrb[26].mxu1 }
 0xbb8   :  { %v3610_v34 = vsel %vm3609_vm11, %v3605_v43, 0.0  ;;  %v5660_v40 = vpop.f32.mrb[27].mxu1 }
 0xbb9   :  { %v3611_v42 = vrot.slane %v3610_v34, 4  ;;  %v4052_v40 = vld [vmem:[%s8157_s18 + $0x18] sm:$0xff] }
 0xbbb   :  { %v3612_v44 = vadd.f32 %v3611_v42, %v3610_v34  ;;  %v4051_v34 = vld [vmem:[%s8157_s18 + $0x10] sm:$0xff] }
 0xbbc   :  { %v6187_v42 = vpack.c.bf16 %v4052_v40, %v4051_v34  ;;  %v4526_v40 = vld [vmem:[%s8162_s23] sm:$0xff] }
 0xbbd   :  { %v3613_v47 = vrot.slane %v3612_v44, 2 }
 0xbbf   :  { %v3614_v48 = vadd.f32 %v3613_v47, %v3612_v44 }
 0xbc1   :  { %v3615_v62 = vrot.slane %v3614_v48, 1 }
 0xbc3   :  { %v3616_v35 = vadd.f32 %v3615_v62, %v3614_v48 }
 0xbc5   :  { %v3617_v57 = vmul.f32 0.125, %v3616_v35 }
 0xbc7   :  { %5670 = vmatmul.mubr.msk.f32.vlgmr.msra.gmra.mrb[16].mxu0 %vm3618_vm12, %v3617_v57 }
 0xbc8   :  { %6143 = vmatpush3.bf16.msra.mxu0 %v7799_v61  ;;  %5704 = vmatprep.mubr.msk.f32.mxu0 %vm6770_vm10, %v6768_v49 }
 0xbc9   :  { %6144 = vmatprep.subr.bf16.mxu0 %v6769_v52 }
 0xbcc   :  { %6146 = vmatpush3.bf16.msra.mxu0 %v7808_v46  ;;  %v6697_v46 = vld [vmem:[%s8155_s16 + $0x8] sm:$0xff]  }
 0xbcd   :  { %6147 = vmatprep.subr.bf16.mxu0 %v6769_v52 }
 0xbd0   :  { %6149 = vmatpush3.bf16.msra.mxu0 %v7818_v63  ;;  %v6700_v63 = vld [vmem:[%s8155_s16 + $0x20] sm:$0xff]  }
 0xbd1   :  { %6150 = vmatprep.subr.bf16.mxu0 %v6769_v52 }
 0xbd4   :  { %6152 = vmatpush3.bf16.msra.mxu0 %v7828_v8  ;;  %v6703_v8 = vld [vmem:[%s8155_s16 + $0x38] sm:$0xff]  }
 0xbd5   :  { %6153 = vmatprep.subr.bf16.mxu0 %v6769_v52 }
 0xbd8   :  { %6155 = vmatpush3.bf16.msra.mxu0 %v7838_v1  ;;  %v4047_v1 = vld [vmem:[%s8156_s17 + $0x10] sm:$0xff] }
 0xbd9   :  { %6156 = vmatprep.subr.bf16.mxu0 %v6769_v52 }
 0xbdc   :  { %6158 = vmatpush3.bf16.msra.mxu0 %v6127_v25  ;;  %v6181_v25 = vpack.c.bf16 %v4048_v23, %v4047_v1  ;;  %v4520_v1 = vld [vmem:[%s8161_s22 + $0x10] sm:$0xff]  ;;  %v4521_v23 = vld [vmem:[%s8161_s22 + $0x18] sm:$0xff] }
 0xbdd   :  { %6159 = vmatprep.subr.bf16.mxu0 %v6769_v52 }
 0xbe0   :  { %6161 = vmatpush3.bf16.msra.mxu0 %v6130_v21 }
 0xbe1   :  { %6162 = vmatprep.subr.bf16.mxu0 %v6769_v52 }
 0xbe4   :  { %6164 = vmatpush3.bf16.msra.mxu0 %v6133_v30 }
 0xbe5   :  { %6177 = vmatprep.subr.bf16.mxu0 %v6769_v52 }
 0xc9a   :  { %v3688_v58 = vpop.f32.mrb[16].mxu0 }
 0xc9b   :  { %v3695_v59 = vrot.slane %v3688_v58, %v7284_v29  ;;  %v5671_v51 = vpop.f32.mrb[17].mxu0 }
 0xc9d   :  { %v7908_v60 = vsub.f32 %v5491_v33, %v3695_v59 }
 0xc9f   :  { %v3697_v2 = vmul.f32 %v7908_v60, %v7908_v60 }
 0xca1   :  { %5705 = vmatmul.mubr.f32.vlgmr.msra.gmra.mrb[18].mxu0 %v3697_v2 }
 0xca2   :  { %5757 = vmatprep.mubr.msk.f32.mxu0 %vm6770_vm10, %v6768_v49  ;;  %6179 = vmatpush3.bf16.msra.mxu0 %v6178_v10 }
 0xca3   :  { %6180 = vmatprep.subr.bf16.mxu0 %v6769_v52 }
 0xca6   :  { %6182 = vmatpush3.bf16.msra.mxu0 %v6181_v25 }
 0xca7   :  { %6183 = vmatprep.subr.bf16.mxu0 %v6769_v52 }
 0xd74   :  { %v3764_v3 = vpop.f32.mrb[18].mxu0 }
 0xd75   :  { %v3768_v36 = vsel %vm3609_vm11, %v3764_v3, 0.0  ;;  %v5706_v4 = vpop.f32.mrb[19].mxu0 }
 0xd76   :  { %v3769_v5 = vrot.slane %v3768_v36, 4 }
 0xd78   :  { %v3770_v6 = vadd.f32 %v3769_v5, %v3768_v36 }
 0xd7a   :  { %v3771_v12 = vrot.slane %v3770_v6, 2 }
 0xd7c   :  { %v3772_v13 = vadd.f32 %v3771_v12, %v3770_v6  ;;  %v4376_v6 = vld [vmem:[%s8159_s20] sm:$0x1] }
 0xd7e   :  { %v3773_v16 = vrot.slane %v3772_v13, 1 }
 0xd80   :  { %v3774_v17 = vadd.f32 %v3773_v16, %v3772_v13 }
 0xd82   :  { %v3775_v37 = vmul.f32 0.125, %v3774_v17 }
 0xd84   :  { %v3777_v41 = vadd.f32 1e-05, %v3775_v37 }
 0xd86   :  { %6710 = vrsqrt.f32 %v3777_v41 }
 0xd90   :  { %v6711_v61 = vpop.eup %6710 }
 0xd91   :  { %v3779_v14 = vmul.f32 %v6711_v61, %v3776_v53 }
 0xd93   :  { %5716 = vmatmul.mubr.msk.f32.vlgmr.msra.gmra.mrb[32].mxu1 %vm3618_vm12, %v3779_v14 }
 0xd94   :  { %6173 = vmatpush3.bf16.msra.mxu1 %v7876_v11  ;;  %5726 = vmatprep.mubr.msk.f32.mxu1 %vm6770_vm10, %v6768_v49 }
 0xd95   :  { %6174 = vmatprep.subr.bf16.mxu1 %v6769_v52 }
 0xd98   :  { %6176 = vmatpush3.bf16.msra.mxu1 %v6139_v27  ;;  %v4050_v27 = vld [vmem:[%s8157_s18 + $0x8] sm:$0xff] }
 0xd99   :  { %5729 = vmatprep.subr.bf16.mxu1 %v6768_v49  ;;  %v6184_v43 = vpack.c.bf16 %v4050_v27, %v4049_v24 }
 0xd9b   :  { %5727 = vmatmul.mubr.msk.f32.vlgmr.msra.gmra.mrb[34].mxu1 %vm3618_vm12, %v3858_v39 }
 0xd9c   :  { %5730 = vmatpush3.bf16.msra.mxu1 %v6696_v45  ;;  %5745 = vmatprep.mubr.msk.bf16.mxu1 %vm6770_vm10, %v6768_v49 }
 0xd9d   :  { %5731 = vmatprep.subr.bf16.mxu1 %v6768_v49 }
 0xda0   :  { %5732 = vmatpush3.bf16.msra.mxu1 %v6697_v46  ;;  %v4294_v46 = vld [vmem:[%s8158_s19] sm:$0x1] }
 0xda1   :  { %5733 = vmatprep.subr.bf16.mxu1 %v6768_v49 }
 0xda4   :  { %5734 = vmatpush3.bf16.msra.mxu1 %v6698_v55 }
 0xda5   :  { %5735 = vmatprep.subr.bf16.mxu1 %v6768_v49 }
 0xda8   :  { %5736 = vmatpush3.bf16.msra.mxu1 %v6699_v56 }
 0xda9   :  { %5737 = vmatprep.subr.bf16.mxu1 %v6768_v49 }
 0xdac   :  { %5738 = vmatpush3.bf16.msra.mxu1 %v6700_v63 }
 0xdad   :  { %5739 = vmatprep.subr.bf16.mxu1 %v6768_v49 }
 0xdb0   :  { %5740 = vmatpush3.bf16.msra.mxu1 %v6701_v0 }
 0xdb1   :  { %5741 = vmatprep.subr.bf16.mxu1 %v6768_v49 }
 0xdb4   :  { %5742 = vmatpush3.bf16.msra.mxu1 %v6702_v7  ;;  %v6704_v7 = vld [vmem:[%s8160_s21] sm:$0xff]  }
 0xdb5   :  { %5743 = vmatprep.subr.bf16.mxu1 %v6768_v49 }
 0xdb8   :  { %5744 = vmatpush3.bf16.msra.mxu1 %v6703_v8  ;;  %v6705_v8 = vld [vmem:[%s8160_s21 + $0x8] sm:$0xff]  }
 0xdb9   :  { %6195 = vmatprep.subr.bf16.mxu1 %v6769_v52 }
 0xe66   :  { %v3849_v19 = vpop.f32.mrb[32].mxu1 }
 0xe67   :  { %v5717_v20 = vpop.f32.mrb[33].mxu1  ;;  %v3856_v21 = vrot.slane %v3849_v19, %v7284_v29  ;;  %v4522_v19 = vld [vmem:[%s8161_s22 + $0x20] sm:$0xff] }
 0xe68   :  { %v4523_v20 = vld [vmem:[%s8161_s22 + $0x28] sm:$0xff] }
 0xe69   :  { %v3857_v9 = vmul.f32 %v3856_v21, %v7908_v60  ;;  %v6214_v21 = vpack.c.bf16 %v4523_v20, %v4522_v19 }
 0xe6e   :  { %v3928_v26 = vpop.f32.mrb[34].mxu1 }
 0xe6f   :  { %v3935_v30 = vrot.slane %v3928_v26, %v7284_v29  ;;  %v5728_v31 = vpop.f32.mrb[35].mxu1  ;;  %v4524_v26 = vld [vmem:[%s8161_s22 + $0x30] sm:$0xff] }
 0xe71   :  { %v3936_v32 = vadd.f32 %v3935_v30, %v3857_v9  ;;  %v4525_v9 = vld [vmem:[%s8161_s22 + $0x38] sm:$0xff] }
 0xe72   :  { %v6217_v30 = vpack.c.bf16 %v4525_v9, %v4524_v26 }
 0xe73   :  { %vm3937_vm13 = vcmp.gt.f32.partialorder %v3936_v32, 0.0  ;;  %v3938_v33 = vmul.f32 0.01, %v3936_v32 }
 0xe75   :  { %v3939_v38 = vsel %vm3937_vm13, %v3936_v32, %v3938_v33 }
 0xe76   :  { %v3940_v22 = vpack.c.bf16 %v3939_v38, %v3939_v38 }
 0xe78   :  { %5746 = vmatmul.mubr.bf16.vlgmr.msra.gmra.mrb[36].mxu1 %v3940_v22 }
 0xe79   :  { %5790 = vmatprep.mubr.msk.f32.mxu1 %vm6770_vm10, %v6768_v49  ;;  %6197 = vmatpush3.bf16.msra.mxu1 %v6184_v43 }
 0xe7a   :  { %6198 = vmatprep.subr.bf16.mxu1 %v6769_v52 }
 0xe7d   :  { %6200 = vmatpush3.bf16.msra.mxu1 %v6187_v42 }
 0xe7e   :  { %5804 = vmatprep.subr.bf16.mxu1 %v6768_v49 }
 0xf4b   :  { %v4039_v50 = vpop.f32.mrb[36].mxu1 }
 0xf4c   :  { %v5747_v54 = vpop.f32.mrb[37].mxu1  ;;  %5758 = vmatmul.mubr.msk.f32.vlgmr.msra.gmra.mrb[20].mxu0 %vm3618_vm12, %v4039_v50 }
 0xf4d   :  { %v4042_v11 = vpop.f32.mrb[38].mxu1  ;;  %5768 = vmatprep.mubr.msk.f32.mxu0 %vm6770_vm10, %v6768_v49  ;;  %6185 = vmatpush3.bf16.msra.mxu0 %v6184_v43 }
 0xf4e   :  { %v5748_v15 = vpop.f32.mrb[39].mxu1  ;;  %6186 = vmatprep.subr.bf16.mxu0 %v6769_v52 }
 0xf51   :  { %6188 = vmatpush3.bf16.msra.mxu0 %v6187_v42 }
 0xf52   :  { %6189 = vmatprep.subr.bf16.mxu0 %v6769_v52 }
0x101f   :  { %v4122_v44 = vpop.f32.mrb[20].mxu0 }
0x1020   :  { %v4126_v47 = vsel %vm3609_vm11, %v4122_v44, 0.0  ;;  %v5759_v48 = vpop.f32.mrb[21].mxu0 }
0x1021   :  { %v4127_v62 = vrot.slane %v4126_v47, 4  ;;  %v4529_v48 = vld [vmem:[%s8162_s23 + $0x18] sm:$0xff] }
0x1023   :  { %v4128_v35 = vadd.f32 %v4127_v62, %v4126_v47  ;;  %v4528_v47 = vld [vmem:[%s8162_s23 + $0x10] sm:$0xff] }
0x1024   :  { %v6223_v62 = vpack.c.bf16 %v4529_v48, %v4528_v47 }
0x1025   :  { %v4129_v57 = vrot.slane %v4128_v35, 2 }
0x1027   :  { %v4130_v58 = vadd.f32 %v4129_v57, %v4128_v35  ;;  %v4530_v35 = vld [vmem:[%s8162_s23 + $0x20] sm:$0xff]  ;;  %v4531_v57 = vld [vmem:[%s8162_s23 + $0x28] sm:$0xff] }
0x1029   :  { %v4131_v59 = vrot.slane %v4130_v58, 1 }
0x102b   :  { %v4132_v51 = vadd.f32 %v4131_v59, %v4130_v58  ;;  %v6226_v58 = vpack.c.bf16 %v4531_v57, %v4530_v35  ;;  %v4532_v59 = vld [vmem:[%s8162_s23 + $0x30] sm:$0xff] }
0x102d   :  { %v4133_v60 = vmul.f32 0.5, %v4132_v51  ;;  %v4533_v51 = vld [vmem:[%s8162_s23 + $0x38] sm:$0xff] }
0x102f   :  { %5769 = vmatmul.mubr.msk.f32.vlgmr.msra.gmra.mrb[22].mxu0 %vm3618_vm12, %v4133_v60  ;;  %v6229_v60 = vpack.c.bf16 %v4533_v51, %v4532_v59 }
0x1030   :  { %6191 = vmatpush3.bf16.msra.mxu0 %v6178_v10  ;;  %5779 = vmatprep.mubr.msk.f32.mxu0 %vm6770_vm10, %v6768_v49  ;;  %v6208_v10 = vpack.c.bf16 %v4519_v28, %v4518_v18 }
0x1031   :  { %6192 = vmatprep.subr.bf16.mxu0 %v6769_v52 }
0x1034   :  { %6194 = vmatpush3.bf16.msra.mxu0 %v6181_v25  ;;  %v6211_v25 = vpack.c.bf16 %v4521_v23, %v4520_v1 }
0x1035   :  { %6201 = vmatprep.subr.bf16.mxu0 %v6769_v52 }
0x1102   :  { %v4203_v2 = vpop.f32.mrb[22].mxu0 }
0x1103   :  { %v4210_v3 = vrot.slane %v4203_v2, %v7284_v29  ;;  %v5770_v36 = vpop.f32.mrb[23].mxu0 }
0x1105   :  { %v4211_v4 = vsub.f32 %v4039_v50, %v4210_v3 }
0x1107   :  { %v4212_v5 = vmul.f32 %v4211_v4, %v4211_v4 }
0x1109   :  { %5780 = vmatmul.mubr.msk.f32.vlgmr.msra.gmra.mrb[24].mxu0 %vm3618_vm12, %v4212_v5 }
0x110a   :  { %6203 = vmatpush3.bf16.msra.mxu0 %v6184_v43  ;;  %5801 = vmatprep.mubr.msk.f32.mxu0 %vm6770_vm10, %v6768_v49 }
0x110b   :  { %6204 = vmatprep.subr.bf16.mxu0 %v6769_v52 }
0x110e   :  { %6206 = vmatpush3.bf16.msra.mxu0 %v6187_v42  ;;  %v4527_v42 = vld [vmem:[%s8162_s23 + $0x8] sm:$0xff] }
0x110f   :  { %6207 = vmatprep.subr.bf16.mxu0 %v6769_v52  ;;  %v6220_v44 = vpack.c.bf16 %v4527_v42, %v4526_v40 }
0x1111   :  { %5802 = vmatmul.mubr.msk.f32.vlgmr.msra.gmra.mrb[26].mxu0 %vm3618_vm12, %v4376_v6 }
0x1112   :  { %5828 = vmatprep.mubr.msk.f32.mxu0 %vm6770_vm10, %v6768_v49  ;;  %6209 = vmatpush3.bf16.msra.mxu0 %v6208_v10 }
0x1113   :  { %6210 = vmatprep.subr.bf16.mxu0 %v6769_v52 }
0x1116   :  { %6212 = vmatpush3.bf16.msra.mxu0 %v6211_v25 }
0x1117   :  { %6213 = vmatprep.subr.bf16.mxu0 %v6769_v52 }
0x111a   :  { %6215 = vmatpush3.bf16.msra.mxu0 %v6214_v21 }
0x111b   :  { %6216 = vmatprep.subr.bf16.mxu0 %v6769_v52 }
0x111e   :  { %6218 = vmatpush3.bf16.msra.mxu0 %v6217_v30 }
0x111f   :  { %6231 = vmatprep.subr.bf16.mxu0 %v6769_v52 }
0x11dc   :  { %v4282_v12 = vpop.f32.mrb[24].mxu0 }
0x11dd   :  { %v4286_v13 = vsel %vm3609_vm11, %v4282_v12, 0.0  ;;  %v5781_v16 = vpop.f32.mrb[25].mxu0 }
0x11de   :  { %v4287_v17 = vrot.slane %v4286_v13, 4 }
0x11e0   :  { %v4288_v37 = vadd.f32 %v4287_v17, %v4286_v13 }
0x11e2   :  { %v4289_v41 = vrot.slane %v4288_v37, 2 }
0x11e4   :  { %v4290_v53 = vadd.f32 %v4289_v41, %v4288_v37  ;;  %v4446_v63 = vpop.f32.mrb[26].mxu0 }
0x11e5   :  { %v5803_v0 = vpop.f32.mrb[27].mxu0  ;;  %v4453_v38 = vrot.slane %v4446_v63, %v7284_v29 }
0x11e6   :  { %v4291_v61 = vrot.slane %v4290_v53, 1 }
0x11e8   :  { %v4292_v14 = vadd.f32 %v4291_v61, %v4290_v53 }
0x11ea   :  { %v4293_v39 = vmul.f32 0.5, %v4292_v14 }
0x11ec   :  { %v4295_v45 = vadd.f32 1e-05, %v4293_v39  ;;  %v4859_v39 = vld [vmem:[%s8164_s25] sm:$0x1]  ;;  %s6771_s25 = smov [#allocation5]  }
0x11ed   :  { %s4948_s21 = sshll.u32 %s6771_s25, 4  ;;  %s4949_s21 = int_to_ptr.vmem [resolvable:$true] %s4948_s21 }
0x11ee   :  { %6712 = vrsqrt.f32 %v4295_v45  ;;  %p6743_p9 = scmp.lt.s32.totalorder %s4949_s21, %s4949_s21 }
0x11f8   :  { %v6713_v55 = vpop.eup %6712 }
0x11f9   :  { %v4297_v56 = vmul.f32 %v6713_v55, %v4294_v46 }
0x11fb   :  { %5791 = vmatmul.mubr.msk.f32.vlgmr.msra.gmra.mrb[40].mxu1 %vm3618_vm12, %v4297_v56 }
0x11fc   :  { %5808 = vmatprep.mubr.msk.bf16.mxu1 %vm6770_vm10, %v6768_v49  ;;  %5805 = vmatpush3.bf16.msra.mxu1 %v6704_v7 }
0x11fd   :  { %5806 = vmatprep.subr.bf16.mxu1 %v6768_v49 }
0x1200   :  { %5807 = vmatpush3.bf16.msra.mxu1 %v6705_v8 }
0x1201   :  { %6219 = vmatprep.subr.bf16.mxu1 %v6769_v52 }
0x12ce   :  { %v4367_v31 = vpop.f32.mrb[40].mxu1 }
0x12cf   :  { %v4374_v32 = vrot.slane %v4367_v31, %v7284_v29  ;;  %v5792_v33 = vpop.f32.mrb[41].mxu1 }
0x12d1   :  { %v4375_v22 = vmul.f32 %v4374_v32, %v4211_v4 }
0x12d3   :  { %v4454_v50 = vadd.f32 %v4453_v38, %v4375_v22 }
0x12d5   :  { %vm4455_vm14 = vcmp.gt.f32.partialorder %v4454_v50, 0.0  ;;  %v4456_v54 = vmul.f32 0.01, %v4454_v50 }
0x12d7   :  { %v4457_v11 = vsel %vm4455_vm14, %v4454_v50, %v4456_v54 }
0x12d8   :  { %v4458_v15 = vpack.c.bf16 %v4457_v11, %v4457_v11 }
0x12da   :  { %5809 = vmatmul.mubr.msk.bf16.vlgmr.msra.gmra.mrb[44].mxu1 %vm3618_vm12, %v4458_v15 }
0x12db   :  { %5847 = vmatprep.mubr.msk.f32.mxu1 %vm6770_vm10, %v6768_v49  ;;  %6221 = vmatpush3.bf16.msra.mxu1 %v6220_v44 }
0x12dc   :  { %6222 = vmatprep.subr.bf16.mxu1 %v6769_v52 }
0x12df   :  { %6224 = vmatpush3.bf16.msra.mxu1 %v6223_v62 }
0x12e0   :  { %6225 = vmatprep.subr.bf16.mxu1 %v6769_v52 }
0x12e3   :  { %6227 = vmatpush3.bf16.msra.mxu1 %v6226_v58 }
0x12e4   :  { %6228 = vmatprep.subr.bf16.mxu1 %v6769_v52 }
0x12e7   :  { %6230 = vmatpush3.bf16.msra.mxu1 %v6229_v60 }
0x12e8   :  { %6243 = vmatprep.subr.bf16.mxu1 %v6769_v52 }
0x13ad   :  { %v4512_v24 = vpop.f32.mrb[44].mxu1 }
0x13ae   :  { %v5810_v27 = vpop.f32.mrb[45].mxu1  ;;  %5829 = vmatmul.mubr.msk.f32.vlgmr.msra.gmra.mrb[28].mxu0 %vm4534_vm15, %v4512_v24 }
0x13af   :  { %v4515_v43 = vpop.f32.mrb[46].mxu1  ;;  %6233 = vmatpush3.bf16.msra.mxu0 %v6208_v10  ;;  %5866 = vmatprep.mubr.msk.f32.mxu0 %vm6770_vm10, %v6768_v49 }
0x13b0   :  { %v5811_v34 = vpop.f32.mrb[47].mxu1  ;;  %6234 = vmatprep.subr.bf16.mxu0 %v6769_v52 }
0x13b3   :  { %6236 = vmatpush3.bf16.msra.mxu0 %v6211_v25 }
0x13b4   :  { %6237 = vmatprep.subr.bf16.mxu0 %v6769_v52 }
0x13b7   :  { %6239 = vmatpush3.bf16.msra.mxu0 %v6214_v21 }
0x13b8   :  { %6240 = vmatprep.subr.bf16.mxu0 %v6769_v52 }
0x13bb   :  { %6242 = vmatpush3.bf16.msra.mxu0 %v6217_v30 }
0x13bc   :  { %6255 = vmatprep.subr.bf16.mxu0 %v6769_v52 }
0x1481   :  { %v4604_v2 = vpop.f32.mrb[28].mxu0 }
0x1482   :  { %v4609_v3 = vsel %vm4608_vm0, %v4604_v2, 0.0  ;;  %v5830_v36 = vpop.f32.mrb[29].mxu0 }
0x1483   :  { %v4610_v4 = vrot.slane %v4609_v3, 4 }
0x1485   :  { %v4611_v5 = vadd.f32 %v4610_v4, %v4609_v3 }
0x1487   :  { %v4612_v6 = vrot.slane %v4611_v5, 2 }
0x1489   :  { %v4613_v12 = vadd.f32 %v4612_v6, %v4611_v5 }
0x148b   :  { %v4614_v13 = vrot.slane %v4613_v12, 1 }
0x148d   :  { %v4615_v16 = vadd.f32 %v4614_v13, %v4613_v12 }
0x148f   :  { %v4616_v17 = vmul.f32 0.5, %v4615_v16 }
0x1491   :  { %5848 = vmatmul.mubr.msk.f32.vlgmr.msra.gmra.mrb[42].mxu1 %vm4534_vm15, %v4616_v17 }
0x1492   :  { %6245 = vmatpush3.bf16.msra.mxu1 %v6220_v44  ;;  %5885 = vmatprep.mubr.msk.f32.mxu1 %vm6770_vm10, %v6768_v49 }
0x1493   :  { %6246 = vmatprep.subr.bf16.mxu1 %v6769_v52 }
0x1496   :  { %6248 = vmatpush3.bf16.msra.mxu1 %v6223_v62 }
0x1497   :  { %6249 = vmatprep.subr.bf16.mxu1 %v6769_v52 }
0x149a   :  { %6251 = vmatpush3.bf16.msra.mxu1 %v6226_v58 }
0x149b   :  { %6252 = vmatprep.subr.bf16.mxu1 %v6769_v52 }
0x149e   :  { %6254 = vmatpush3.bf16.msra.mxu1 %v6229_v60 }
0x1564   :  { %v4686_v37 = vpop.f32.mrb[42].mxu1 }
0x1565   :  { %v4693_v41 = vrot.slane %v4686_v37, %v7284_v29  ;;  %v5849_v53 = vpop.f32.mrb[43].mxu1 }
0x1567   :  { %v4694_v61 = vsub.f32 %v4512_v24, %v4693_v41 }
0x1569   :  { %v4695_v14 = vmul.f32 %v4694_v61, %v4694_v61 }
0x156b   :  { %5867 = vmatmul.mubr.msk.f32.vlgmr.msra.gmra.mrb[30].mxu0 %vm4534_vm15, %v4695_v14 }
0x156c   :  { %6257 = vmatpush3.bf16.msra.mxu0 %v6220_v44  ;;  %5904 = vmatprep.mubr.msk.f32.mxu0 %vm6770_vm10, %v6768_v49 }
0x156d   :  { %6258 = vmatprep.subr.bf16.mxu0 %v6769_v52 }
0x1570   :  { %6260 = vmatpush3.bf16.msra.mxu0 %v6223_v62 }
0x1571   :  { %6261 = vmatprep.subr.bf16.mxu0 %v6769_v52 }
0x1574   :  { %6263 = vmatpush3.bf16.msra.mxu0 %v6226_v58 }
0x1575   :  { %6264 = vmatprep.subr.bf16.mxu0 %v6769_v52  ;;  %v4777_v52 = vld [vmem:[%s8163_s24] sm:$0x1]  ;;  %s6738_s24 = scalar_lea.vmem %s4949_s21, 32 }
0x1576   :  { %p6739_p8 = scmp.ne.s32.totalorder %s4949_s21, %s6738_s24  ;;  %p6744_p10 = scmp.lt.s32.totalorder %s6738_s24, %s6738_s24 }
0x1578   :  { %6266 = vmatpush3.bf16.msra.mxu0 %v6229_v60  ;;  %p6745_p11 = por %p6744_p10, %p6743_p9 }
0x157a   :  { %p6746_p12 = pnand %p6745_p11, %p6739_p8 }
0x157b   :  { %5905 = vmatmul.mubr.msk.f32.vlgmr.msra.gmra.mrb[32].mxu0 %vm4534_vm15, %v4859_v39 }
0x163e   :  { %v4765_v45 = vpop.f32.mrb[30].mxu0 }
0x163f   :  { %v4769_v46 = vsel %vm4608_vm0, %v4765_v45, 0.0  ;;  %v5868_v55 = vpop.f32.mrb[31].mxu0 }
0x1640   :  { %v4770_v49 = vrot.slane %v4769_v46, 4 }
0x1642   :  { %v4771_v56 = vadd.f32 %v4770_v49, %v4769_v46 }
0x1644   :  { %v4772_v63 = vrot.slane %v4771_v56, 2 }
0x1646   :  { %v4773_v0 = vadd.f32 %v4772_v63, %v4771_v56 }
0x1648   :  { %v4774_v7 = vrot.slane %v4773_v0, 1 }
0x164a   :  { %v4775_v8 = vadd.f32 %v4774_v7, %v4773_v0 }
0x164c   :  { %v4776_v18 = vmul.f32 0.5, %v4775_v8 }
0x164e   :  { %v4778_v28 = vadd.f32 1e-05, %v4776_v18  ;;  %v4929_v23 = vpop.f32.mrb[32].mxu0 }
0x164f   :  { %v5906_v25 = vpop.f32.mrb[33].mxu0  ;;  %v4936_v26 = vrot.slane %v4929_v23, %v7284_v29 }
0x1650   :  { %6714 = vrsqrt.f32 %v4778_v28 }
0x165a   :  { %v6715_v1 = vpop.eup %6714 }
0x165b   :  { %v4780_v10 = vmul.f32 %v6715_v1, %v4777_v52 }
0x165d   :  { %5886 = vmatmul.mubr.msk.f32.vlgmr.msra.gmra.mrb[48].mxu1 %vm4534_vm15, %v4780_v10 }
0x1730   :  { %v4850_v19 = vpop.f32.mrb[48].mxu1 }
0x1731   :  { %v4857_v20 = vrot.slane %v4850_v19, %v7284_v29  ;;  %v5887_v21 = vpop.f32.mrb[49].mxu1 }
0x1733   :  { %v4858_v9 = vmul.f32 %v4857_v20, %v4694_v61 }
0x1735   :  { %v4937_v30 = vadd.f32 %v4936_v26, %v4858_v9 }
0x1737   :  { %v4939_v31 = vmul.f32 0.01, %v4937_v30  ;;  %vm4938_vm1 = vcmp.gt.f32.partialorder %v4937_v30, 0.0 }
0x1739   :  { %v4940_v32 = vsel %vm4938_vm1, %v4937_v30, %v4939_v31 }
0x173a   :  { %4941 = vst.msk [vmem:[#allocation5] sm:$0x3] %vm4608_vm0, %v4940_v32 }
0x173b   :  { %6749 = shalt.err (!%p6746_p12)
}
0x173c   :  { %s6750_s17 = scalar_lea.hbm %s8165_s26, 32 }
0x173d   :  { %p6751_p13 = scmp.ne.s32.totalorder %s8165_s26, %s6750_s17  ;;  %p6754_p0 = scmp.lt.u32.totalorder %s6750_s17, %s8165_s26 }
0x173f   :  { %p6756_p1 = pnand %p6754_p0, %p6751_p13 }
0x1741   :  { %6759 = shalt.err (!%p6756_p1)
}
0x1742   :  { %4951 = dma.vmem_to_hbm [thread:$0]  %s4949_s21, 32, %s8165_s26, [#allocation4]  }
0x1743   :  { %6762 = dma.done.wait [#allocation4], 32  }
0x1744   :  { %6763 = vsyncadd [#allocation4], 4294967264 }
0x1745   :  { %4955 = vsyncpa [#allocation3], 1 }
0x1746   :  { %4956 = vsyncpa [#allocation4], 1 }

</bundles_post_ra>
